<compile_context>
chip_gen: v7x
topology: tpu7x:2x2x1
jax: 0.10.0
libtpu: 0.0.40
codegen_flags: <defaults>
</compile_context>

<pallas_src>
import jax
import jax.numpy as jnp
import numpy as np
from jax.experimental import pallas as pl
from jax.experimental.pallas import tpu as pltpu


def _erf_f32(x):
    # Abramowitz & Stegun 7.1.26 polynomial (|err| < 1.5e-7).  The 1/(1+p|x|)
    # factor uses the EUP approximate reciprocal + one Newton-Raphson step so the
    # full VALU divide sequence stays off the critical path.
    a1, a2, a3, a4, a5 = (0.254829592, -0.284496736, 1.421413741,
                          -1.453152027, 1.061405429)
    p = 0.3275911
    ax = jnp.abs(x)
    d = 1.0 + p * ax
    r = pl.reciprocal(d, approx=True)
    t = r * (2.0 - d * r)                      # one Newton step
    poly = t * (a1 + t * (a2 + t * (a3 + t * (a4 + t * a5))))
    y = 1.0 - poly * jnp.exp(-ax * ax)
    return jnp.where(x >= 0.0, y, -y)


def _gelu_exact(x):
    # matches torch.nn.functional.gelu (default erf-based).
    # TODO(synk): if a tanh-approximate GELU is acceptable, it is a single EUP op
    # per element (vs exp + reciprocal here) -- review item 9.
    return 0.5 * x * (1.0 + _erf_f32(x * np.float32(1.0 / np.sqrt(2.0))))


def _row_chunks(total_rows, hid):
    """Sublane chunks sized so the per-chunk f32 accumulator stays in vregs."""
    target_bytes = 32 * 1024                        # ~8 vregs of accumulator
    rows = max(8, (target_bytes // max(hid * 4, 1)) // 8 * 8)
    rows = min(rows, total_rows)
    chunks, s = [], 0
    while s < total_rows:
        n = min(rows, total_rows - s)
        chunks.append((s, n))
        s += n
    return chunks


def _make_kernel(H, W, C, HID, GPS, chunks):
    HW = H * W

    def kernel(x_ref, w1_ref, wdw_ref, w3_ref, o_ref, pad_ref):
        # x_ref  : (1, HW, C)          f32   natural NHWC layout, pixels on sublanes
        # w1_ref : (C, HID)            bf16  first 1x1 conv weight  [in, out]
        # wdw_ref: (9, HID)            f32   depthwise 3x3 weight   [tap=ky*3+kx, chan]
        # w3_ref : (HID, C)            bf16  last  1x1 conv weight  [in, out]
        # o_ref  : (1, HW, C)                output, natural layout
        # pad_ref: (GPS+HW+GPS, HID)   f32   zero-guarded GELU(conv1) image
        x2 = x_ref.at[0]                      # (HW, C) view
        o2 = o_ref.at[0]                      # (HW, C) view

        # Zero only the two small guard bands (never the interior).  Done every
        # grid step so the kernel stays correct if the "parallel" batch axis is
        # split across TensorCores.
        pad_ref[:GPS, :] = jnp.zeros((GPS, HID), jnp.float32)
        pad_ref[GPS + HW:, :] = jnp.zeros((GPS, HID), jnp.float32)

        # ---- phase 1: 1x1 conv (bf16 MXU, f32 acc) + GELU, one store/chunk ----
        for start, size in chunks:
            xb = x2[start:start + size, :].astype(jnp.bfloat16)
            h1 = jnp.dot(xb, w1_ref[...], preferred_element_type=jnp.float32)
            pad_ref[GPS + start:GPS + start + size, :] = _gelu_exact(h1)

        wdw = wdw_ref[...]                    # (9, HID) f32, hoisted once (item 12)

        # ---- phase 2+3: 3x3 depthwise + GELU + 1x1 conv, register-chunked ----
        for start, size in chunks:
            # sublane masks that kill row-wrap for the horizontal (dx != 0) taps
            col = (start + jax.lax.broadcasted_iota(jnp.int32, (size, 1), 0)) % W
            not_left = (col != 0).astype(jnp.float32)       # dx=-1 invalid at w==0
            not_right = (col != W - 1).astype(jnp.float32)  # dx=+1 invalid at w==W-1

            acc = None
            for ky in range(3):
                for kx in range(3):
                    k = ky * 3 + kx
                    delta = (ky - 1) * W + (kx - 1)
                    base = GPS + start + delta
                    tap = pad_ref[base:base + size, :]      # (size, HID) f32
                    if kx == 0:
                        tap = tap * not_left
                    elif kx == 2:
                        tap = tap * not_right
                    contrib = wdw[k:k + 1, :] * tap
                    acc = contrib if acc is None else acc + contrib

            h2 = _gelu_exact(acc).astype(jnp.bfloat16)
            out = jnp.dot(h2, w3_ref[...], preferred_element_type=jnp.float32)
            o2[start:start + size, :] = out.astype(o_ref.dtype)

    return kernel


def feed_forward(x, w1, wdw, w3):
    """FeedForward forward pass (matches the PyTorch module's x:[b,h,w,c] API).

    x  : [B, H, W, C]
    w1 : [C, HID]   == torch Conv2d(C, HID, 1).weight[:, :, 0, 0].T
    wdw: [9, HID]   == torch Conv2d(HID, HID, 3, groups=HID).weight[:, 0].reshape(HID, 9).T
    w3 : [HID, C]   == torch Conv2d(HID, C, 1).weight[:, :, 0, 0].T
    returns [B, H, W, C]
    """
    B, H, W, C = x.shape
    HID = w1.shape[1]
    HW = H * W
    GPS = ((W + 1 + 7) // 8) * 8              # sublane-aligned guard band, >= W+1
    chunks = _row_chunks(HW, HID)

    # Natural layout: only free reshapes, no HBM transpose passes (item 3).
    x_flat = x.reshape(B, HW, C)
    w1_bf = w1.astype(jnp.bfloat16)
    w3_bf = w3.astype(jnp.bfloat16)
    wdw_f32 = wdw.astype(jnp.float32)

    # Exact VMEM footprint: scratch + double-buffered in/out blocks + (default
    # double-buffered) weights; never clamp the limit below it (item 6).
    scratch_bytes = 4 * (2 * GPS + HW) * HID
    io_block_bytes = 2 * 2 * HW * C * x.dtype.itemsize
    weight_bytes = 2 * (2 * C * HID + 4 * 9 * HID + 2 * HID * C)
    footprint = scratch_bytes + io_block_bytes + weight_bytes
    try:
        phys = int(pltpu.get_tpu_info().vmem_capacity_bytes)
    except Exception:
        phys = 64 * 1024 * 1024               # conservative (v7x per-TC VMEM)
    cap = max(min(phys - (8 << 20), 100 << 20), 16 << 20)
    vmem_limit = int(max(footprint + (2 << 20),
                         min(footprint + max(footprint // 2, 8 << 20), cap)))

    # TODO(synk): for HID*HW slabs too large for one VMEM-resident pad buffer
    # (v7x 64 MiB), add a halo'd row-tile grid axis; it would double as a second
    # "parallel" dimension to feed both v7x TensorCores when B is small/odd.
    # NOTE: the three weight specs are constant across the grid; where supported
    # they could be single-buffered (pipeline_mode=pl.Buffered(1)) to halve their
    # VMEM footprint (review item 7).
    out_flat = pl.pallas_call(
        _make_kernel(H, W, C, HID, GPS, chunks),
        out_shape=jax.ShapeDtypeStruct((B, HW, C), x.dtype),
        grid_spec=pltpu.PrefetchScalarGridSpec(
            num_scalar_prefetch=0,
            grid=(B,),
            in_specs=[
                pl.BlockSpec((1, HW, C), lambda b: (b, 0, 0)),
                pl.BlockSpec((C, HID), lambda b: (0, 0)),
                pl.BlockSpec((9, HID), lambda b: (0, 0)),
                pl.BlockSpec((HID, C), lambda b: (0, 0)),
            ],
            out_specs=pl.BlockSpec((1, HW, C), lambda b: (b, 0, 0)),
            scratch_shapes=[
                pltpu.VMEM((2 * GPS + HW, HID), jnp.float32),
            ],
        ),
        compiler_params=pltpu.CompilerParams(
            dimension_semantics=("parallel",),
            vmem_limit_bytes=vmem_limit,
        ),
    )(x_flat, w1_bf, wdw_f32, w3_bf)

    return out_flat.reshape(B, H, W, C)


def feed_forward_reference(x, w1, wdw, w3, mxu_dtype=None):
    """Pure-JAX reference with exact (erf) GELU, mirroring the PyTorch module.

    When `mxu_dtype` is given, the 1x1-conv operands are rounded to that dtype
    (with f32 accumulation), mirroring the kernel's bf16-MXU precision policy so
    the comparison stays tight.  With mxu_dtype=None it is the pure-f32 / torch
    semantics reference.
    """
    B, H, W, C = x.shape
    HID = w1.shape[1]

    def q(a):
        return a.astype(mxu_dtype).astype(jnp.float32) if mxu_dtype is not None else a

    h1 = jax.nn.gelu(jnp.einsum('bhwc,cf->bhwf', q(x), q(w1)), approximate=False)
    hp = jnp.pad(h1, ((0, 0), (1, 1), (1, 1), (0, 0)))
    acc = jnp.zeros((B, H, W, HID), jnp.float32)
    for ky in range(3):
        for kx in range(3):
            acc = acc + hp[:, ky:ky + H, kx:kx + W, :] * wdw[ky * 3 + kx]
    h2 = jax.nn.gelu(acc, approximate=False)
    return jnp.einsum('bhwf,fc->bhwc', q(h2), q(w3))


if __name__ == "__main__":
    B, H, W, C = 2, 16, 16, 4
    MULT = 4
    HID = C * MULT

    key = jax.random.PRNGKey(0)
    kx_, k1, k2, k3 = jax.random.split(key, 4)
    x = jax.random.normal(kx_, (B, H, W, C), jnp.float32)

    # deterministic synthetic weights (PyTorch Conv2d shapes folded):
    #   nn.Conv2d(C, HID, 1, bias=False)                 [HID, C, 1, 1] -> w1  [C, HID]
    #   nn.Conv2d(HID, HID, 3, pad=1, groups=HID, ...)   [HID, 1, 3, 3] -> wdw [9, HID]
    #   nn.Conv2d(HID, C, 1, bias=False)                 [C, HID, 1, 1] -> w3  [HID, C]
    w1 = jax.random.normal(k1, (C, HID), jnp.float32) * np.float32(1.0 / np.sqrt(C))
    wdw = jax.random.normal(k2, (9, HID), jnp.float32) * np.float32(1.0 / 3.0)
    w3 = jax.random.normal(k3, (HID, C), jnp.float32) * np.float32(1.0 / np.sqrt(HID))

    out = jax.block_until_ready(feed_forward(x, w1, wdw, w3))

    # Reference mirrors the kernel's bf16-MXU operand policy (review item 1) so
    # the check is tight; the remaining slack covers the in-kernel erf
    # polynomial / approx-reciprocal GELU and f32 accumulation-order noise.
    ref = feed_forward_reference(x, w1, wdw, w3, mxu_dtype=jnp.bfloat16)
    np.testing.assert_allclose(np.asarray(out), np.asarray(ref),
                               rtol=5e-3, atol=5e-3)
    print("KERNEL_OK")
</pallas_src>

<mosaic_0001>
module attributes {stable_mosaic.version = 11 : i64} {
  func.func @kernel(%arg0: i32, %arg1: memref<1x256x4xf32, #tpu.memory_space<vmem>>, %arg2: memref<4x16xbf16, #tpu.memory_space<vmem>>, %arg3: memref<9x16xf32, #tpu.memory_space<vmem>>, %arg4: memref<16x4xbf16, #tpu.memory_space<vmem>>, %arg5: memref<1x256x4xf32, #tpu.memory_space<vmem>>, %arg6: memref<304x16xf32, #tpu.memory_space<vmem>>) attributes {dimension_semantics = [#tpu.dimension_semantics<parallel>], iteration_bounds = array<i64: 2>, scalar_prefetch = 0 : i64, scratch_operands = 1 : i64, tpu.core_type = #tpu.core_type<tc>, window_params = [{transform_indices = @transform_0, window_bounds = array<i64: 1, 256, 4>}, {pipeline_mode = #tpu.pipeline_mode<synchronous>, transform_indices = @transform_1, window_bounds = array<i64: 4, 16>}, {pipeline_mode = #tpu.pipeline_mode<synchronous>, transform_indices = @transform_2, window_bounds = array<i64: 9, 16>}, {pipeline_mode = #tpu.pipeline_mode<synchronous>, transform_indices = @transform_3, window_bounds = array<i64: 16, 4>}, {transform_indices = @transform_4, window_bounds = array<i64: 1, 256, 4>}]} {
    %cst = arith.constant 0.000000e+00 : f32
    %0 = vector.broadcast %cst : f32 to vector<24x16xf32>
    %c0 = arith.constant 0 : index
    %c0_0 = arith.constant 0 : index
    %1 = vector.load %arg6[%c0, %c0_0] : memref<304x16xf32, #tpu.memory_space<vmem>>, vector<24x16xf32>
    tpu.vector_store %arg6[%c0, %c0_0], %0 {strides = array<i32>} : memref<304x16xf32, #tpu.memory_space<vmem>>, vector<24x16xf32>,
    %cst_1 = arith.constant 0.000000e+00 : f32
    %2 = vector.broadcast %cst_1 : f32 to vector<24x16xf32>
    %c280 = arith.constant 280 : index
    %c0_2 = arith.constant 0 : index
    %3 = vector.load %arg6[%c280, %c0_2] : memref<304x16xf32, #tpu.memory_space<vmem>>, vector<24x16xf32>
    tpu.vector_store %arg6[%c280, %c0_2], %2 {strides = array<i32>} : memref<304x16xf32, #tpu.memory_space<vmem>>, vector<24x16xf32>,
    %c0_i32 = arith.constant 0 : i32
    %c0_i32_3 = arith.constant 0 : i32
    %c0_i32_4 = arith.constant 0 : i32
    %4 = tpu.memref_slice %arg1[%c0_i32, %c0_i32_3, %c0_i32_4] : memref<1x256x4xf32, #tpu.memory_space<vmem>> -> memref<1x256x4xf32, #tpu.memory_space<vmem>>
    %5 = tpu.memref_squeeze %4 : memref<1x256x4xf32, #tpu.memory_space<vmem>> -> memref<256x4xf32, #tpu.memory_space<vmem>>
    %c0_5 = arith.constant 0 : index
    %c0_6 = arith.constant 0 : index
    %6 = vector.load %5[%c0_5, %c0_6] : memref<256x4xf32, #tpu.memory_space<vmem>>, vector<256x4xf32>
    %7 = arith.truncf %6 : vector<256x4xf32> to vector<256x4xbf16>
    %c0_7 = arith.constant 0 : index
    %c0_8 = arith.constant 0 : index
    %8 = vector.load %arg2[%c0_7, %c0_8] : memref<4x16xbf16, #tpu.memory_space<vmem>>, vector<4x16xbf16>
    %cst_9 = arith.constant dense<0.000000e+00> : vector<256x16xf32>
    %9 = tpu.matmul %7, %8, %cst_9 {dimension_numbers = #tpu.dot_dimension_numbers<[1], [0], [0], [1], [0, 0, 1, 1], [], []>} : vector<256x4xbf16>, vector<4x16xbf16>, vector<256x16xf32> -> vector<256x16xf32>
    %cst_10 = arith.constant 5.000000e-01 : f32
    %10 = vector.broadcast %cst_10 : f32 to vector<256x16xf32>
    %11 = arith.mulf %10, %9 : vector<256x16xf32>
    %cst_11 = arith.constant 0.707106769 : f32
    %12 = vector.broadcast %cst_11 : f32 to vector<256x16xf32>
    %13 = arith.mulf %9, %12 : vector<256x16xf32>
    %14 = math.absf %13 : vector<256x16xf32>
    %cst_12 = arith.constant 0.327591091 : f32
    %15 = vector.broadcast %cst_12 : f32 to vector<256x16xf32>
    %16 = arith.mulf %15, %14 : vector<256x16xf32>
    %cst_13 = arith.constant 1.000000e+00 : f32
    %17 = vector.broadcast %cst_13 : f32 to vector<256x16xf32>
    %18 = arith.addf %17, %16 : vector<256x16xf32>
    %19 = tpu.reciprocal %18 {approx = true} : vector<256x16xf32> -> vector<256x16xf32>
    %20 = arith.mulf %18, %19 : vector<256x16xf32>
    %cst_14 = arith.constant 2.000000e+00 : f32
    %21 = vector.broadcast %cst_14 : f32 to vector<256x16xf32>
    %22 = arith.subf %21, %20 : vector<256x16xf32>
    %23 = arith.mulf %19, %22 : vector<256x16xf32>
    %cst_15 = arith.constant 1.06140542 : f32
    %24 = vector.broadcast %cst_15 : f32 to vector<256x16xf32>
    %25 = arith.mulf %23, %24 : vector<256x16xf32>
    %cst_16 = arith.constant -1.45315206 : f32
    %26 = vector.broadcast %cst_16 : f32 to vector<256x16xf32>
    %27 = arith.addf %26, %25 : vector<256x16xf32>
    %28 = arith.mulf %23, %27 : vector<256x16xf32>
    %cst_17 = arith.constant 1.42141378 : f32
    %29 = vector.broadcast %cst_17 : f32 to vector<256x16xf32>
    %30 = arith.addf %29, %28 : vector<256x16xf32>
    %31 = arith.mulf %23, %30 : vector<256x16xf32>
    %cst_18 = arith.constant -0.284496725 : f32
    %32 = vector.broadcast %cst_18 : f32 to vector<256x16xf32>
    %33 = arith.addf %32, %31 : vector<256x16xf32>
    %34 = arith.mulf %23, %33 : vector<256x16xf32>
    %cst_19 = arith.constant 0.254829586 : f32
    %35 = vector.broadcast %cst_19 : f32 to vector<256x16xf32>
    %36 = arith.addf %35, %34 : vector<256x16xf32>
    %37 = arith.mulf %23, %36 : vector<256x16xf32>
    %cst_20 = arith.constant 0.000000e+00 : f32
    %38 = vector.broadcast %cst_20 : f32 to vector<256x16xf32>
    %39 = arith.subf %38, %14 : vector<256x16xf32>
    %40 = arith.mulf %39, %14 : vector<256x16xf32>
    %41 = math.exp %40 : vector<256x16xf32>
    %42 = arith.mulf %37, %41 : vector<256x16xf32>
    %cst_21 = arith.constant 1.000000e+00 : f32
    %43 = vector.broadcast %cst_21 : f32 to vector<256x16xf32>
    %44 = arith.subf %43, %42 : vector<256x16xf32>
    %cst_22 = arith.constant 0.000000e+00 : f32
    %45 = vector.broadcast %cst_22 : f32 to vector<256x16xf32>
    %46 = arith.cmpf oge, %13, %45 : vector<256x16xf32>
    %cst_23 = arith.constant 0.000000e+00 : f32
    %47 = vector.broadcast %cst_23 : f32 to vector<256x16xf32>
    %48 = arith.subf %47, %44 : vector<256x16xf32>
    %49 = arith.select %46, %44, %48 : vector<256x16xi1>, vector<256x16xf32>
    %cst_24 = arith.constant 1.000000e+00 : f32
    %50 = vector.broadcast %cst_24 : f32 to vector<256x16xf32>
    %51 = arith.addf %50, %49 : vector<256x16xf32>
    %52 = arith.mulf %11, %51 : vector<256x16xf32>
    %c24 = arith.constant 24 : index
    %c0_25 = arith.constant 0 : index
    %53 = vector.load %arg6[%c24, %c0_25] : memref<304x16xf32, #tpu.memory_space<vmem>>, vector<256x16xf32>
    tpu.vector_store %arg6[%c24, %c0_25], %52 {strides = array<i32>} : memref<304x16xf32, #tpu.memory_space<vmem>>, vector<256x16xf32>,
    %c0_26 = arith.constant 0 : index
    %c0_27 = arith.constant 0 : index
    %54 = vector.load %arg3[%c0_26, %c0_27] : memref<9x16xf32, #tpu.memory_space<vmem>>, vector<9x16xf32>
    %55 = tpu.iota {dimensions = array<i32: 0>} : vector<256x1xi32>
    %c0_i32_28 = arith.constant 0 : i32
    %56 = vector.broadcast %c0_i32_28 : i32 to vector<256x1xi32>
    %57 = arith.addi %56, %55 : vector<256x1xi32>
    %c16_i32 = arith.constant 16 : i32
    %c0_i32_29 = arith.constant 0 : i32
    %58 = arith.cmpi eq, %c16_i32, %c0_i32_29 : i32
    %c1_i32 = arith.constant 1 : i32
    %59 = arith.select %58, %c1_i32, %c16_i32 : i32
    %60 = vector.broadcast %59 : i32 to vector<256x1xi32>
    %61 = arith.remsi %57, %60 : vector<256x1xi32>
    %c0_i32_30 = arith.constant 0 : i32
    %62 = vector.broadcast %c0_i32_30 : i32 to vector<256x1xi32>
    %63 = arith.cmpi ne, %61, %62 : vector<256x1xi32>
    %c0_i32_31 = arith.constant 0 : i32
    %64 = vector.broadcast %c0_i32_31 : i32 to vector<256x1xi32>
    %65 = arith.cmpi slt, %61, %64 : vector<256x1xi32>
    %c0_i32_32 = arith.constant 0 : i32
    %66 = arith.cmpi slt, %59, %c0_i32_32 : i32
    %67 = vector.broadcast %66 : i1 to vector<256x1xi1>
    %68 = vector.broadcast %67 : vector<256x1xi1> to vector<256x1xi1>
    %69 = arith.xori %65, %68 : vector<256x1xi1>
    %70 = arith.andi %69, %63 : vector<256x1xi1>
    %71 = vector.broadcast %59 : i32 to vector<256x1xi32>
    %72 = arith.addi %61, %71 : vector<256x1xi32>
    %73 = arith.select %70, %72, %61 : vector<256x1xi1>, vector<256x1xi32>
    %c0_i32_33 = arith.constant 0 : i32
    %74 = vector.broadcast %c0_i32_33 : i32 to vector<256x1xi32>
    %75 = arith.cmpi ne, %73, %74 : vector<256x1xi32>
    %76 = arith.extui %75 : vector<256x1xi1> to vector<256x1xi32>
    %77 = arith.sitofp %76 : vector<256x1xi32> to vector<256x1xf32>
    %c15_i32 = arith.constant 15 : i32
    %78 = vector.broadcast %c15_i32 : i32 to vector<256x1xi32>
    %79 = arith.cmpi ne, %73, %78 : vector<256x1xi32>
    %80 = arith.extui %79 : vector<256x1xi1> to vector<256x1xi32>
    %81 = arith.sitofp %80 : vector<256x1xi32> to vector<256x1xf32>
    %c7 = arith.constant 7 : index
    %c0_34 = arith.constant 0 : index
    %82 = vector.load %arg6[%c7, %c0_34] : memref<304x16xf32, #tpu.memory_space<vmem>>, vector<256x16xf32>
    %83 = vector.broadcast %77 : vector<256x1xf32> to vector<256x16xf32>
    %84 = arith.mulf %82, %83 : vector<256x16xf32>
    %85 = vector.extract_strided_slice %54 {offsets = [0, 0], sizes = [1, 16], strides = [1, 1]} : vector<9x16xf32> to vector<1x16xf32>
    %86 = vector.broadcast %85 : vector<1x16xf32> to vector<256x16xf32>
    %87 = arith.mulf %86, %84 : vector<256x16xf32>
    %c8 = arith.constant 8 : index
    %c0_35 = arith.constant 0 : index
    %88 = vector.load %arg6[%c8, %c0_35] : memref<304x16xf32, #tpu.memory_space<vmem>>, vector<256x16xf32>
    %89 = vector.extract_strided_slice %54 {offsets = [1, 0], sizes = [1, 16], strides = [1, 1]} : vector<9x16xf32> to vector<1x16xf32>
    %90 = vector.broadcast %89 : vector<1x16xf32> to vector<256x16xf32>
    %91 = arith.mulf %90, %88 : vector<256x16xf32>
    %92 = arith.addf %87, %91 : vector<256x16xf32>
    %c9 = arith.constant 9 : index
    %c0_36 = arith.constant 0 : index
    %93 = vector.load %arg6[%c9, %c0_36] : memref<304x16xf32, #tpu.memory_space<vmem>>, vector<256x16xf32>
    %94 = vector.broadcast %81 : vector<256x1xf32> to vector<256x16xf32>
    %95 = arith.mulf %93, %94 : vector<256x16xf32>
    %96 = vector.extract_strided_slice %54 {offsets = [2, 0], sizes = [1, 16], strides = [1, 1]} : vector<9x16xf32> to vector<1x16xf32>
    %97 = vector.broadcast %96 : vector<1x16xf32> to vector<256x16xf32>
    %98 = arith.mulf %97, %95 : vector<256x16xf32>
    %99 = arith.addf %92, %98 : vector<256x16xf32>
    %c23 = arith.constant 23 : index
    %c0_37 = arith.constant 0 : index
    %100 = vector.load %arg6[%c23, %c0_37] : memref<304x16xf32, #tpu.memory_space<vmem>>, vector<256x16xf32>
    %101 = vector.broadcast %77 : vector<256x1xf32> to vector<256x16xf32>
    %102 = arith.mulf %100, %101 : vector<256x16xf32>
    %103 = vector.extract_strided_slice %54 {offsets = [3, 0], sizes = [1, 16], strides = [1, 1]} : vector<9x16xf32> to vector<1x16xf32>
    %104 = vector.broadcast %103 : vector<1x16xf32> to vector<256x16xf32>
    %105 = arith.mulf %104, %102 : vector<256x16xf32>
    %106 = arith.addf %99, %105 : vector<256x16xf32>
    %c24_38 = arith.constant 24 : index
    %c0_39 = arith.constant 0 : index
    %107 = vector.load %arg6[%c24_38, %c0_39] : memref<304x16xf32, #tpu.memory_space<vmem>>, vector<256x16xf32>
    %108 = vector.extract_strided_slice %54 {offsets = [4, 0], sizes = [1, 16], strides = [1, 1]} : vector<9x16xf32> to vector<1x16xf32>
    %109 = vector.broadcast %108 : vector<1x16xf32> to vector<256x16xf32>
    %110 = arith.mulf %109, %107 : vector<256x16xf32>
    %111 = arith.addf %106, %110 : vector<256x16xf32>
    %c25 = arith.constant 25 : index
    %c0_40 = arith.constant 0 : index
    %112 = vector.load %arg6[%c25, %c0_40] : memref<304x16xf32, #tpu.memory_space<vmem>>, vector<256x16xf32>
    %113 = vector.broadcast %81 : vector<256x1xf32> to vector<256x16xf32>
    %114 = arith.mulf %112, %113 : vector<256x16xf32>
    %115 = vector.extract_strided_slice %54 {offsets = [5, 0], sizes = [1, 16], strides = [1, 1]} : vector<9x16xf32> to vector<1x16xf32>
    %116 = vector.broadcast %115 : vector<1x16xf32> to vector<256x16xf32>
    %117 = arith.mulf %116, %114 : vector<256x16xf32>
    %118 = arith.addf %111, %117 : vector<256x16xf32>
    %c39 = arith.constant 39 : index
    %c0_41 = arith.constant 0 : index
    %119 = vector.load %arg6[%c39, %c0_41] : memref<304x16xf32, #tpu.memory_space<vmem>>, vector<256x16xf32>
    %120 = vector.broadcast %77 : vector<256x1xf32> to vector<256x16xf32>
    %121 = arith.mulf %119, %120 : vector<256x16xf32>
    %122 = vector.extract_strided_slice %54 {offsets = [6, 0], sizes = [1, 16], strides = [1, 1]} : vector<9x16xf32> to vector<1x16xf32>
    %123 = vector.broadcast %122 : vector<1x16xf32> to vector<256x16xf32>
    %124 = arith.mulf %123, %121 : vector<256x16xf32>
    %125 = arith.addf %118, %124 : vector<256x16xf32>
    %c40 = arith.constant 40 : index
    %c0_42 = arith.constant 0 : index
    %126 = vector.load %arg6[%c40, %c0_42] : memref<304x16xf32, #tpu.memory_space<vmem>>, vector<256x16xf32>
    %127 = vector.extract_strided_slice %54 {offsets = [7, 0], sizes = [1, 16], strides = [1, 1]} : vector<9x16xf32> to vector<1x16xf32>
    %128 = vector.broadcast %127 : vector<1x16xf32> to vector<256x16xf32>
    %129 = arith.mulf %128, %126 : vector<256x16xf32>
    %130 = arith.addf %125, %129 : vector<256x16xf32>
    %c41 = arith.constant 41 : index
    %c0_43 = arith.constant 0 : index
    %131 = vector.load %arg6[%c41, %c0_43] : memref<304x16xf32, #tpu.memory_space<vmem>>, vector<256x16xf32>
    %132 = vector.broadcast %81 : vector<256x1xf32> to vector<256x16xf32>
    %133 = arith.mulf %131, %132 : vector<256x16xf32>
    %134 = vector.extract_strided_slice %54 {offsets = [8, 0], sizes = [1, 16], strides = [1, 1]} : vector<9x16xf32> to vector<1x16xf32>
    %135 = vector.broadcast %134 : vector<1x16xf32> to vector<256x16xf32>
    %136 = arith.mulf %135, %133 : vector<256x16xf32>
    %137 = arith.addf %130, %136 : vector<256x16xf32>
    %cst_44 = arith.constant 5.000000e-01 : f32
    %138 = vector.broadcast %cst_44 : f32 to vector<256x16xf32>
    %139 = arith.mulf %138, %137 : vector<256x16xf32>
    %cst_45 = arith.constant 0.707106769 : f32
    %140 = vector.broadcast %cst_45 : f32 to vector<256x16xf32>
    %141 = arith.mulf %137, %140 : vector<256x16xf32>
    %142 = math.absf %141 : vector<256x16xf32>
    %cst_46 = arith.constant 0.327591091 : f32
    %143 = vector.broadcast %cst_46 : f32 to vector<256x16xf32>
    %144 = arith.mulf %143, %142 : vector<256x16xf32>
    %cst_47 = arith.constant 1.000000e+00 : f32
    %145 = vector.broadcast %cst_47 : f32 to vector<256x16xf32>
    %146 = arith.addf %145, %144 : vector<256x16xf32>
    %147 = tpu.reciprocal %146 {approx = true} : vector<256x16xf32> -> vector<256x16xf32>
    %148 = arith.mulf %146, %147 : vector<256x16xf32>
    %cst_48 = arith.constant 2.000000e+00 : f32
    %149 = vector.broadcast %cst_48 : f32 to vector<256x16xf32>
    %150 = arith.subf %149, %148 : vector<256x16xf32>
    %151 = arith.mulf %147, %150 : vector<256x16xf32>
    %cst_49 = arith.constant 1.06140542 : f32
    %152 = vector.broadcast %cst_49 : f32 to vector<256x16xf32>
    %153 = arith.mulf %151, %152 : vector<256x16xf32>
    %cst_50 = arith.constant -1.45315206 : f32
    %154 = vector.broadcast %cst_50 : f32 to vector<256x16xf32>
    %155 = arith.addf %154, %153 : vector<256x16xf32>
    %156 = arith.mulf %151, %155 : vector<256x16xf32>
    %cst_51 = arith.constant 1.42141378 : f32
    %157 = vector.broadcast %cst_51 : f32 to vector<256x16xf32>
    %158 = arith.addf %157, %156 : vector<256x16xf32>
    %159 = arith.mulf %151, %158 : vector<256x16xf32>
    %cst_52 = arith.constant -0.284496725 : f32
    %160 = vector.broadcast %cst_52 : f32 to vector<256x16xf32>
    %161 = arith.addf %160, %159 : vector<256x16xf32>
    %162 = arith.mulf %151, %161 : vector<256x16xf32>
    %cst_53 = arith.constant 0.254829586 : f32
    %163 = vector.broadcast %cst_53 : f32 to vector<256x16xf32>
    %164 = arith.addf %163, %162 : vector<256x16xf32>
    %165 = arith.mulf %151, %164 : vector<256x16xf32>
    %cst_54 = arith.constant 0.000000e+00 : f32
    %166 = vector.broadcast %cst_54 : f32 to vector<256x16xf32>
    %167 = arith.subf %166, %142 : vector<256x16xf32>
    %168 = arith.mulf %167, %142 : vector<256x16xf32>
    %169 = math.exp %168 : vector<256x16xf32>
    %170 = arith.mulf %165, %169 : vector<256x16xf32>
    %cst_55 = arith.constant 1.000000e+00 : f32
    %171 = vector.broadcast %cst_55 : f32 to vector<256x16xf32>
    %172 = arith.subf %171, %170 : vector<256x16xf32>
    %cst_56 = arith.constant 0.000000e+00 : f32
    %173 = vector.broadcast %cst_56 : f32 to vector<256x16xf32>
    %174 = arith.cmpf oge, %141, %173 : vector<256x16xf32>
    %cst_57 = arith.constant 0.000000e+00 : f32
    %175 = vector.broadcast %cst_57 : f32 to vector<256x16xf32>
    %176 = arith.subf %175, %172 : vector<256x16xf32>
    %177 = arith.select %174, %172, %176 : vector<256x16xi1>, vector<256x16xf32>
    %cst_58 = arith.constant 1.000000e+00 : f32
    %178 = vector.broadcast %cst_58 : f32 to vector<256x16xf32>
    %179 = arith.addf %178, %177 : vector<256x16xf32>
    %180 = arith.mulf %139, %179 : vector<256x16xf32>
    %181 = arith.truncf %180 : vector<256x16xf32> to vector<256x16xbf16>
    %c0_59 = arith.constant 0 : index
    %c0_60 = arith.constant 0 : index
    %182 = vector.load %arg4[%c0_59, %c0_60] : memref<16x4xbf16, #tpu.memory_space<vmem>>, vector<16x4xbf16>
    %cst_61 = arith.constant dense<0.000000e+00> : vector<256x4xf32>
    %183 = tpu.matmul %181, %182, %cst_61 {dimension_numbers = #tpu.dot_dimension_numbers<[1], [0], [0], [1], [0, 0, 1, 1], [], []>} : vector<256x16xbf16>, vector<16x4xbf16>, vector<256x4xf32> -> vector<256x4xf32>
    %c0_i32_62 = arith.constant 0 : i32
    %c0_i32_63 = arith.constant 0 : i32
    %c0_i32_64 = arith.constant 0 : i32
    %184 = tpu.memref_slice %arg5[%c0_i32_62, %c0_i32_63, %c0_i32_64] : memref<1x256x4xf32, #tpu.memory_space<vmem>> -> memref<1x256x4xf32, #tpu.memory_space<vmem>>
    %185 = tpu.memref_squeeze %184 : memref<1x256x4xf32, #tpu.memory_space<vmem>> -> memref<256x4xf32, #tpu.memory_space<vmem>>
    %c0_65 = arith.constant 0 : index
    %c0_66 = arith.constant 0 : index
    %186 = vector.load %185[%c0_65, %c0_66] : memref<256x4xf32, #tpu.memory_space<vmem>>, vector<256x4xf32>
    tpu.vector_store %185[%c0_65, %c0_66], %183 {strides = array<i32>} : memref<256x4xf32, #tpu.memory_space<vmem>>, vector<256x4xf32>,
    return
  }
  func.func @transform_0(%arg0: i32) -> (i32, i32, i32) {
    %c0_i32 = arith.constant 0 : i32
    %c0_i32_0 = arith.constant 0 : i32
    %c0_i32_1 = arith.constant 0 : i32
    return %arg0, %c0_i32, %c0_i32_0 : i32, i32, i32
  }
  func.func @transform_1(%arg0: i32) -> (i32, i32) {
    %c0_i32 = arith.constant 0 : i32
    %c0_i32_0 = arith.constant 0 : i32
    %c0_i32_1 = arith.constant 0 : i32
    return %c0_i32, %c0_i32_0 : i32, i32
  }
  func.func @transform_2(%arg0: i32) -> (i32, i32) {
    %c0_i32 = arith.constant 0 : i32
    %c0_i32_0 = arith.constant 0 : i32
    %c0_i32_1 = arith.constant 0 : i32
    return %c0_i32, %c0_i32_0 : i32, i32
  }
  func.func @transform_3(%arg0: i32) -> (i32, i32) {
    %c0_i32 = arith.constant 0 : i32
    %c0_i32_0 = arith.constant 0 : i32
    %c0_i32_1 = arith.constant 0 : i32
    return %c0_i32, %c0_i32_0 : i32, i32
  }
  func.func @transform_4(%arg0: i32) -> (i32, i32, i32) {
    %c0_i32 = arith.constant 0 : i32
    %c0_i32_0 = arith.constant 0 : i32
    %c0_i32_1 = arith.constant 0 : i32
    return %arg0, %c0_i32, %c0_i32_0 : i32, i32, i32
  }
}

</mosaic_0001>

<bundles_post_ra>
// kernel: tpu_custom_call.1
= control target key start
LH: loop header
LB: loop body
LE: loop exit
PB: predicated region body
PF: predicated region fallthrough
CT: control target
= control target key end

     0   :  { %s4653_s15 = smov 0   ;;  %s7325_s0 = inlined_call_operand.vmem [shape: f32[2,256,4], index: 0, kind: input, shape index: {}]   ;;  %s7326_s1 = inlined_call_operand.vmem [shape: bf16[4,16], index: 1, kind: input, shape index: {}]   ;;  %s7327_s2 = inlined_call_operand.vmem [shape: f32[9,16], index: 2, kind: input, shape index: {}]   ;;  %s7328_s3 = inlined_call_operand.vmem [shape: bf16[16,4], index: 3, kind: input, shape index: {}]   ;;  %s7329_s4 = inlined_call_operand.vmem [shape: f32[2,256,4], index: 4, kind: output, shape index: {}]  }
   0x1 LB: > { %s4168_s16 = sadd.s32 4294967295, %s4625_s15   ;;  %p4172_p0 = scmp.ge.s32.totalorder %s4625_s15, 1  ;;  %s4625_s15 = sphi %s4653_s15, %s14_s15  }
   0x2   : > { %p162_p1 = scmp.lt.s32.totalorder %s4625_s15, 3 }
   0x4   : > { %p163_p2 = pnand %p4172_p0, %p162_p1 }
   0x6   : > { %166 = sbr.rel (%p163_p2) target bundleno = 1145 (0x479), region = 36 }
   0xd   : > { %v254_v0 = vld [vmem:[%s7326_s1] sm:$0x3]  ;;  %vm304_vm0 = vcmask 1041408   ;;  %p188_p3 = scmp.lt.s32.totalorder %s4168_s16, 1  ;;  %vm255_vm1 = vcmask 31744   ;;  %vm199_vm5 = vcmask 130048  }
   0xe   : > { %4349 = vmatprep.subr.msk.bf16.mxu0 %vm304_vm0, %v254_v0  ;;  %v306_v1 = vsel %vm304_vm0, %v254_v0, 0 }
   0xf   : > { %4282 = vmatpush3.bf16.msra.mxu0 %v306_v1  ;;  %s7376_s16 = smov (!%p188_p3, %s4168_s16), 1 }
  0x10   : > { %s4245_s19 = sshll.u32 %s7376_s16, 8 }
  0x11   : > { %s4672_s22 = scalar_lea.vmem %s7325_s0, %s4245_s19  ;;  %s6960_s9 = scalar_lea.vmem %s7329_s4, %s4245_s19 }
  0x12   : > { %v206_v2 = vld [vmem:[%s4672_s22] sm:$0xff]  ;;  %v207_v3 = vld [vmem:[%s4672_s22 + $0x8] sm:$0xff]  ;;  %v208_v4 = vld [vmem:[%s4672_s22 + $0x10] sm:$0xff] }
  0x13   : > { %v238_v5 = vpack.c.bf16 %v207_v3, %v206_v2  ;;  %v209_v6 = vld [vmem:[%s4672_s22 + $0x18] sm:$0xff]  ;;  %v210_v7 = vld [vmem:[%s4672_s22 + $0x20] sm:$0xff]  ;;  %v211_v8 = vld [vmem:[%s4672_s22 + $0x28] sm:$0xff] }
  0x14   : > { %v239_v9 = vpack.c.bf16 %v209_v6, %v208_v4  ;;  %v240_v10 = vpack.c.bf16 %v211_v8, %v210_v7  ;;  %v212_v11 = vld [vmem:[%s4672_s22 + $0x30] sm:$0xff]  ;;  %v213_v12 = vld [vmem:[%s4672_s22 + $0x38] sm:$0xff]  ;;  %v214_v13 = vld [vmem:[%s4672_s22 + $0x40] sm:$0xff] }
  0x15   : > { %4283 = vmatprep.mubr.msk.bf16.mxu0 %vm255_vm1, %v238_v5  ;;  %v215_v14 = vld [vmem:[%s4672_s22 + $0x48] sm:$0xff]  ;;  %v241_v15 = vpack.c.bf16 %v213_v12, %v212_v11  ;;  %v216_v17 = vld [vmem:[%s4672_s22 + $0x50] sm:$0xff]  ;;  %v217_v18 = vld [vmem:[%s4672_s22 + $0x58] sm:$0xff] }
  0x16   : > { %4284 = vmatmul.mubr.msk.bf16.vlgmr.msra.gmra.mrb[0].mxu0 %vm255_vm1, %v239_v9  ;;  %v242_v16 = vpack.c.bf16 %v215_v14, %v214_v13  ;;  %v218_v19 = vld [vmem:[%s4672_s22 + $0x60] sm:$0xff]  ;;  %v219_v20 = vld [vmem:[%s4672_s22 + $0x68] sm:$0xff]  ;;  %v243_v21 = vpack.c.bf16 %v217_v18, %v216_v17  ;;  %v220_v23 = vld [vmem:[%s4672_s22 + $0x70] sm:$0xff] }
  0x17   : > { %4287 = vmatprep.mubr.msk.bf16.mxu0 %vm255_vm1, %v240_v10  ;;  %v244_v22 = vpack.c.bf16 %v219_v20, %v218_v19  ;;  %v221_v24 = vld [vmem:[%s4672_s22 + $0x78] sm:$0xff]  ;;  %v222_v25 = vld [vmem:[%s4672_s22 + $0x80] sm:$0xff]  ;;  %v223_v26 = vld [vmem:[%s4672_s22 + $0x88] sm:$0xff] }
  0x18   : > { %v245_v27 = vpack.c.bf16 %v221_v24, %v220_v23  ;;  %v246_v28 = vpack.c.bf16 %v223_v26, %v222_v25  ;;  %v224_v29 = vld [vmem:[%s4672_s22 + $0x90] sm:$0xff]  ;;  %v225_v30 = vld [vmem:[%s4672_s22 + $0x98] sm:$0xff]  ;;  %v226_v31 = vld [vmem:[%s4672_s22 + $0xa0] sm:$0xff] }
  0x19   : > { %v227_v32 = vld [vmem:[%s4672_s22 + $0xa8] sm:$0xff]  ;;  %v247_v33 = vpack.c.bf16 %v225_v30, %v224_v29  ;;  %v228_v35 = vld [vmem:[%s4672_s22 + $0xb0] sm:$0xff]  ;;  %v229_v36 = vld [vmem:[%s4672_s22 + $0xb8] sm:$0xff] }
  0x1a   : > { %v248_v34 = vpack.c.bf16 %v227_v32, %v226_v31  ;;  %v230_v37 = vld [vmem:[%s4672_s22 + $0xc0] sm:$0xff]  ;;  %v231_v38 = vld [vmem:[%s4672_s22 + $0xc8] sm:$0xff]  ;;  %v249_v39 = vpack.c.bf16 %v229_v36, %v228_v35  ;;  %v232_v41 = vld [vmem:[%s4672_s22 + $0xd0] sm:$0xff] }
  0x1b   : > { %v250_v40 = vpack.c.bf16 %v231_v38, %v230_v37  ;;  %v233_v42 = vld [vmem:[%s4672_s22 + $0xd8] sm:$0xff]  ;;  %v234_v43 = vld [vmem:[%s4672_s22 + $0xe0] sm:$0xff]  ;;  %v235_v44 = vld [vmem:[%s4672_s22 + $0xe8] sm:$0xff] }
  0x1c   : > { %v251_v45 = vpack.c.bf16 %v233_v42, %v232_v41  ;;  %v252_v46 = vpack.c.bf16 %v235_v44, %v234_v43  ;;  %v236_v47 = vld [vmem:[%s4672_s22 + $0xf0] sm:$0xff]  ;;  %v237_v48 = vld [vmem:[%s4672_s22 + $0xf8] sm:$0xff] }
  0x1d   : > { %v253_v49 = vpack.c.bf16 %v237_v48, %v236_v47 }
  0x1e   : > { %4288 = vmatmul.mubr.msk.bf16.gmra.mrb[4].mxu0 %vm255_vm1, %v241_v15 }
  0x1f   : > { %4291 = vmatprep.mubr.msk.bf16.mxu0 %vm255_vm1, %v242_v16 }
  0x26   : > { %4292 = vmatmul.mubr.msk.bf16.gmra.mrb[8].mxu0 %vm255_vm1, %v243_v21 }
  0x27   : > { %4295 = vmatprep.mubr.msk.bf16.mxu0 %vm255_vm1, %v244_v22 }
  0x2e   : > { %4296 = vmatmul.mubr.msk.bf16.gmra.mrb[12].mxu0 %vm255_vm1, %v245_v27 }
  0x2f   : > { %4299 = vmatprep.mubr.msk.bf16.mxu0 %vm255_vm1, %v246_v28 }
  0x36   : > { %4300 = vmatmul.mubr.msk.bf16.gmra.mrb[16].mxu0 %vm255_vm1, %v247_v33 }
  0x37   : > { %4303 = vmatprep.mubr.msk.bf16.mxu0 %vm255_vm1, %v248_v34 }
  0x3e   : > { %4304 = vmatmul.mubr.msk.bf16.gmra.mrb[20].mxu0 %vm255_vm1, %v249_v39 }
  0x3f   : > { %4307 = vmatprep.mubr.msk.bf16.mxu0 %vm255_vm1, %v250_v40 }
  0x46   : > { %4308 = vmatmul.mubr.msk.bf16.gmra.mrb[24].mxu0 %vm255_vm1, %v251_v45 }
  0x47   : > { %4311 = vmatprep.mubr.msk.bf16.mxu0 %vm255_vm1, %v252_v46 }
  0x4e   : > { %4312 = vmatmul.mubr.msk.bf16.gmra.mrb[28].mxu0 %vm255_vm1, %v253_v49 }
  0xe9   : > { %v4285_v50 = vpop.f32.mrb[0].mxu0 }
  0xea   : > { %v4722_v51 = vmul.f32 0.70710677, %v4285_v50  ;;  %v342_v52 = vpop.f32.mrb[1].mxu0  ;;  %v4744_v17 = vmul.f32 0.5, %v4285_v50 }
  0xeb   : > { %v4724_v53 = vmul.f32 0.70710677, %v342_v52  ;;  %v4286_v54 = vpop.f32.mrb[2].mxu0  ;;  %v4750_v21 = vmul.f32 0.5, %v342_v52 }
  0xec   : > { %v535_v55 = vand.u32 2147483647, %v4722_v51  ;;  %v4727_v56 = vmul.f32 0.70710677, %v4286_v54  ;;  %v345_v58 = vpop.f32.mrb[3].mxu0  ;;  %v4757_v27 = vmul.f32 0.5, %v4286_v54 }
  0xed   : > { %v533_v57 = vand.u32 2147483647, %v4724_v53  ;;  %v4731_v63 = vmul.f32 0.70710677, %v345_v58  ;;  %v4762_v31 = vmul.f32 0.5, %v345_v58  ;;  %vm1239_vm2 = vcmp.ge.f32.partialorder %v4722_v51, 0.0 }
  0xee   : > { %v567_v59 = vmul.f32 0.3275911, %v535_v55  ;;  %v536_v60 = vand.u32 2147483647, %v4727_v56  ;;  %v1047_v61 = vsub.f32 0.0, %v535_v55  ;;  %vm1237_vm3 = vcmp.ge.f32.partialorder %v4724_v53, 0.0 }
  0xef   : > { %v565_v62 = vmul.f32 0.3275911, %v533_v57  ;;  %v1045_v1 = vsub.f32 0.0, %v533_v57  ;;  %v534_v5 = vand.u32 2147483647, %v4731_v63  ;;  %vm1240_vm4 = vcmp.ge.f32.partialorder %v4727_v56, 0.0 }
  0xf0   : > { %v599_v0 = vadd.f32 1.0, %v567_v59  ;;  %v568_v2 = vmul.f32 0.3275911, %v536_v60  ;;  %v1048_v4 = vsub.f32 0.0, %v536_v60  ;;  %v1079_v9 = vmul.f32 %v1047_v61, %v535_v55 }
  0xf1   : > { %v597_v3 = vadd.f32 1.0, %v565_v62  ;;  %v4289_v6 = vpop.f32.mrb[4].mxu0  ;;  %v566_v10 = vmul.f32 0.3275911, %v534_v5  ;;  %v1077_v12 = vmul.f32 %v1045_v1, %v533_v57  ;;  %v1046_v22 = vsub.f32 0.0, %v534_v5 }
  0xf2   : > { %4360 = vrcp.f32 %v599_v0  ;;  %v600_v7 = vadd.f32 1.0, %v568_v2  ;;  %v4734_v8 = vpop.f32.mrb[5].mxu0  ;;  %v4738_v13 = vmul.f32 0.70710677, %v4289_v6  ;;  %v1080_v15 = vmul.f32 %v1048_v4, %v536_v60 }
  0xf3   : > { %4362 = vrcp.f32 %v597_v3  ;;  %v4736_v11 = vpop.f32.mrb[6].mxu0  ;;  %v4742_v16 = vadd.f32 1.0, %v566_v10  ;;  %v4748_v19 = vmul.f32 0.70710677, %v4734_v8  ;;  %v1113_v20 = vmul.f32 1.442695, %v1079_v9 }
  0xf4   : > { %v4740_v14 = vpop.f32.mrb[7].mxu0  ;;  %4364 = vrcp.f32 %v600_v7  ;;  %v539_v18 = vand.u32 2147483647, %v4738_v13  ;;  %v4753_v23 = vmul.f32 0.70710677, %v4736_v11  ;;  %v1078_v36 = vmul.f32 %v1046_v22, %v534_v5 }
  0xf5   : > { %v1109_v24 = vmul.f32 1.442695, %v1077_v12  ;;  %4366 = vrcp.f32 %v4742_v16  ;;  %v537_v26 = vand.u32 2147483647, %v4748_v19  ;;  %v1115_v28 = vmul.f32 1.442695, %v1080_v15 }
  0xf6   : > { %v571_v25 = vmul.f32 0.3275911, %v539_v18  ;;  %v540_v29 = vand.u32 2147483647, %v4753_v23  ;;  %v1051_v33 = vsub.f32 0.0, %v539_v18  ;;  %4368 = vpow2.f32 %v1113_v20 }
  0xf7   : > { %v569_v34 = vmul.f32 0.3275911, %v537_v26  ;;  %v4769_v38 = vmul.f32 0.70710677, %v4740_v14  ;;  %v1049_v41 = vsub.f32 0.0, %v537_v26  ;;  %v4781_v50 = vmul.f32 0.5, %v4289_v6 }
  0xf8   : > { %v4764_v32 = vadd.f32 1.0, %v571_v25  ;;  %v572_v37 = vmul.f32 0.3275911, %v540_v29  ;;  %v1052_v42 = vsub.f32 0.0, %v540_v29  ;;  %v1083_v52 = vmul.f32 %v1051_v33, %v539_v18 }
  0xf9   : > { %v4760_v30 = vpop.f32.mrb[8].mxu0  ;;  %v4772_v40 = vadd.f32 1.0, %v569_v34  ;;  %v538_v47 = vand.u32 2147483647, %v4769_v38  ;;  %v1111_v55 = vmul.f32 1.442695, %v1078_v36  ;;  %v1081_v60 = vmul.f32 %v1049_v41, %v537_v26 }
  0xfa   : > { %v4766_v35 = vpop.f32.mrb[9].mxu0  ;;  %4370 = vrcp.f32 %v4764_v32  ;;  %v4776_v46 = vadd.f32 1.0, %v572_v37  ;;  %v1084_v61 = vmul.f32 %v1052_v42, %v540_v29  ;;  %v1121_v6 = vmul.f32 1.442695, %v1083_v52 }
  0xfb   : > { %v4774_v43 = vpop.f32.mrb[10].mxu0  ;;  %4372 = vpow2.f32 %v1109_v24  ;;  %v570_v57 = vmul.f32 0.3275911, %v538_v47  ;;  %v1050_v62 = vsub.f32 0.0, %v538_v47  ;;  %v4794_v10 = vmul.f32 0.70710677, %v4760_v30 }
  0xfc   : > { %v4361_v39 = vpop.eup %4360  ;;  %v4779_v48 = vpop.f32.mrb[11].mxu0  ;;  %4374 = vpow2.f32 %v1115_v28  ;;  %v1117_v24 = vmul.f32 1.442695, %v1081_v60  ;;  %v1123_v34 = vmul.f32 1.442695, %v1084_v61  ;;  %vm1238_vm6 = vcmp.ge.f32.partialorder %v4731_v63, 0.0 }
  0xfd   : > { %v4363_v44 = vpop.eup %4362  ;;  %v663_v45 = vmul.f32 %v4361_v39, %v599_v0  ;;  %4376 = vrcp.f32 %v4772_v40  ;;  %v4787_v2 = vadd.f32 1.0, %v570_v57  ;;  %v1082_v9 = vmul.f32 %v1050_v62, %v538_v47 }
  0xfe   : > { %v661_v49 = vmul.f32 %v4363_v44, %v597_v3  ;;  %v4365_v58 = vpop.eup %4364  ;;  %4378 = vrcp.f32 %v4776_v46  ;;  %v4805_v25 = vand.u32 2147483647, %v4794_v10  ;;  %vm1243_vm7 = vcmp.ge.f32.partialorder %v4738_v13, 0.0 }
  0xff   : > { %v695_v54 = vsub.f32 2.0, %v663_v45  ;;  %v664_v1 = vmul.f32 %v4365_v58, %v600_v7  ;;  %v4367_v4 = vpop.eup %4366  ;;  %4380 = vrcp.f32 %v4787_v2  ;;  %vm1241_vm8 = vcmp.ge.f32.partialorder %v4748_v19, 0.0 }
 0x100   : > { %v693_v59 = vsub.f32 2.0, %v661_v49  ;;  %v662_v7 = vmul.f32 %v4367_v4, %v4742_v16  ;;  %4382 = vpow2.f32 %v1111_v55  ;;  %v4807_v26 = vpop.eup %4368  ;;  %v575_v41 = vmul.f32 0.3275911, %v4805_v25 }
 0x101   : > { %v4784_v0 = vmul.f32 %v4361_v39, %v695_v54  ;;  %v4789_v3 = vpop.f32.mrb[12].mxu0  ;;  %v696_v18 = vsub.f32 2.0, %v664_v1  ;;  %4384 = vpow2.f32 %v1121_v6  ;;  %v1119_v39 = vmul.f32 1.442695, %v1082_v9 }
 0x102   : > { %v4791_v5 = vmul.f32 %v4363_v44, %v693_v59  ;;  %v4796_v12 = vpop.f32.mrb[13].mxu0  ;;  %v694_v33 = vsub.f32 2.0, %v662_v7  ;;  %v4825_v55 = vmul.f32 0.5, %v4734_v8  ;;  %4386 = vpow2.f32 %v1117_v24 }
 0x103   : > { %v759_v15 = vmul.f32 1.0614054, %v4784_v0  ;;  %v4801_v20 = vpop.f32.mrb[14].mxu0  ;;  %v4809_v29 = vmul.f32 %v4365_v58, %v696_v18  ;;  %v4827_v57 = vadd.f32 1.0, %v575_v41  ;;  %4388 = vpow2.f32 %v1123_v34 }
 0x104   : > { %v757_v22 = vmul.f32 1.0614054, %v4791_v5  ;;  %v4811_v36 = vpop.f32.mrb[15].mxu0  ;;  %v4371_v16 = vpop.eup %4370  ;;  %v4818_v47 = vmul.f32 %v4367_v4, %v694_v33  ;;  %4390 = vpow2.f32 %v1119_v39  ;;  %vm1244_vm9 = vcmp.ge.f32.partialorder %v4753_v23, 0.0 }
 0x105   : > { %v791_v28 = vadd.f32 -1.4531521, %v759_v15  ;;  %v4814_v42 = vpop.eup %4372  ;;  %v760_v45 = vmul.f32 1.0614054, %v4809_v29  ;;  %v667_v49 = vmul.f32 %v4371_v16, %v4764_v32  ;;  %4392 = vrcp.f32 %v4827_v57 }
 0x106   : > { %v789_v37 = vadd.f32 -1.4531521, %v757_v22  ;;  %v4821_v52 = vpop.eup %4374  ;;  %v758_v61 = vmul.f32 1.0614054, %v4818_v47  ;;  %vm1242_vm10 = vcmp.ge.f32.partialorder %v4769_v38, 0.0  ;;  %vm1247_vm11 = vcmp.ge.f32.partialorder %v4794_v10, 0.0 }
 0x107   : > { %v823_v44 = vmul.f32 %v791_v28, %v4784_v0  ;;  %v4377_v58 = vpop.eup %4376  ;;  %v792_v60 = vadd.f32 -1.4531521, %v760_v45  ;;  %v699_v1 = vsub.f32 2.0, %v667_v49 }
 0x108   : > { %v821_v54 = vmul.f32 %v789_v37, %v4791_v5  ;;  %v665_v32 = vmul.f32 %v4377_v58, %v4772_v40  ;;  %v4379_v6 = vpop.eup %4378  ;;  %v790_v15 = vadd.f32 -1.4531521, %v758_v61 }
 0x109   : > { %v855_v59 = vadd.f32 1.4214138, %v823_v44  ;;  %v4831_v4 = vpop.f32.mrb[16].mxu0  ;;  %v824_v9 = vmul.f32 %v792_v60, %v4809_v29  ;;  %v4839_v24 = vmul.f32 %v4371_v16, %v699_v1  ;;  %v668_v40 = vmul.f32 %v4379_v6, %v4776_v46  ;;  %v4381_v34 = vpop.eup %4380 }
 0x10a   : > { %v853_v62 = vadd.f32 1.4214138, %v821_v54  ;;  %v4836_v7 = vpop.f32.mrb[17].mxu0  ;;  %v697_v28 = vsub.f32 2.0, %v665_v32  ;;  %v822_v41 = vmul.f32 %v790_v15, %v4818_v47  ;;  %v4848_v45 = vpop.eup %4382 }
 0x10b   : > { %v887_v8 = vmul.f32 %v855_v59, %v4784_v0  ;;  %v4842_v33 = vpop.f32.mrb[18].mxu0  ;;  %v856_v39 = vadd.f32 1.4214138, %v824_v9  ;;  %v763_v16 = vmul.f32 1.0614054, %v4839_v24  ;;  %v700_v59 = vsub.f32 2.0, %v668_v40  ;;  %v4856_v1 = vpop.eup %4384 }
 0x10c   : > { %v885_v22 = vmul.f32 %v853_v62, %v4791_v5  ;;  %v4846_v44 = vpop.f32.mrb[19].mxu0  ;;  %v4851_v54 = vmul.f32 %v4377_v58, %v697_v28  ;;  %v854_v61 = vadd.f32 1.4214138, %v822_v41  ;;  %v666_v62 = vmul.f32 %v4381_v34, %v4787_v2 }
 0x10d   : > { %v919_v37 = vadd.f32 -0.28449672, %v887_v8  ;;  %7341 = vst [vmem:[#allocation3_spill] sm:$0xff] %v4846_v44  ;;  %v888_v60 = vmul.f32 %v856_v39, %v4809_v29  ;;  %v795_v8 = vadd.f32 -1.4531521, %v763_v16  ;;  %v4860_v15 = vmul.f32 %v4379_v6, %v700_v59  ;;  %v4865_v39 = vpop.eup %4386 }
 0x10e   : > { %v917_v49 = vadd.f32 -0.28449672, %v885_v22  ;;  %v761_v9 = vmul.f32 1.0614054, %v4851_v54  ;;  %v886_v28 = vmul.f32 %v854_v61, %v4818_v47  ;;  %v698_v40 = vsub.f32 2.0, %v666_v62  ;;  %v4870_v18 = vpop.eup %4388 }
 0x10f   : > { %v951_v46 = vmul.f32 %v919_v37, %v4784_v0  ;;  %v920_v58 = vadd.f32 -0.28449672, %v888_v60  ;;  %v827_v41 = vmul.f32 %v795_v8, %v4839_v24  ;;  %v764_v16 = vmul.f32 1.0614054, %v4860_v15  ;;  %v4879_v62 = vpop.eup %4390 }
 0x110   : > { %v949_v32 = vmul.f32 %v917_v49, %v4791_v5  ;;  %v793_v49 = vadd.f32 -1.4531521, %v761_v9  ;;  %v4875_v60 = vmul.f32 %v4381_v34, %v698_v40 }
 0x111   : > { %v983_v22 = vadd.f32 0.2548296, %v951_v46  ;;  %v4863_v37 = vpop.f32.mrb[20].mxu0  ;;  %v952_v59 = vmul.f32 %v920_v58, %v4809_v29  ;;  %v918_v46 = vadd.f32 -0.28449672, %v886_v28 }
 0x112   : > { %7342 = vst [vmem:[#allocation4_spill] sm:$0xff] %v4863_v37  ;;  %v981_v2 = vadd.f32 0.2548296, %v949_v32  ;;  %v4877_v61 = vpop.f32.mrb[21].mxu0  ;;  %v859_v8 = vadd.f32 1.4214138, %v827_v41  ;;  %v825_v9 = vmul.f32 %v793_v49, %v4851_v54  ;;  %v4894_v49 = vpop.eup %4392 }
 0x113   : > { %v1015_v6 = vmul.f32 %v983_v22, %v4784_v0  ;;  %7343 = vst [vmem:[#allocation5_spill] sm:$0xff] %v4877_v61  ;;  %v796_v37 = vadd.f32 -1.4531521, %v764_v16  ;;  %v4883_v44 = vpop.f32.mrb[22].mxu0  ;;  %v984_v22 = vadd.f32 0.2548296, %v952_v59  ;;  %v950_v58 = vmul.f32 %v918_v46, %v4818_v47 }
 0x114   : > { %v1013_v32 = vmul.f32 %v981_v2, %v4791_v5  ;;  %7344 = vst [vmem:[#allocation6_spill] sm:$0xff] %v4883_v44  ;;  %v762_v34 = vmul.f32 1.0614054, %v4875_v60  ;;  %v4888_v28 = vpop.f32.mrb[23].mxu0  ;;  %v891_v5 = vmul.f32 %v859_v8, %v4839_v24  ;;  %v857_v2 = vadd.f32 1.4214138, %v825_v9 }
 0x115   : > { %v1175_v0 = vmul.f32 %v4807_v26, %v1015_v6  ;;  %7345 = vst [vmem:[#allocation7_spill] sm:$0xff] %v4888_v28  ;;  %v828_v41 = vmul.f32 %v796_v37, %v4860_v15  ;;  %v1016_v16 = vmul.f32 %v984_v22, %v4809_v29  ;;  %v982_v6 = vadd.f32 0.2548296, %v950_v58 }
 0x116   : > { %v1173_v40 = vmul.f32 %v4814_v42, %v1013_v32  ;;  %v794_v59 = vadd.f32 -1.4531521, %v762_v34  ;;  %v923_v28 = vadd.f32 -0.28449672, %v891_v5  ;;  %v889_v42 = vmul.f32 %v857_v2, %v4851_v54 }
 0x117   : > { %v1207_v26 = vsub.f32 1.0, %v1175_v0  ;;  %v860_v32 = vadd.f32 1.4214138, %v828_v41  ;;  %v1176_v8 = vmul.f32 %v4821_v52, %v1016_v16  ;;  %v1014_v37 = vmul.f32 %v982_v6, %v4818_v47 }
 0x118   : > { %v1205_v46 = vsub.f32 1.0, %v1173_v40  ;;  %v826_v9 = vmul.f32 %v794_v59, %v4875_v60  ;;  %v955_v29 = vmul.f32 %v923_v28, %v4839_v24  ;;  %v921_v22 = vadd.f32 -0.28449672, %v889_v42 }
 0x119   : > { %v1271_v44 = vsub.f32 0.0, %v1207_v26  ;;  %v4902_v61 = vpop.f32.mrb[24].mxu0  ;;  %v892_v58 = vmul.f32 %v860_v32, %v4860_v15  ;;  %v1208_v5 = vsub.f32 1.0, %v1176_v8  ;;  %v1174_v52 = vmul.f32 %v4848_v45, %v1014_v37 }
 0x11a   : > { %7346 = vst [vmem:[#allocation8_spill] sm:$0xff] %v4902_v61  ;;  %v1269_v0 = vsub.f32 0.0, %v1205_v46  ;;  %v4906_v34 = vpop.f32.mrb[25].mxu0  ;;  %v858_v2 = vadd.f32 1.4214138, %v826_v9  ;;  %v953_v28 = vmul.f32 %v921_v22, %v4851_v54  ;;  %v671_v56 = vmul.f32 %v4894_v49, %v4827_v57 }
 0x11b   : > { %7347 = vst [vmem:[#allocation9_spill] sm:$0xff] %v4906_v34  ;;  %v1303_v40 = vsel %vm1239_vm2, %v1207_v26, %v1271_v44  ;;  %v4911_v47 = vpop.f32.mrb[26].mxu0  ;;  %v987_v6 = vadd.f32 0.2548296, %v955_v29  ;;  %v1272_v42 = vsub.f32 0.0, %v1208_v5  ;;  %v1206_v32 = vsub.f32 1.0, %v1174_v52 }
 0x11c   : > { %v1335_v41 = vadd.f32 1.0, %v1303_v40  ;;  %v1301_v16 = vsel %vm1237_vm3, %v1205_v46, %v1269_v0  ;;  %v924_v34 = vadd.f32 -0.28449672, %v892_v58  ;;  %v4916_v61 = vpop.f32.mrb[27].mxu0  ;;  %v985_v45 = vadd.f32 0.2548296, %v953_v28 }
 0x11d   : > { %v1333_v59 = vadd.f32 1.0, %v1301_v16  ;;  %v1019_v44 = vmul.f32 %v987_v6, %v4839_v24  ;;  %v890_v26 = vmul.f32 %v858_v2, %v4875_v60  ;;  %v1304_v53 = vsel %vm1240_vm4, %v1208_v5, %v1272_v42 }
 0x11e   : > { %v1367_v51 = vmul.f32 %v1335_v41, %v4744_v17  ;;  %v1270_v46 = vsub.f32 0.0, %v1206_v32  ;;  %v956_v37 = vmul.f32 %v924_v34, %v4860_v15  ;;  %v1336_v9 = vadd.f32 1.0, %v1304_v53 }
 0x11f   : > { %v1365_v8 = vmul.f32 %v1333_v59, %v4750_v21  ;;  %v1179_v0 = vmul.f32 %v4856_v1, %v1019_v44  ;;  %v1017_v17 = vmul.f32 %v985_v45, %v4851_v54  ;;  %v922_v29 = vadd.f32 -0.28449672, %v890_v26 }
 0x120   : > { %1399 = vst.msk [vmem:[#allocation2 + $0x28] sm:$0xff] %vm199_vm5, %v1367_v51  ;;  %v1302_v24 = vsel %vm1238_vm6, %v1206_v32, %v1270_v46  ;;  %v988_v21 = vadd.f32 0.2548296, %v956_v37  ;;  %v4934_v22 = vmul.f32 0.70710677, %v4766_v35  ;;  %v1368_v58 = vmul.f32 %v1336_v9, %v4757_v27 }
 0x121   : > { %1397 = vst.msk [vmem:[#allocation2 + $0x18] sm:$0xff] %vm199_vm5, %v1365_v8  ;;  %v1334_v34 = vadd.f32 1.0, %v1302_v24  ;;  %v1211_v40 = vsub.f32 1.0, %v1179_v0  ;;  %v1177_v1 = vmul.f32 %v4865_v39, %v1017_v17  ;;  %v954_v5 = vmul.f32 %v922_v29, %v4875_v60  ;;  %v4953_v13 = vpop.f32.mrb[28].mxu0 }
 0x122   : > { %v1020_v54 = vmul.f32 %v988_v21, %v4860_v15  ;;  %v703_v52 = vsub.f32 2.0, %v671_v56  ;;  %v541_v63 = vand.u32 2147483647, %v4934_v22  ;;  %1400 = vst.msk [vmem:[#allocation2 + $0x30] sm:$0xff] %vm199_vm5, %v1368_v58  ;;  %v4959_v45 = vmul.f32 0.70710677, %v4774_v43 }
 0x123   : > { %v1366_v57 = vmul.f32 %v1334_v34, %v4762_v31  ;;  %v1275_v2 = vsub.f32 0.0, %v1211_v40  ;;  %v1209_v41 = vsub.f32 1.0, %v1177_v1  ;;  %v986_v16 = vadd.f32 0.2548296, %v954_v5  ;;  %v4966_v17 = vpop.f32.mrb[29].mxu0 }
 0x124   : > { %v1180_v27 = vmul.f32 %v4870_v18, %v1020_v54  ;;  %v4946_v39 = vmul.f32 %v4894_v49, %v703_v52  ;;  %v573_v15 = vmul.f32 0.3275911, %v541_v63  ;;  %v7348_v31 = vsub.f32 0.0, %v4805_v25  ;;  %v4976_v1 = vpop.f32.mrb[30].mxu0 }
 0x125   : > { %1398 = vst.msk [vmem:[#allocation2 + $0x20] sm:$0xff] %vm199_vm5, %v1366_v57  ;;  %v1307_v6 = vsel %vm1243_vm7, %v1211_v40, %v1275_v2  ;;  %v1273_v28 = vsub.f32 0.0, %v1209_v41  ;;  %v1018_v18 = vmul.f32 %v986_v16, %v4875_v60  ;;  %v544_v60 = vand.u32 2147483647, %v4959_v45  ;;  %v4984_v2 = vpop.f32.mrb[31].mxu0 }
 0x126   : > { %v1087_v59 = vmul.f32 %v7348_v31, %v4805_v25  ;;  %v1339_v42 = vadd.f32 1.0, %v1307_v6  ;;  %v1212_v32 = vsub.f32 1.0, %v1180_v27  ;;  %v767_v49 = vmul.f32 1.0614054, %v4946_v39 }
 0x127   : > { %v1305_v51 = vsel %vm1241_vm8, %v1209_v41, %v1273_v28  ;;  %v605_v44 = vadd.f32 1.0, %v573_v15  ;;  %v1178_v25 = vmul.f32 %v4879_v62, %v1018_v18  ;;  %v1053_v0 = vsub.f32 0.0, %v541_v63 }
 0x128   : > { %v1371_v19 = vmul.f32 %v1339_v42, %v4781_v50  ;;  %v1337_v26 = vadd.f32 1.0, %v1305_v51  ;;  %v1276_v8 = vsub.f32 0.0, %v1212_v32  ;;  %v799_v53 = vadd.f32 -1.4531521, %v767_v49 }
 0x129   : > { %v1129_v46 = vmul.f32 1.442695, %v1087_v59  ;;  %4394 = vrcp.f32 %v605_v44  ;;  %v1210_v9 = vsub.f32 1.0, %v1178_v25  ;;  %v476_v50 = vmul.f32 0.5, %v4736_v11 }
 0x12a   : > { %1403 = vst.msk [vmem:[#allocation2 + $0x48] sm:$0xff] %vm199_vm5, %v1371_v19  ;;  %v1369_v37 = vmul.f32 %v1337_v26, %v4825_v55  ;;  %v1308_v23 = vsel %vm1244_vm9, %v1212_v32, %v1276_v8  ;;  %v831_v24 = vmul.f32 %v799_v53, %v4946_v39  ;;  %v576_v62 = vmul.f32 0.3275911, %v544_v60 }
 0x12b   : > { %v1340_v29 = vadd.f32 1.0, %v1308_v23  ;;  %v474_v21 = vmul.f32 0.5, %v4740_v14  ;;  %v1274_v56 = vsub.f32 0.0, %v1210_v9  ;;  %v4973_v58 = vmul.f32 0.70710677, %v4779_v48 }
 0x12c   : > { %1401 = vst.msk [vmem:[#allocation2 + $0x38] sm:$0xff] %vm199_vm5, %v1369_v37  ;;  %v863_v34 = vadd.f32 1.4214138, %v831_v24  ;;  %v608_v40 = vadd.f32 1.0, %v576_v62  ;;  %4396 = vpow2.f32 %v1129_v46  ;;  %v1085_v54 = vmul.f32 %v1053_v0, %v541_v63 }
 0x12d   : > { %v1372_v55 = vmul.f32 %v1340_v29, %v476_v50  ;;  %v1306_v11 = vsel %vm1242_vm10, %v1210_v9, %v1274_v56  ;;  %v542_v5 = vand.u32 2147483647, %v4973_v58  ;;  %v4982_v57 = vmul.f32 0.70710677, %v4789_v3 }
 0x12e   : > { %v1338_v52 = vadd.f32 1.0, %v1306_v11  ;;  %v895_v14 = vmul.f32 %v863_v34, %v4946_v39  ;;  %4398 = vrcp.f32 %v608_v40  ;;  %v1056_v38 = vsub.f32 0.0, %v544_v60 }
 0x12f   : > { %1404 = vst.msk [vmem:[#allocation2 + $0x50] sm:$0xff] %vm199_vm5, %v1372_v55  ;;  %v574_v41 = vmul.f32 0.3275911, %v542_v5  ;;  %v1054_v15 = vsub.f32 0.0, %v542_v5  ;;  %v547_v63 = vand.u32 2147483647, %v4982_v57 }
 0x130   : > { %v1370_v27 = vmul.f32 %v1338_v52, %v474_v21  ;;  %v927_v16 = vadd.f32 -0.28449672, %v895_v14  ;;  %v1125_v6 = vmul.f32 1.442695, %v1085_v54  ;;  %v4988_v31 = vmul.f32 0.70710677, %v4796_v12 }
 0x131   : > { %v606_v28 = vadd.f32 1.0, %v574_v41  ;;  %v4992_v42 = vmul.f32 0.5, %v4760_v30  ;;  %v579_v18 = vmul.f32 0.3275911, %v547_v63  ;;  %v1088_v51 = vmul.f32 %v1056_v38, %v544_v60 }
 0x132   : > { %1402 = vst.msk [vmem:[#allocation2 + $0x40] sm:$0xff] %vm199_vm5, %v1370_v27  ;;  %v959_v32 = vmul.f32 %v927_v16, %v4946_v39  ;;  %v545_v19 = vand.u32 2147483647, %v4988_v31  ;;  %v4997_v8 = vmul.f32 0.5, %v4766_v35  ;;  %v1086_v25 = vmul.f32 %v1054_v15, %v542_v5 }
 0x133   : > { %v4395_v59 = vpop.eup %4394  ;;  %4400 = vrcp.f32 %v606_v28  ;;  %v611_v53 = vadd.f32 1.0, %v579_v18  ;;  %v1059_v30 = vsub.f32 0.0, %v547_v63  ;;  %v5005_v60 = vmul.f32 0.70710677, %v4801_v20 }
 0x134   : > { %v669_v49 = vmul.f32 %v4395_v59, %v605_v44  ;;  %v991_v26 = vadd.f32 0.2548296, %v959_v32  ;;  %4402 = vpow2.f32 %v1125_v6  ;;  %v577_v37 = vmul.f32 0.3275911, %v545_v19 }
 0x135   : > { %v5002_v44 = vmul.f32 0.5, %v4774_v43  ;;  %4404 = vrcp.f32 %v611_v53  ;;  %v1131_v0 = vmul.f32 1.442695, %v1088_v51  ;;  %v5010_v50 = vmul.f32 0.5, %v4779_v48 }
 0x136   : > { %v701_v46 = vsub.f32 2.0, %v669_v49  ;;  %v1023_v23 = vmul.f32 %v991_v26, %v4946_v39  ;;  %v4397_v9 = vpop.eup %4396  ;;  %v609_v29 = vadd.f32 1.0, %v577_v37  ;;  %v1127_v21 = vmul.f32 1.442695, %v1086_v25 }
 0x137   : > { %v5013_v39 = vmul.f32 0.5, %v4789_v3  ;;  %v548_v43 = vand.u32 2147483647, %v5005_v60  ;;  %v1091_v34 = vmul.f32 %v1059_v30, %v547_v63  ;;  %v5018_v54 = vmul.f32 0.5, %v4796_v12 }
 0x138   : > { %v5007_v35 = vmul.f32 %v4395_v59, %v701_v46  ;;  %v4399_v24 = vpop.eup %4398  ;;  %v1183_v62 = vmul.f32 %v4397_v9, %v1023_v23  ;;  %4406 = vrcp.f32 %v609_v29  ;;  %v5021_v5 = vmul.f32 0.70710677, %v4811_v36 }
 0x139   : > { %v672_v55 = vmul.f32 %v4399_v24, %v608_v40  ;;  %v580_v48 = vmul.f32 0.3275911, %v548_v43  ;;  %4408 = vpow2.f32 %v1131_v0  ;;  %v1057_v3 = vsub.f32 0.0, %v545_v19 }
 0x13a   : > { %v765_v56 = vmul.f32 1.0614054, %v5007_v35  ;;  %v1215_v11 = vsub.f32 1.0, %v1183_v62  ;;  %4410 = vpow2.f32 %v1127_v21  ;;  %v546_v27 = vand.u32 2147483647, %v5021_v5 }
 0x13b   : > { %v704_v14 = vsub.f32 2.0, %v672_v55  ;;  %v612_v41 = vadd.f32 1.0, %v580_v48  ;;  %v1137_v12 = vmul.f32 1.442695, %v1091_v34  ;;  %v5028_v63 = vmul.f32 0.70710677, %v4831_v4 }
 0x13c   : > { %v797_v52 = vadd.f32 -1.4531521, %v765_v56  ;;  %v1279_v38 = vsub.f32 0.0, %v1215_v11  ;;  %v1060_v32 = vsub.f32 0.0, %v548_v43  ;;  %v1089_v25 = vmul.f32 %v1057_v3, %v545_v19 }
 0x13d   : > { %v4401_v40 = vpop.eup %4400  ;;  %v5025_v15 = vmul.f32 %v4399_v24, %v704_v14  ;;  %4412 = vrcp.f32 %v612_v41  ;;  %v578_v37 = vmul.f32 0.3275911, %v546_v27  ;;  %v1058_v23 = vsub.f32 0.0, %v546_v27 }
 0x13e   : > { %v829_v16 = vmul.f32 %v797_v52, %v5007_v35  ;;  %v1311_v6 = vsel %vm1247_vm11, %v1215_v11, %v1279_v38  ;;  %v670_v59 = vmul.f32 %v4401_v40, %v606_v28  ;;  %v4403_v18 = vpop.eup %4402  ;;  %v5034_v9 = vand.u32 2147483647, %v5028_v63 }
 0x13f   : > { %v1343_v49 = vadd.f32 1.0, %v1311_v6  ;;  %v768_v26 = vmul.f32 1.0614054, %v5025_v15  ;;  %v4405_v46 = vpop.eup %4404  ;;  %v1092_v21 = vmul.f32 %v1060_v32, %v548_v43  ;;  %v5040_v56 = vadd.f32 1.0, %v578_v37 }
 0x140   : > { %v861_v51 = vadd.f32 1.4214138, %v829_v16  ;;  %v702_v30 = vsub.f32 2.0, %v670_v59  ;;  %v675_v24 = vmul.f32 %v4405_v46, %v611_v53  ;;  %v583_v19 = vmul.f32 0.3275911, %v5034_v9 }
 0x141   : > { %v1375_v0 = vmul.f32 %v1343_v49, %v4992_v42  ;;  %v800_v28 = vadd.f32 -1.4531521, %v768_v26  ;;  %v1133_v52 = vmul.f32 1.442695, %v1089_v25  ;;  %4414 = vrcp.f32 %v5040_v56 }
 0x142   : > { %v893_v10 = vmul.f32 %v861_v51, %v5007_v35  ;;  %v5038_v62 = vmul.f32 %v4401_v40, %v702_v30  ;;  %v4407_v55 = vpop.eup %4406  ;;  %v707_v48 = vsub.f32 2.0, %v675_v24  ;;  %v1090_v53 = vmul.f32 %v1058_v23, %v546_v27 }
 0x143   : > { %1407 = vst.msk [vmem:[#allocation2 + $0x68] sm:$0xff] %vm199_vm5, %v1375_v0  ;;  %v832_v11 = vmul.f32 %v800_v28, %v5025_v15  ;;  %v673_v14 = vmul.f32 %v4407_v55, %v609_v29  ;;  %v4409_v3 = vpop.eup %4408  ;;  %v5050_v16 = vadd.f32 1.0, %v583_v19  ;;  %4416 = vpow2.f32 %v1137_v12 }
 0x144   : > { %v925_v34 = vadd.f32 -0.28449672, %v893_v10  ;;  %v766_v42 = vmul.f32 1.0614054, %v5038_v62  ;;  %v5048_v40 = vmul.f32 %v4405_v46, %v707_v48  ;;  %v5052_v6 = vpop.eup %4410  ;;  %v1139_v49 = vmul.f32 1.442695, %v1092_v21 }
 0x145   : > { %v864_v38 = vadd.f32 1.4214138, %v832_v11  ;;  %v705_v32 = vsub.f32 2.0, %v673_v14  ;;  %4418 = vrcp.f32 %v5050_v16  ;;  %vm1245_vm12 = vcmp.ge.f32.partialorder %v4934_v22, 0.0 }
 0x146   : > { %v957_v43 = vmul.f32 %v925_v34, %v5007_v35  ;;  %v798_v59 = vadd.f32 -1.4531521, %v766_v42  ;;  %v771_v26 = vmul.f32 1.0614054, %v5048_v40  ;;  %4420 = vpow2.f32 %v1133_v52 }
 0x147   : > { %v896_v29 = vmul.f32 %v864_v38, %v5025_v15  ;;  %v4413_v27 = vpop.eup %4412  ;;  %v5059_v46 = vmul.f32 %v4407_v55, %v705_v32  ;;  %v1135_v30 = vmul.f32 1.442695, %v1090_v53  ;;  %4422 = vpow2.f32 %v1139_v49 }
 0x148   : > { %v989_v51 = vadd.f32 0.2548296, %v957_v43  ;;  %v830_v25 = vmul.f32 %v798_v59, %v5038_v62  ;;  %v803_v23 = vadd.f32 -1.4531521, %v771_v26  ;;  %v676_v0 = vmul.f32 %v4413_v27, %v612_v41 }
 0x149   : > { %v928_v37 = vadd.f32 -0.28449672, %v896_v29  ;;  %v769_v28 = vmul.f32 1.0614054, %v5059_v46  ;;  %v1063_v24 = vsub.f32 0.0, %v5034_v9  ;;  %4424 = vpow2.f32 %v1135_v30 }
 0x14a   : > { %v1021_v12 = vmul.f32 %v989_v51, %v5007_v35  ;;  %v862_v10 = vadd.f32 1.4214138, %v830_v25  ;;  %v835_v34 = vmul.f32 %v803_v23, %v5048_v40  ;;  %v708_v55 = vsub.f32 2.0, %v676_v0 }
 0x14b   : > { %v960_v19 = vmul.f32 %v928_v37, %v5025_v15  ;;  %v801_v48 = vadd.f32 -1.4531521, %v769_v28  ;;  %v5068_v35 = vmul.f32 0.70710677, %v4836_v7  ;;  %v4415_v53 = vpop.eup %4414  ;;  %vm1248_vm13 = vcmp.ge.f32.partialorder %v4959_v45, 0.0 }
 0x14c   : > { %v1181_v21 = vmul.f32 %v4403_v18, %v1021_v12  ;;  %v894_v11 = vmul.f32 %v862_v10, %v5038_v62  ;;  %v867_v42 = vadd.f32 1.4214138, %v835_v34  ;;  %v5070_v14 = vmul.f32 %v4413_v27, %v708_v55 }
 0x14d   : > { %v992_v52 = vadd.f32 0.2548296, %v960_v19  ;;  %v833_v43 = vmul.f32 %v801_v48, %v5059_v46  ;;  %v1095_v38 = vmul.f32 %v1063_v24, %v5034_v9  ;;  %v5076_v59 = vand.u32 2147483647, %v5068_v35  ;;  %v4417_v26 = vpop.eup %4416 }
 0x14e   : > { %v1213_v41 = vsub.f32 1.0, %v1181_v21  ;;  %v926_v18 = vadd.f32 -0.28449672, %v894_v11  ;;  %v899_v51 = vmul.f32 %v867_v42, %v5048_v40  ;;  %v772_v29 = vmul.f32 1.0614054, %v5070_v14 }
 0x14f   : > { %v1024_v49 = vmul.f32 %v992_v52, %v5025_v15  ;;  %v865_v25 = vadd.f32 1.4214138, %v833_v43  ;;  %v674_v30 = vmul.f32 %v4415_v53, %v5040_v56  ;;  %v581_v12 = vmul.f32 0.3275911, %v5076_v59  ;;  %v4419_v37 = vpop.eup %4418 }
 0x150   : > { %v1277_v32 = vsub.f32 0.0, %v1213_v41  ;;  %v958_v27 = vmul.f32 %v926_v18, %v5038_v62  ;;  %v931_v0 = vadd.f32 -0.28449672, %v899_v51  ;;  %v804_v10 = vadd.f32 -1.4531521, %v772_v29  ;;  %v4421_v15 = vpop.eup %4420 }
 0x151   : > { %v1184_v23 = vmul.f32 %v4409_v3, %v1024_v49  ;;  %v897_v21 = vmul.f32 %v865_v25, %v5059_v46  ;;  %v706_v19 = vsub.f32 2.0, %v674_v30  ;;  %vm1246_vm14 = vcmp.ge.f32.partialorder %v4973_v58, 0.0  ;;  %v4423_v22 = vpop.eup %4422 }
 0x152   : > { %v1309_v9 = vsel %vm1245_vm12, %v1213_v41, %v1277_v32  ;;  %v990_v24 = vadd.f32 0.2548296, %v958_v27  ;;  %v963_v56 = vmul.f32 %v931_v0, %v5048_v40  ;;  %v836_v55 = vmul.f32 %v804_v10, %v5070_v14 }
 0x153   : > { %v1341_v28 = vadd.f32 1.0, %v1309_v9  ;;  %v1216_v34 = vsub.f32 1.0, %v1184_v23  ;;  %v679_v11 = vmul.f32 %v4419_v37, %v5050_v16  ;;  %v929_v41 = vadd.f32 -0.28449672, %v897_v21  ;;  %v5095_v49 = vpop.eup %4424 }
 0x154   : > { %v1022_v48 = vmul.f32 %v990_v24, %v5038_v62  ;;  %v5093_v52 = vmul.f32 %v4415_v53, %v706_v19  ;;  %v995_v18 = vadd.f32 0.2548296, %v963_v56  ;;  %v868_v43 = vadd.f32 1.4214138, %v836_v55 }
 0x155   : > { %v1373_v3 = vmul.f32 %v1341_v28, %v4997_v8  ;;  %v1280_v42 = vsub.f32 0.0, %v1216_v34  ;;  %v711_v32 = vsub.f32 2.0, %v679_v11  ;;  %v961_v16 = vmul.f32 %v929_v41, %v5059_v46 }
 0x156   : > { %v1182_v51 = vmul.f32 %v5052_v6, %v1022_v48  ;;  %v770_v29 = vmul.f32 1.0614054, %v5093_v52  ;;  %v613_v8 = vadd.f32 1.0, %v581_v12  ;;  %v1027_v53 = vmul.f32 %v995_v18, %v5048_v40 }
 0x157   : > { %1405 = vst.msk [vmem:[#allocation2 + $0x58] sm:$0xff] %vm199_vm5, %v1373_v3  ;;  %v1312_v62 = vsel %vm1248_vm13, %v1216_v34, %v1280_v42  ;;  %v900_v27 = vmul.f32 %v868_v43, %v5070_v14  ;;  %v5105_v25 = vmul.f32 %v4419_v37, %v711_v32  ;;  %v993_v23 = vadd.f32 0.2548296, %v961_v16 }
 0x158   : > { %v1344_v30 = vadd.f32 1.0, %v1312_v62  ;;  %v1214_v9 = vsub.f32 1.0, %v1182_v51  ;;  %v802_v0 = vadd.f32 -1.4531521, %v770_v29  ;;  %v1187_v10 = vmul.f32 %v4417_v26, %v1027_v53 }
 0x159   : > { %v932_v6 = vadd.f32 -0.28449672, %v900_v27  ;;  %v775_v28 = vmul.f32 1.0614054, %v5105_v25  ;;  %4426 = vrcp.f32 %v613_v8  ;;  %v1025_v45 = vmul.f32 %v993_v23, %v5059_v46 }
 0x15a   : > { %v1376_v12 = vmul.f32 %v1344_v30, %v5002_v44  ;;  %v1278_v24 = vsub.f32 0.0, %v1214_v9  ;;  %v834_v40 = vmul.f32 %v802_v0, %v5093_v52  ;;  %v1219_v21 = vsub.f32 1.0, %v1187_v10 }
 0x15b   : > { %v964_v37 = vmul.f32 %v932_v6, %v5070_v14  ;;  %v807_v19 = vadd.f32 -1.4531521, %v775_v28  ;;  %v1145_v34 = vmul.f32 1.442695, %v1095_v38  ;;  %v1185_v56 = vmul.f32 %v4421_v15, %v1025_v45 }
 0x15c   : > { %1408 = vst.msk [vmem:[#allocation2 + $0x70] sm:$0xff] %vm199_vm5, %v1376_v12  ;;  %v1310_v26 = vsel %vm1246_vm14, %v1214_v9, %v1278_v24  ;;  %v866_v55 = vadd.f32 1.4214138, %v834_v40  ;;  %v5116_v11 = vmul.f32 0.70710677, %v4842_v33  ;;  %v1283_v3 = vsub.f32 0.0, %v1219_v21 }
 0x15d   : > { %v1342_v44 = vadd.f32 1.0, %v1310_v26  ;;  %v996_v46 = vadd.f32 0.2548296, %v964_v37  ;;  %v839_v48 = vmul.f32 %v807_v19, %v5105_v25  ;;  %vm1251_vm15 = vcmp.ge.f32.partialorder %v4982_v57, 0.0  ;;  %v7349_v37 = vld [vmem:[#allocation3_spill] sm:$0xff] }
 0x15e   : > { %v1217_v41 = vsub.f32 1.0, %v1185_v56  ;;  %v898_v38 = vmul.f32 %v866_v55, %v5093_v52  ;;  %v5122_v42 = vand.u32 2147483647, %v5116_v11  ;;  %v1315_v15 = vsel %vm1251_vm15, %v1219_v21, %v1283_v3  ;;  %v7350_v56 = vld [vmem:[#allocation4_spill] sm:$0xff] }
 0x15f   : > { %v1374_v58 = vmul.f32 %v1342_v44, %v5010_v50  ;;  %v1028_v18 = vmul.f32 %v996_v46, %v5070_v14  ;;  %v871_v43 = vadd.f32 1.4214138, %v839_v48  ;;  %v1347_v32 = vadd.f32 1.0, %v1315_v15 }
 0x160   : > { %v1281_v51 = vsub.f32 0.0, %v1217_v41  ;;  %v930_v16 = vadd.f32 -0.28449672, %v898_v38  ;;  %4428 = vpow2.f32 %v1145_v34  ;;  %vm1249_vm0 = vcmp.ge.f32.partialorder %v4988_v31, 0.0 }
 0x161   : > { %1406 = vst.msk [vmem:[#allocation2 + $0x60] sm:$0xff] %vm199_vm5, %v1374_v58  ;;  %v1188_v57 = vmul.f32 %v4423_v22, %v1028_v18  ;;  %v903_v29 = vmul.f32 %v871_v43, %v5105_v25  ;;  %v584_v62 = vmul.f32 0.3275911, %v5122_v42  ;;  %v1379_v53 = vmul.f32 %v1347_v32, %v5013_v39  ;;  %v7351_v43 = vld [vmem:[#allocation5_spill] sm:$0xff] }
 0x162   : > { %v1313_v50 = vsel %vm1249_vm0, %v1217_v41, %v1281_v51  ;;  %v962_v27 = vmul.f32 %v930_v16, %v5093_v52  ;;  %v1061_v14 = vsub.f32 0.0, %v5076_v59  ;;  %vm1252_vm2 = vcmp.ge.f32.partialorder %v5005_v60, 0.0 }
 0x163   : > { %v4427_v30 = vpop.eup %4426  ;;  %v1345_v9 = vadd.f32 1.0, %v1313_v50  ;;  %v1220_v23 = vsub.f32 1.0, %v1188_v57  ;;  %v935_v0 = vadd.f32 -0.28449672, %v903_v29  ;;  %v616_v10 = vadd.f32 1.0, %v584_v62  ;;  %1411 = vst.msk [vmem:[#allocation2 + $0x88] sm:$0xff] %vm199_vm5, %v1379_v53 }
 0x164   : > { %v994_v31 = vadd.f32 0.2548296, %v962_v27  ;;  %v677_v22 = vmul.f32 %v4427_v30, %v613_v8  ;;  %v1093_v45 = vmul.f32 %v1061_v14, %v5076_v59  ;;  %v5141_v19 = vmul.f32 0.70710677, %v7349_v37 }
 0x165   : > { %v1377_v6 = vmul.f32 %v1345_v9, %v5018_v54  ;;  %v1284_v28 = vsub.f32 0.0, %v1220_v23  ;;  %v967_v12 = vmul.f32 %v935_v0, %v5105_v25  ;;  %4430 = vrcp.f32 %v616_v10 }
 0x166   : > { %v1026_v39 = vmul.f32 %v994_v31, %v5093_v52  ;;  %v709_v24 = vsub.f32 2.0, %v677_v22  ;;  %v484_v54 = vmul.f32 0.5, %v4801_v20  ;;  %v482_v60 = vmul.f32 0.5, %v4811_v36  ;;  %v4359_v36 = vld [vmem:[%s7328_s3] sm:$0xff]  }
 0x167   : > { %1409 = vst.msk [vmem:[#allocation2 + $0x78] sm:$0xff] %vm199_vm5, %v1377_v6  ;;  %v1316_v40 = vsel %vm1252_vm2, %v1220_v23, %v1284_v28  ;;  %v999_v21 = vadd.f32 0.2548296, %v967_v12  ;;  %v550_v59 = vand.u32 2147483647, %v5141_v19  ;;  %v487_v41 = vmul.f32 0.5, %v4831_v4  ;;  %4315 = vmatprep.subr.bf16.mxu1 %v4359_v36 }
 0x168   : > { %v1348_v8 = vadd.f32 1.0, %v1316_v40  ;;  %v1186_v34 = vmul.f32 %v5095_v49, %v1026_v39  ;;  %v5145_v26 = vmul.f32 %v4427_v30, %v709_v24  ;;  %v5151_v55 = vmul.f32 0.70710677, %v7350_v56  ;;  %4316 = vmatpush3.bf16.msra.mxu1 %v4359_v36 }
 0x169   : > { %v1031_v52 = vmul.f32 %v999_v21, %v5105_v25  ;;  %v1141_v20 = vmul.f32 1.442695, %v1093_v45  ;;  %v582_v38 = vmul.f32 0.3275911, %v550_v59  ;;  %v1064_v18 = vsub.f32 0.0, %v5122_v42 }
 0x16a   : > { %v4429_v44 = vpop.eup %4428  ;;  %v1380_v3 = vmul.f32 %v1348_v8, %v484_v54  ;;  %v1218_v46 = vsub.f32 1.0, %v1186_v34  ;;  %v773_v48 = vmul.f32 1.0614054, %v5145_v26  ;;  %v5156_v58 = vand.u32 2147483647, %v5151_v55  ;;  %v7353_v34 = vld [vmem:[#allocation7_spill] sm:$0xff] }
 0x16b   : > { %v1191_v49 = vmul.f32 %v4429_v44, %v1031_v52  ;;  %v5164_v32 = vmul.f32 0.70710677, %v7351_v43  ;;  %vm1250_vm3 = vcmp.ge.f32.partialorder %v5021_v5, 0.0  ;;  %v614_v51 = vadd.f32 1.0, %v582_v38 }
 0x16c   : > { %1412 = vst.msk [vmem:[#allocation2 + $0x90] sm:$0xff] %vm199_vm5, %v1380_v3  ;;  %v1282_v25 = vsub.f32 0.0, %v1218_v46  ;;  %v805_v15 = vadd.f32 -1.4531521, %v773_v48  ;;  %v587_v16 = vmul.f32 0.3275911, %v5156_v58  ;;  %4432 = vpow2.f32 %v1141_v20 }
 0x16d   : > { %v1223_v4 = vsub.f32 1.0, %v1191_v49  ;;  %v553_v62 = vand.u32 2147483647, %v5164_v32  ;;  %vm1255_vm4 = vcmp.ge.f32.partialorder %v5028_v63, 0.0  ;;  %4434 = vrcp.f32 %v614_v51 }
 0x16e   : > { %v1314_v57 = vsel %vm1250_vm3, %v1218_v46, %v1282_v25  ;;  %v837_v29 = vmul.f32 %v805_v15, %v5145_v26  ;;  %v1096_v30 = vmul.f32 %v1064_v18, %v5122_v42  ;;  %v619_v9 = vadd.f32 1.0, %v587_v16  ;;  %v7352_v42 = vld [vmem:[#allocation6_spill] sm:$0xff] }
 0x16f   : > { %v4431_v53 = vpop.eup %4430  ;;  %v1346_v50 = vadd.f32 1.0, %v1314_v57  ;;  %v1287_v27 = vsub.f32 0.0, %v1223_v4  ;;  %v1062_v31 = vsub.f32 0.0, %v550_v59  ;;  %v585_v22 = vmul.f32 0.3275911, %v553_v62 }
 0x170   : > { %v869_v14 = vadd.f32 1.4214138, %v837_v29  ;;  %v680_v5 = vmul.f32 %v4431_v53, %v616_v10  ;;  %4436 = vrcp.f32 %v619_v9  ;;  %v1147_v10 = vmul.f32 1.442695, %v1096_v30  ;;  %v7354_v29 = vld [vmem:[#allocation8_spill] sm:$0xff] }
 0x171   : > { %v1378_v23 = vmul.f32 %v1346_v50, %v482_v60  ;;  %v1319_v0 = vsel %vm1255_vm4, %v1223_v4, %v1287_v27  ;;  %v617_v39 = vadd.f32 1.0, %v585_v22  ;;  %v1094_v40 = vmul.f32 %v1062_v31, %v550_v59 }
 0x172   : > { %v1351_v6 = vadd.f32 1.0, %v1319_v0  ;;  %v901_v28 = vmul.f32 %v869_v14, %v5145_v26  ;;  %v712_v12 = vsub.f32 2.0, %v680_v5  ;;  %v5177_v21 = vmul.f32 0.70710677, %v7352_v42 }
 0x173   : > { %1410 = vst.msk [vmem:[#allocation2 + $0x80] sm:$0xff] %vm199_vm5, %v1378_v23  ;;  %4438 = vrcp.f32 %v617_v39  ;;  %v5183_v60 = vmul.f32 0.70710677, %v7353_v34  ;;  %v485_v52 = vmul.f32 0.5, %v4836_v7  ;;  %v5187_v44 = vmul.f32 0.5, %v4842_v33 }
 0x174   : > { %v1383_v63 = vmul.f32 %v1351_v6, %v487_v41  ;;  %v933_v24 = vadd.f32 -0.28449672, %v901_v28  ;;  %v5174_v45 = vmul.f32 %v4431_v53, %v712_v12  ;;  %v1067_v59 = vsub.f32 0.0, %v5156_v58 }
 0x175   : > { %v556_v3 = vand.u32 2147483647, %v5177_v21  ;;  %v554_v41 = vand.u32 2147483647, %v5183_v60  ;;  %vm1253_vm6 = vcmp.ge.f32.partialorder %v5068_v35, 0.0  ;;  %4440 = vpow2.f32 %v1147_v10 }
 0x176   : > { %1415 = vst.msk [vmem:[#allocation2 + $0xa8] sm:$0xff] %vm199_vm5, %v1383_v63  ;;  %v965_v54 = vmul.f32 %v933_v24, %v5145_v26  ;;  %v776_v8 = vmul.f32 1.0614054, %v5174_v45  ;;  %v4433_v46 = vpop.eup %4432  ;;  %v1143_v38 = vmul.f32 1.442695, %v1094_v40  ;;  %v1065_v36 = vsub.f32 0.0, %v553_v62 }
 0x177   : > { %v4435_v49 = vpop.eup %4434  ;;  %v588_v25 = vmul.f32 0.3275911, %v556_v3  ;;  %v586_v18 = vmul.f32 0.3275911, %v554_v41  ;;  %v1099_v4 = vmul.f32 %v1067_v59, %v5156_v58  ;;  %v1068_v57 = vsub.f32 0.0, %v556_v3 }
 0x178   : > { %v997_v48 = vadd.f32 0.2548296, %v965_v54  ;;  %v808_v20 = vadd.f32 -1.4531521, %v776_v8  ;;  %v678_v15 = vmul.f32 %v4435_v49, %v614_v51  ;;  %v5197_v53 = vmul.f32 0.70710677, %v7354_v29 }
 0x179   : > { %v620_v16 = vadd.f32 1.0, %v588_v25  ;;  %v618_v30 = vadd.f32 1.0, %v586_v18  ;;  %v5200_v23 = vmul.f32 0.5, %v7349_v37  ;;  %v1097_v0 = vmul.f32 %v1065_v36, %v553_v62 }
 0x17a   : > { %v1029_v7 = vmul.f32 %v997_v48, %v5145_v26  ;;  %v840_v33 = vmul.f32 %v808_v20, %v5174_v45  ;;  %v4437_v50 = vpop.eup %4436  ;;  %v710_v5 = vsub.f32 2.0, %v678_v15  ;;  %v1153_v6 = vmul.f32 1.442695, %v1099_v4 }
 0x17b   : > { %v683_v26 = vmul.f32 %v4437_v50, %v619_v9  ;;  %4442 = vrcp.f32 %v620_v16  ;;  %v5206_v28 = vand.u32 2147483647, %v5197_v53  ;;  %v1100_v9 = vmul.f32 %v1068_v57, %v556_v3 }
 0x17c   : > { %v1189_v27 = vmul.f32 %v4433_v46, %v1029_v7  ;;  %v872_v14 = vadd.f32 1.4214138, %v840_v33  ;;  %v5203_v58 = vmul.f32 %v4435_v49, %v710_v5  ;;  %4444 = vrcp.f32 %v618_v30 }
 0x17d   : > { %4446 = vpow2.f32 %v1143_v38  ;;  %v715_v22 = vsub.f32 2.0, %v683_v26  ;;  %v4439_v12 = vpop.eup %4438  ;;  %v1149_v40 = vmul.f32 1.442695, %v1097_v0  ;;  %v591_v54 = vmul.f32 0.3275911, %v5206_v28 }
 0x17e   : > { %v1221_v51 = vsub.f32 1.0, %v1189_v27  ;;  %v904_v31 = vmul.f32 %v872_v14, %v5174_v45  ;;  %v774_v37 = vmul.f32 1.0614054, %v5203_v58  ;;  %v681_v10 = vmul.f32 %v4439_v12, %v617_v39 }
 0x17f   : > { %v5209_v62 = vmul.f32 %v4437_v50, %v715_v22  ;;  %v1066_v48 = vsub.f32 0.0, %v554_v41  ;;  %v4441_v20 = vpop.eup %4440  ;;  %v623_v25 = vadd.f32 1.0, %v591_v54  ;;  %4448 = vpow2.f32 %v1153_v6  ;;  %v7355_v50 = vld [vmem:[#allocation9_spill] sm:$0xff] }
 0x180   : > { %v1285_v63 = vsub.f32 0.0, %v1221_v51  ;;  %v936_v24 = vadd.f32 -0.28449672, %v904_v31  ;;  %v806_v46 = vadd.f32 -1.4531521, %v774_v37  ;;  %v713_v36 = vsub.f32 2.0, %v681_v10 }
 0x181   : > { %v779_v38 = vmul.f32 1.0614054, %v5209_v62  ;;  %v1155_v39 = vmul.f32 1.442695, %v1100_v9  ;;  %vm1256_vm7 = vcmp.ge.f32.partialorder %v5116_v11, 0.0  ;;  %4450 = vrcp.f32 %v623_v25 }
 0x182   : > { %v1317_v8 = vsel %vm1253_vm6, %v1221_v51, %v1285_v63  ;;  %v968_v59 = vmul.f32 %v936_v24, %v5174_v45  ;;  %v838_v7 = vmul.f32 %v806_v46, %v5203_v58  ;;  %v5218_v15 = vmul.f32 %v4439_v12, %v713_v36 }
 0x183   : > { %v1349_v49 = vadd.f32 1.0, %v1317_v8  ;;  %v811_v35 = vadd.f32 -1.4531521, %v779_v38  ;;  %v1098_v57 = vmul.f32 %v1066_v48, %v554_v41  ;;  %v5222_v27 = vmul.f32 0.70710677, %v7355_v50 }
 0x184   : > { %v1000_v3 = vadd.f32 0.2548296, %v968_v59  ;;  %v870_v4 = vadd.f32 1.4214138, %v838_v7  ;;  %v5226_v5 = vmul.f32 0.5, %v7350_v56  ;;  %4452 = vpow2.f32 %v1149_v40 }
 0x185   : > { %v1381_v33 = vmul.f32 %v1349_v49, %v485_v52  ;;  %v4443_v14 = vpop.eup %4442  ;;  %v843_v52 = vmul.f32 %v811_v35, %v5209_v62  ;;  %v777_v26 = vmul.f32 1.0614054, %v5218_v15  ;;  %4454 = vpow2.f32 %v1155_v39 }
 0x186   : > { %v1032_v18 = vmul.f32 %v1000_v3, %v5174_v45  ;;  %v4445_v0 = vpop.eup %4444  ;;  %v902_v45 = vmul.f32 %v870_v4, %v5203_v58  ;;  %v684_v31 = vmul.f32 %v4443_v14, %v620_v16  ;;  %v5232_v63 = vand.u32 2147483647, %v5222_v27 }
 0x187   : > { %1413 = vst.msk [vmem:[#allocation2 + $0x98] sm:$0xff] %vm199_vm5, %v1381_v33  ;;  %v4447_v41 = vpop.eup %4446  ;;  %v875_v22 = vadd.f32 1.4214138, %v843_v52  ;;  %v809_v6 = vadd.f32 -1.4531521, %v777_v26  ;;  %v682_v12 = vmul.f32 %v4445_v0, %v618_v30  ;;  %v1071_v30 = vsub.f32 0.0, %v5206_v28 }
 0x188   : > { %v1192_v51 = vmul.f32 %v4441_v20, %v1032_v18  ;;  %v934_v24 = vadd.f32 -0.28449672, %v902_v45  ;;  %v716_v37 = vsub.f32 2.0, %v684_v31  ;;  %v1151_v9 = vmul.f32 1.442695, %v1098_v57 }
 0x189   : > { %v907_v10 = vmul.f32 %v875_v22, %v5209_v62  ;;  %v841_v40 = vmul.f32 %v809_v6, %v5218_v15  ;;  %v714_v54 = vsub.f32 2.0, %v682_v12  ;;  %v589_v8 = vmul.f32 0.3275911, %v5232_v63  ;;  %v4449_v36 = vpop.eup %4448 }
 0x18a   : > { %v1224_v56 = vsub.f32 1.0, %v1192_v51  ;;  %v966_v59 = vmul.f32 %v934_v24, %v5203_v58  ;;  %v5238_v46 = vmul.f32 %v4443_v14, %v716_v37  ;;  %v5249_v33 = vmul.f32 0.70710677, %v4911_v47 }
 0x18b   : > { %v939_v48 = vadd.f32 -0.28449672, %v907_v10  ;;  %v873_v20 = vadd.f32 1.4214138, %v841_v40  ;;  %v5241_v49 = vmul.f32 %v4445_v0, %v714_v54  ;;  %v5243_v38 = vadd.f32 1.0, %v589_v8  ;;  %v4451_v35 = vpop.eup %4450 }
 0x18c   : > { %v1288_v16 = vsub.f32 0.0, %v1224_v56  ;;  %v998_v7 = vadd.f32 0.2548296, %v966_v59  ;;  %v780_v39 = vmul.f32 1.0614054, %v5238_v46  ;;  %vm1254_vm8 = vcmp.ge.f32.partialorder %v5141_v19, 0.0 }
 0x18d   : > { %v971_v4 = vmul.f32 %v939_v48, %v5209_v62  ;;  %v905_v57 = vmul.f32 %v873_v20, %v5218_v15  ;;  %v778_v14 = vmul.f32 1.0614054, %v5241_v49  ;;  %v687_v26 = vmul.f32 %v4451_v35, %v623_v25 }
 0x18e   : > { %v1320_v3 = vsel %vm1256_vm7, %v1224_v56, %v1288_v16  ;;  %v1030_v52 = vmul.f32 %v998_v7, %v5203_v58  ;;  %v812_v11 = vadd.f32 -1.4531521, %v780_v39  ;;  %4456 = vrcp.f32 %v5243_v38  ;;  %v4453_v0 = vpop.eup %4452 }
 0x18f   : > { %v1352_v18 = vadd.f32 1.0, %v1320_v3  ;;  %v1003_v45 = vadd.f32 0.2548296, %v971_v4  ;;  %v937_v31 = vadd.f32 -0.28449672, %v905_v57  ;;  %v5258_v6 = vpop.eup %4454  ;;  %vm1259_vm9 = vcmp.ge.f32.partialorder %v5151_v55, 0.0 }
 0x190   : > { %v810_v22 = vadd.f32 -1.4531521, %v778_v14  ;;  %v1190_v12 = vmul.f32 %v4447_v41, %v1030_v52  ;;  %v844_v56 = vmul.f32 %v812_v11, %v5238_v46  ;;  %v719_v24 = vsub.f32 2.0, %v687_v26 }
 0x191   : > { %v1384_v51 = vmul.f32 %v1352_v18, %v5187_v44  ;;  %v1103_v58 = vmul.f32 %v1071_v30, %v5206_v28  ;;  %v1035_v25 = vmul.f32 %v1003_v45, %v5209_v62  ;;  %v969_v37 = vmul.f32 %v937_v31, %v5218_v15 }
 0x192   : > { %v842_v44 = vmul.f32 %v810_v22, %v5241_v49  ;;  %v5268_v10 = vand.u32 2147483647, %v5249_v33  ;;  %v1222_v40 = vsub.f32 1.0, %v1190_v12  ;;  %v876_v41 = vadd.f32 1.4214138, %v844_v56 }
 0x193   : > { %1416 = vst.msk [vmem:[#allocation2 + $0xb0] sm:$0xff] %vm199_vm5, %v1384_v51  ;;  %4458 = vpow2.f32 %v1151_v9  ;;  %v5270_v54 = vmul.f32 %v4451_v35, %v719_v24  ;;  %v1195_v8 = vmul.f32 %v4449_v36, %v1035_v25  ;;  %v1001_v16 = vadd.f32 0.2548296, %v969_v37 }
 0x194   : > { %v874_v59 = vadd.f32 1.4214138, %v842_v44  ;;  %v592_v28 = vmul.f32 0.3275911, %v5268_v10  ;;  %v1286_v30 = vsub.f32 0.0, %v1222_v40  ;;  %v908_v62 = vmul.f32 %v876_v41, %v5238_v46 }
 0x195   : > { %v783_v48 = vmul.f32 1.0614054, %v5270_v54  ;;  %v1161_v20 = vmul.f32 1.442695, %v1103_v58  ;;  %v1227_v3 = vsub.f32 1.0, %v1195_v8  ;;  %v1033_v7 = vmul.f32 %v1001_v16, %v5218_v15 }
 0x196   : > { %v906_v39 = vmul.f32 %v874_v59, %v5241_v49  ;;  %v624_v18 = vadd.f32 1.0, %v592_v28  ;;  %v1318_v9 = vsel %vm1254_vm8, %v1222_v40, %v1286_v30  ;;  %v940_v36 = vadd.f32 -0.28449672, %v908_v62 }
 0x197   : > { %v815_v35 = vadd.f32 -1.4531521, %v783_v48  ;;  %v1069_v4 = vsub.f32 0.0, %v5232_v63  ;;  %v1350_v57 = vadd.f32 1.0, %v1318_v9  ;;  %v1291_v14 = vsub.f32 0.0, %v1227_v3 }
 0x198   : > { %v1193_v52 = vmul.f32 %v4453_v0, %v1033_v7  ;;  %v938_v11 = vadd.f32 -0.28449672, %v906_v39  ;;  %v4457_v26 = vpop.eup %4456  ;;  %vm1257_vm10 = vcmp.ge.f32.partialorder %v5164_v32, 0.0  ;;  %v972_v51 = vmul.f32 %v940_v36, %v5238_v46 }
 0x199   : > { %v847_v15 = vmul.f32 %v815_v35, %v5270_v54  ;;  %4460 = vrcp.f32 %v624_v18  ;;  %v1382_v45 = vmul.f32 %v1350_v57, %v5200_v23  ;;  %v1323_v19 = vsel %vm1259_vm9, %v1227_v3, %v1291_v14 }
 0x19a   : > { %v1225_v31 = vsub.f32 1.0, %v1193_v52  ;;  %v970_v22 = vmul.f32 %v938_v11, %v5241_v49  ;;  %v1355_v12 = vadd.f32 1.0, %v1323_v19  ;;  %v1004_v56 = vadd.f32 0.2548296, %v972_v51 }
 0x19b   : > { %v879_v0 = vadd.f32 1.4214138, %v847_v15  ;;  %v685_v24 = vmul.f32 %v4457_v26, %v5243_v38  ;;  %1414 = vst.msk [vmem:[#allocation2 + $0xa0] sm:$0xff] %vm199_vm5, %v1382_v45  ;;  %4462 = vpow2.f32 %v1161_v20  ;;  %v1101_v37 = vmul.f32 %v1069_v4, %v5232_v63 }
 0x19c   : > { %v1289_v58 = vsub.f32 0.0, %v1225_v31  ;;  %v1002_v25 = vadd.f32 0.2548296, %v970_v22  ;;  %v1387_v23 = vmul.f32 %v1355_v12, %v5226_v5  ;;  %v1036_v55 = vmul.f32 %v1004_v56, %v5238_v46 }
 0x19d   : > { %v4459_v44 = vpop.eup %4458  ;;  %v911_v40 = vmul.f32 %v879_v0, %v5270_v54  ;;  %v717_v41 = vsub.f32 2.0, %v685_v24  ;;  %v489_v8 = vmul.f32 0.5, %v7351_v43  ;;  %v5298_v59 = vmul.f32 0.70710677, %v4916_v61 }
 0x19e   : > { %v1321_v38 = vsel %vm1257_vm10, %v1225_v31, %v1289_v58  ;;  %v1034_v16 = vmul.f32 %v1002_v25, %v5241_v49  ;;  %1419 = vst.msk [vmem:[#allocation2 + $0xc8] sm:$0xff] %vm199_vm5, %v1387_v23  ;;  %v1196_v5 = vmul.f32 %v5258_v6, %v1036_v55  ;;  %v492_v30 = vmul.f32 0.5, %v7352_v42 }
 0x19f   : > { %v1353_v63 = vadd.f32 1.0, %v1321_v38  ;;  %v943_v28 = vadd.f32 -0.28449672, %v911_v40  ;;  %v5302_v46 = vmul.f32 %v4457_v26, %v717_v41  ;;  %v1157_v43 = vmul.f32 1.442695, %v1101_v37 }
 0x1a0   : > { %v1194_v62 = vmul.f32 %v4459_v44, %v1034_v16  ;;  %v5306_v32 = vand.u32 2147483647, %v5298_v59  ;;  %v1228_v49 = vsub.f32 1.0, %v1196_v5  ;;  %vm1260_vm11 = vcmp.ge.f32.partialorder %v5177_v21, 0.0 }
 0x1a1   : > { %v1385_v48 = vmul.f32 %v1353_v63, %v489_v8  ;;  %v975_v20 = vmul.f32 %v943_v28, %v5270_v54  ;;  %v781_v3 = vmul.f32 1.0614054, %v5302_v46  ;;  %v5313_v39 = vmul.f32 0.70710677, %v4953_v13 }
 0x1a2   : > { %v1226_v7 = vsub.f32 1.0, %v1194_v62  ;;  %v590_v6 = vmul.f32 0.3275911, %v5306_v32  ;;  %v1292_v9 = vsub.f32 0.0, %v1228_v49  ;;  %vm1258_vm12 = vcmp.ge.f32.partialorder %v5183_v60, 0.0 }
 0x1a3   : > { %v4461_v42 = vpop.eup %4460  ;;  %1417 = vst.msk [vmem:[#allocation2 + $0xb8] sm:$0xff] %vm199_vm5, %v1385_v48  ;;  %v1007_v36 = vadd.f32 0.2548296, %v975_v20  ;;  %v813_v35 = vadd.f32 -1.4531521, %v781_v3  ;;  %v1072_v14 = vsub.f32 0.0, %v5268_v10 }
 0x1a4   : > { %v1290_v4 = vsub.f32 0.0, %v1226_v7  ;;  %v688_v57 = vmul.f32 %v4461_v42, %v624_v18  ;;  %v622_v52 = vadd.f32 1.0, %v590_v6  ;;  %v1324_v21 = vsel %vm1260_vm11, %v1228_v49, %v1292_v9 }
 0x1a5   : > { %v1039_v11 = vmul.f32 %v1007_v36, %v5270_v54  ;;  %v845_v26 = vmul.f32 %v813_v35, %v5302_v46  ;;  %v5321_v51 = vand.u32 2147483647, %v5313_v39  ;;  %v4463_v15 = vpop.eup %4462  ;;  %v1356_v45 = vadd.f32 1.0, %v1324_v21 }
 0x1a6   : > { %v1322_v19 = vsel %vm1258_vm12, %v1226_v7, %v1290_v4  ;;  %v720_v31 = vsub.f32 2.0, %v688_v57  ;;  %4464 = vrcp.f32 %v622_v52  ;;  %v490_v60 = vmul.f32 0.5, %v7353_v34 }
 0x1a7   : > { %v1354_v22 = vadd.f32 1.0, %v1322_v19  ;;  %v1199_v18 = vmul.f32 %v4463_v15, %v1039_v11  ;;  %v877_v12 = vadd.f32 1.4214138, %v845_v26  ;;  %v1388_v56 = vmul.f32 %v1356_v45, %v492_v30 }
 0x1a8   : > { %4466 = vpow2.f32 %v1157_v43  ;;  %v5324_v0 = vmul.f32 %v4461_v42, %v720_v31  ;;  %v595_v54 = vmul.f32 0.3275911, %v5321_v51  ;;  %v1104_v37 = vmul.f32 %v1072_v14, %v5268_v10 }
 0x1a9   : > { %v1386_v24 = vmul.f32 %v1354_v22, %v490_v60  ;;  %v1231_v58 = vsub.f32 1.0, %v1199_v18  ;;  %v909_v25 = vmul.f32 %v877_v12, %v5302_v46  ;;  %1420 = vst.msk [vmem:[#allocation2 + $0xd0] sm:$0xff] %vm199_vm5, %v1388_v56  ;;  %v5333_v40 = vmul.f32 0.70710677, %v4966_v17 }
 0x1aa   : > { %v784_v44 = vmul.f32 1.0614054, %v5324_v0  ;;  %v627_v34 = vadd.f32 1.0, %v595_v54  ;;  %vm1263_vm13 = vcmp.ge.f32.partialorder %v5197_v53, 0.0  ;;  %v5337_v8 = vmul.f32 0.70710677, %v4976_v1 }
 0x1ab   : > { %1418 = vst.msk [vmem:[#allocation2 + $0xc0] sm:$0xff] %vm199_vm5, %v1386_v24  ;;  %v1295_v23 = vsub.f32 0.0, %v1231_v58  ;;  %v941_v55 = vadd.f32 -0.28449672, %v909_v25  ;;  %v1163_v16 = vmul.f32 1.442695, %v1104_v37 }
 0x1ac   : > { %v816_v41 = vadd.f32 -1.4531521, %v784_v44  ;;  %4468 = vrcp.f32 %v627_v34  ;;  %v5341_v63 = vand.u32 2147483647, %v5333_v40  ;;  %v495_v5 = vmul.f32 0.5, %v7354_v29 }
 0x1ad   : > { %v1327_v10 = vsel %vm1263_vm13, %v1231_v58, %v1295_v23  ;;  %v973_v38 = vmul.f32 %v941_v55, %v5302_v46  ;;  %v5346_v62 = vand.u32 2147483647, %v5337_v8  ;;  %4470 = vpow2.f32 %v1163_v16 }
 0x1ae   : > { %v1359_v28 = vadd.f32 1.0, %v1327_v10  ;;  %v848_v30 = vmul.f32 %v816_v41, %v5324_v0  ;;  %v593_v43 = vmul.f32 0.3275911, %v5341_v63  ;;  %v1070_v36 = vsub.f32 0.0, %v5306_v32 }
 0x1af   : > { %v1005_v53 = vadd.f32 0.2548296, %v973_v38  ;;  %v596_v3 = vmul.f32 0.3275911, %v5346_v62  ;;  %v5355_v21 = vmul.f32 0.70710677, %v4984_v2  ;;  %v1431_v10 = vlaneseq }
 0x1b0   : > { %v4465_v48 = vpop.eup %4464  ;;  %v1391_v49 = vmul.f32 %v1359_v28, %v495_v5  ;;  %v880_v20 = vadd.f32 1.4214138, %v848_v30  ;;  %v625_v42 = vadd.f32 1.0, %v593_v43  ;;  %v1102_v15 = vmul.f32 %v1070_v36, %v5306_v32 }
 0x1b1   : > { %v1037_v7 = vmul.f32 %v1005_v53, %v5302_v46  ;;  %v686_v6 = vmul.f32 %v4465_v48, %v622_v52  ;;  %v628_v35 = vadd.f32 1.0, %v596_v3  ;;  %v5362_v45 = vand.u32 2147483647, %v5355_v21 }
 0x1b2   : > { %v4467_v29 = vpop.eup %4466  ;;  %1423 = vst.msk [vmem:[#allocation2 + $0xe8] sm:$0xff] %vm199_vm5, %v1391_v49  ;;  %v912_v9 = vmul.f32 %v880_v20, %v5324_v0  ;;  %4472 = vrcp.f32 %v625_v42  ;;  %v7337_v19 = vmov 0.0   ;;  %v1075_v22 = vsub.f32 0.0, %v5321_v51 }
 0x1b3   : > { %v1197_v4 = vmul.f32 %v4467_v29, %v1037_v7  ;;  %v718_v57 = vsub.f32 2.0, %v686_v6  ;;  %4474 = vrcp.f32 %v628_v35  ;;  %200 = vst.msk [vmem:[#allocation2] sm:$0xff] %vm199_vm5, %v7337_v19  ;;  %201 = vst.msk [vmem:[#allocation2 + $0x8] sm:$0xff] %vm199_vm5, %v7337_v19  ;;  %vm1261_vm14 = vcmp.ge.f32.partialorder %v5222_v27, 0.0 }
 0x1b4   : > { %v944_v14 = vadd.f32 -0.28449672, %v912_v9  ;;  %202 = vst.msk [vmem:[#allocation2 + $0x10] sm:$0xff] %vm199_vm5, %v7337_v19  ;;  %203 = vst.msk [vmem:[#allocation2 + $0x118] sm:$0xff] %vm199_vm5, %v7337_v19  ;;  %v594_v12 = vmul.f32 0.3275911, %v5362_v45  ;;  %v1107_v27 = vmul.f32 %v1075_v22, %v5321_v51 }
 0x1b5   : > { %v1229_v46 = vsub.f32 1.0, %v1197_v4  ;;  %v5357_v11 = vmul.f32 %v4465_v48, %v718_v57  ;;  %204 = vst.msk [vmem:[#allocation2 + $0x120] sm:$0xff] %vm199_vm5, %v7337_v19  ;;  %205 = vst.msk [vmem:[#allocation2 + $0x128] sm:$0xff] %vm199_vm5, %v7337_v19  ;;  %v493_v56 = vmul.f32 0.5, %v7355_v50  ;;  %v1159_v44 = vmul.f32 1.442695, %v1102_v15 }
 0x1b6   : > { %v4469_v52 = vpop.eup %4468  ;;  %v976_v26 = vmul.f32 %v944_v14, %v5324_v0  ;;  %v626_v23 = vadd.f32 1.0, %v594_v12  ;;  %v1073_v50 = vsub.f32 0.0, %v5341_v63  ;;  %v496_v28 = vmul.f32 0.5, %v4911_v47 }
 0x1b7   : > { %v1293_v32 = vsub.f32 0.0, %v1229_v46  ;;  %v782_v31 = vmul.f32 1.0614054, %v5357_v11  ;;  %v691_v60 = vmul.f32 %v4469_v52, %v627_v34  ;;  %v4471_v55 = vpop.eup %4470  ;;  %vm1264_vm15 = vcmp.ge.f32.partialorder %v5249_v33, 0.0 }
 0x1b8   : > { %v1008_v18 = vadd.f32 0.2548296, %v976_v26  ;;  %4476 = vrcp.f32 %v626_v23  ;;  %v1076_v48 = vsub.f32 0.0, %v5346_v62  ;;  %v5393_v49 = vmul.f32 0.5, %v4916_v61 }
 0x1b9   : > { %v1325_v54 = vsel %vm1261_vm14, %v1229_v46, %v1293_v32  ;;  %v814_v24 = vadd.f32 -1.4531521, %v782_v31  ;;  %v723_v58 = vsub.f32 2.0, %v691_v60  ;;  %4478 = vpow2.f32 %v1159_v44 }
 0x1ba   : > { %v1357_v25 = vadd.f32 1.0, %v1325_v54  ;;  %v1040_v37 = vmul.f32 %v1008_v18, %v5324_v0  ;;  %v1169_v6 = vmul.f32 1.442695, %v1107_v27  ;;  %v1105_v9 = vmul.f32 %v1073_v50, %v5341_v63 }
 0x1bb   : > { %v846_v34 = vmul.f32 %v814_v24, %v5357_v11  ;;  %v5383_v41 = vmul.f32 %v4469_v52, %v723_v58  ;;  %v5398_v4 = vmul.f32 0.5, %v4953_v13  ;;  %v5404_v14 = vmul.f32 0.5, %v4966_v17 }
 0x1bc   : > { %v1389_v38 = vmul.f32 %v1357_v25, %v493_v56  ;;  %v1200_v16 = vmul.f32 %v4471_v55, %v1040_v37  ;;  %v4473_v5 = vpop.eup %4472  ;;  %4480 = vpow2.f32 %v1169_v6  ;;  %v1165_v32 = vmul.f32 1.442695, %v1105_v9 }
 0x1bd   : > { %v878_v0 = vadd.f32 1.4214138, %v846_v34  ;;  %v787_v30 = vmul.f32 1.0614054, %v5383_v41  ;;  %v4475_v53 = vpop.eup %4474  ;;  %v689_v51 = vmul.f32 %v4473_v5, %v625_v42  ;;  %v5413_v31 = vshrl.u32 %v1431_v10, 7 }
 0x1be   : > { %1421 = vst.msk [vmem:[#allocation2 + $0xd8] sm:$0xff] %vm199_vm5, %v1389_v38  ;;  %v1232_v43 = vsub.f32 1.0, %v1200_v16  ;;  %v692_v47 = vmul.f32 %v4475_v53, %v628_v35  ;;  %v1108_v35 = vmul.f32 %v1076_v48, %v5346_v62  ;;  %vm1262_vm0 = vcmp.ge.f32.partialorder %v5298_v59, 0.0  ;;  %v5460_v59 = vld [vmem:[%s7327_s2] sm:$0xff] }
 0x1bf   : > { %v910_v20 = vmul.f32 %v878_v0, %v5357_v11  ;;  %v819_v3 = vadd.f32 -1.4531521, %v787_v30  ;;  %v721_v29 = vsub.f32 2.0, %v689_v51  ;;  %v1074_v56 = vsub.f32 0.0, %v5362_v45 }
 0x1c0   : > { %v1296_v7 = vsub.f32 0.0, %v1232_v43  ;;  %v724_v57 = vsub.f32 2.0, %v692_v47  ;;  %v1171_v12 = vmul.f32 1.442695, %v1108_v35  ;;  %v1434_v54 = vadd.s32 16, %v5413_v31 }
 0x1c1   : > { %v942_v36 = vadd.f32 -0.28449672, %v910_v20  ;;  %v851_v42 = vmul.f32 %v819_v3, %v5383_v41  ;;  %v5406_v46 = vmul.f32 %v4473_v5, %v721_v29  ;;  %4482 = vpow2.f32 %v1165_v32  ;;  %v5507_v20 = vld [vmem:[#allocation2 + $0x1f] sm:$0xff] }
 0x1c2   : > { %v1328_v61 = vsel %vm1264_vm15, %v1232_v43, %v1296_v7  ;;  %v5410_v15 = vmul.f32 %v4475_v53, %v724_v57  ;;  %v4477_v18 = vpop.eup %4476  ;;  %v1433_v34 = vadd.s32 8, %v5413_v31  ;;  %v1468_v27 = vand.u32 15, %v5413_v31 }
 0x1c3   : > { %v1360_v52 = vadd.f32 1.0, %v1328_v61  ;;  %v974_v63 = vmul.f32 %v942_v36, %v5357_v11  ;;  %v883_v26 = vadd.f32 1.4214138, %v851_v42  ;;  %v785_v13 = vmul.f32 1.0614054, %v5406_v46  ;;  %v4479_v44 = vpop.eup %4478 }
 0x1c4   : > { %v788_v22 = vmul.f32 1.0614054, %v5410_v15  ;;  %v690_v37 = vmul.f32 %v4477_v18, %v626_v23  ;;  %4484 = vpow2.f32 %v1171_v12  ;;  %vm1267_vm2 = vcmp.ge.f32.partialorder %v5313_v39, 0.0  ;;  %v2040_v12 = vld [vmem:[#allocation2 + $0x7] sm:$0xff] }
 0x1c5   : > { %v1392_v33 = vmul.f32 %v1360_v52, %v496_v28  ;;  %v1006_v60 = vadd.f32 0.2548296, %v974_v63  ;;  %v915_v17 = vmul.f32 %v883_v26, %v5383_v41  ;;  %v817_v62 = vadd.f32 -1.4531521, %v785_v13 }
 0x1c6   : > { %v820_v25 = vadd.f32 -1.4531521, %v788_v22  ;;  %v722_v50 = vsub.f32 2.0, %v690_v37  ;;  %v1482_v28 = vand.u32 15, %v1434_v54  ;;  %v1435_v51 = vadd.s32 24, %v5413_v31  ;;  %v4481_v6 = vpop.eup %4480 }
 0x1c7   : > { %1424 = vst.msk [vmem:[#allocation2 + $0xf0] sm:$0xff] %vm199_vm5, %v1392_v33  ;;  %v1038_v24 = vmul.f32 %v1006_v60, %v5357_v11  ;;  %v947_v58 = vadd.f32 -0.28449672, %v915_v17  ;;  %v849_v55 = vmul.f32 %v817_v62, %v5406_v46  ;;  %v1106_v11 = vmul.f32 %v1074_v56, %v5362_v45  ;;  %v5472_v56 = vld [vmem:[#allocation2 + $0x17] sm:$0xff] }
 0x1c8   : > { %v852_v16 = vmul.f32 %v820_v25, %v5410_v15  ;;  %v5428_v53 = vmul.f32 %v4477_v18, %v722_v50  ;;  %v1475_v48 = vand.u32 15, %v1433_v34  ;;  %vm5433_vm3 = vcmp.ne.s32.totalorder %v1468_v27, 0 }
 0x1c9   : > { %v1198_v10 = vmul.f32 %v4479_v44, %v1038_v24  ;;  %v979_v38 = vmul.f32 %v947_v58, %v5383_v41  ;;  %v881_v5 = vadd.f32 1.4214138, %v849_v55  ;;  %v5441_v9 = vmul.f32 0.5, %v4976_v1  ;;  %v5543_v55 = vld [vmem:[#allocation2 + $0x27] sm:$0xff] }
 0x1ca   : > { %v884_v30 = vadd.f32 1.4214138, %v852_v16  ;;  %v786_v7 = vmul.f32 1.0614054, %v5428_v53  ;;  %v1167_v36 = vmul.f32 1.442695, %v1106_v11 }
 0x1cb   : > { %v1230_v23 = vsub.f32 1.0, %v1198_v10  ;;  %v1011_v0 = vadd.f32 0.2548296, %v979_v38  ;;  %v913_v43 = vmul.f32 %v881_v5, %v5406_v46  ;;  %vm5443_vm4 = vcmp.ne.s32.totalorder %v1482_v28, 0  ;;  %v4483_v17 = vpop.eup %4482  ;;  %v2241_v28 = vld [vmem:[#allocation2 + $0x11] sm:$0xff] }
 0x1cc   : > { %v916_v47 = vmul.f32 %v884_v30, %v5410_v15  ;;  %v1489_v26 = vand.u32 15, %v1435_v51  ;;  %v5453_v1 = vsel %vm5433_vm3, 1.0, %v7337_v19  ;;  %vm5462_vm6 = vcmp.ne.s32.totalorder %v1475_v48, 15  ;;  %v2041_v30 = vld [vmem:[#allocation2 + $0xf] sm:$0xff] }
 0x1cd   : > { %v1294_v3 = vsub.f32 0.0, %v1230_v23  ;;  %v1043_v45 = vmul.f32 %v1011_v0, %v5383_v41  ;;  %v945_v29 = vadd.f32 -0.28449672, %v913_v43  ;;  %v818_v41 = vadd.f32 -1.4531521, %v786_v7 }
 0x1ce   : > { %v948_v35 = vadd.f32 -0.28449672, %v916_v47  ;;  %v5470_v62 = vsel %vm5443_vm4, 1.0, %v7337_v19  ;;  %v2106_v54 = vsub.s32 0, %v5413_v31  ;;  %vm1265_vm7 = vcmp.ge.f32.partialorder %v5333_v40, 0.0  ;;  %v4485_v44 = vpop.eup %4484 }
 0x1cf   : > { %v1326_v57 = vsel %vm1262_vm0, %v1230_v23, %v1294_v3  ;;  %v1203_v61 = vmul.f32 %v4481_v6, %v1043_v45  ;;  %v977_v63 = vmul.f32 %v945_v29, %v5406_v46  ;;  %v850_v33 = vmul.f32 %v818_v41, %v5428_v53  ;;  %v2140_v3 = vld [vmem:[#allocation2 + $0x8] sm:$0xff]  ;;  %v2141_v6 = vld [vmem:[#allocation2 + $0x10] sm:$0xff] }
 0x1d0   : > { %v1358_v52 = vadd.f32 1.0, %v1326_v57  ;;  %v980_v32 = vmul.f32 %v948_v35, %v5410_v15  ;;  %v2174_v37 = vsub.s32 1, %v5413_v31  ;;  %vm1268_vm8 = vcmp.ge.f32.partialorder %v5337_v8, 0.0  ;;  %v2243_v29 = vld [vmem:[#allocation2 + $0x21] sm:$0xff] }
 0x1d1   : > { %v1235_v13 = vsub.f32 1.0, %v1203_v61  ;;  %v1009_v18 = vadd.f32 0.2548296, %v977_v63  ;;  %v882_v25 = vadd.f32 1.4214138, %v850_v33  ;;  %4486 = vpow2.f32 %v1167_v36  ;;  %v5521_v35 = vld [vmem:[#allocation2 + $0x20] sm:$0xff] }
 0x1d2   : > { %v1390_v22 = vmul.f32 %v1358_v52, %v5393_v49  ;;  %v1012_v58 = vadd.f32 0.2548296, %v980_v32  ;;  %vm5480_vm9 = vcmp.ne.s32.totalorder %v1489_v26, 15  ;;  %v5487_v34 = vsel %vm5462_vm6, 1.0, %v7337_v19  ;;  %v2142_v32 = vld [vmem:[#allocation2 + $0x18] sm:$0xff] }
 0x1d3   : > { %v1299_v24 = vsub.f32 0.0, %v1235_v13  ;;  %v1041_v49 = vmul.f32 %v1009_v18, %v5406_v46  ;;  %v914_v38 = vmul.f32 %v882_v25, %v5428_v53  ;;  %v2072_v46 = vmul.f32 %v5453_v1, %v2040_v12 }
 0x1d4   : > { %1422 = vst.msk [vmem:[#allocation2 + $0xe0] sm:$0xff] %vm199_vm5, %v1390_v22  ;;  %v1044_v10 = vmul.f32 %v1012_v58, %v5410_v15  ;;  %v2074_v5 = vmul.f32 %v5470_v62, %v5472_v56  ;;  %v5497_v11 = vrot.slane %v5460_v59, %v2106_v54  ;;  %v5500_v0 = vmul.f32 0.5, %v4984_v2 }
 0x1d5   : > { %v1331_v27 = vsel %vm1267_vm2, %v1235_v13, %v1299_v24  ;;  %v1201_v50 = vmul.f32 %v4483_v17, %v1041_v49  ;;  %v946_v39 = vadd.f32 -0.28449672, %v914_v38  ;;  %v5503_v15 = vrot.slane %v5460_v59, %v2174_v37  ;;  %v2240_v24 = vld [vmem:[#allocation2 + $0x9] sm:$0xff]  ;;  %v2242_v38 = vld [vmem:[#allocation2 + $0x19] sm:$0xff] }
 0x1d6   : > { %v1363_v16 = vadd.f32 1.0, %v1331_v27  ;;  %v1204_v23 = vmul.f32 %v4485_v44, %v1044_v10  ;;  %v1436_v48 = vadd.s32 32, %v5413_v31  ;;  %v2306_v45 = vsub.s32 2, %v5413_v31 }
 0x1d7   : > { %v1233_v51 = vsub.f32 1.0, %v1201_v50  ;;  %v978_v7 = vmul.f32 %v946_v39, %v5428_v53  ;;  %v5514_v2 = vsel %vm5480_vm9, 1.0, %v7337_v19  ;;  %v2108_v42 = vmul.f32 %v5497_v11, %v2072_v46 }
 0x1d8   : > { %v1395_v43 = vmul.f32 %v1363_v16, %v5398_v4  ;;  %v1236_v47 = vsub.f32 1.0, %v1204_v23  ;;  %v2273_v4 = vmul.f32 %v5487_v34, %v2241_v28  ;;  %v2109_v57 = vmul.f32 %v5497_v11, %v2041_v30 }
 0x1d9   : > { %v1297_v36 = vsub.f32 0.0, %v1233_v51  ;;  %v2110_v61 = vmul.f32 %v5497_v11, %v2074_v5  ;;  %v1010_v52 = vadd.f32 0.2548296, %v978_v7  ;;  %v2111_v63 = vmul.f32 %v5497_v11, %v5507_v20 }
 0x1da   : > { %1427 = vst.msk [vmem:[#allocation2 + $0x108] sm:$0xff] %vm199_vm5, %v1395_v43  ;;  %v1300_v41 = vsub.f32 0.0, %v1236_v47  ;;  %v2176_v26 = vmul.f32 %v5503_v15, %v2140_v3  ;;  %v2177_v33 = vmul.f32 %v5503_v15, %v2141_v6  ;;  %v2275_v60 = vmul.f32 %v5514_v2, %v2243_v29 }
 0x1db   : > { %v1329_v13 = vsel %vm1265_vm7, %v1233_v51, %v1297_v36  ;;  %v5531_v17 = vrot.slane %v5460_v59, %v2306_v45  ;;  %v1042_v12 = vmul.f32 %v1010_v52, %v5428_v53  ;;  %v2179_v54 = vmul.f32 %v5503_v15, %v5521_v35  ;;  %v4487_v40 = vpop.eup %4486  ;;  %v5576_v52 = vld [vmem:[#allocation2 + $0x31] sm:$0xff] }
 0x1dc   : > { %v1361_v22 = vadd.f32 1.0, %v1329_v13  ;;  %v1332_v18 = vsel %vm1268_vm8, %v1236_v47, %v1300_v41  ;;  %vm1266_vm10 = vcmp.ge.f32.partialorder %v5355_v21, 0.0  ;;  %v5540_v25 = vadd.s32 40, %v5413_v31  ;;  %v5565_v47 = vld [vmem:[#allocation2 + $0x2f] sm:$0xff] }
 0x1dd   : > { %v1364_v58 = vadd.f32 1.0, %v1332_v18  ;;  %v1496_v37 = vand.u32 15, %v1436_v48  ;;  %v1202_v49 = vmul.f32 %v4487_v40, %v1042_v12  ;;  %v2178_v8 = vmul.f32 %v5503_v15, %v2142_v32  ;;  %v5593_v18 = vld [vmem:[#allocation2 + $0x30] sm:$0xff] }
 0x1de   : > { %v1393_v44 = vmul.f32 %v1361_v22, %v5404_v14  ;;  %v2208_v53 = vadd.f32 %v2176_v26, %v2108_v42  ;;  %v2209_v10 = vadd.f32 %v2177_v33, %v2109_v57  ;;  %v2308_v46 = vmul.f32 %v5531_v17, %v2240_v24 }
 0x1df   : > { %v1396_v27 = vmul.f32 %v1364_v58, %v5441_v9  ;;  %v2309_v16 = vmul.f32 %v5531_v17, %v2273_v4  ;;  %v1234_v50 = vsub.f32 1.0, %v1202_v49  ;;  %v2210_v5 = vadd.f32 %v2178_v8, %v2110_v61  ;;  %v2144_v58 = vld [vmem:[#allocation2 + $0x28] sm:$0xff] }
 0x1e0   : > { %1425 = vst.msk [vmem:[#allocation2 + $0xf8] sm:$0xff] %vm199_vm5, %v1393_v44  ;;  %v2211_v28 = vadd.f32 %v2179_v54, %v2111_v63  ;;  %v2311_v14 = vmul.f32 %v5531_v17, %v2275_v60  ;;  %vm5552_vm11 = vcmp.ne.s32.totalorder %v1496_v37, 0  ;;  %v2374_v9 = vmul.f32 %v5453_v1, %v5472_v56 }
 0x1e1   : > { %1428 = vst.msk [vmem:[#allocation2 + $0x110] sm:$0xff] %vm199_vm5, %v1396_v27  ;;  %v2376_v39 = vmul.f32 %v5470_v62, %v5543_v55  ;;  %v2408_v30 = vsub.s32 3, %v5413_v31  ;;  %v2478_v43 = vsub.s32 4, %v5413_v31  ;;  %v1298_v51 = vsub.f32 0.0, %v1234_v50 }
 0x1e2   : > { %v2310_v48 = vmul.f32 %v5531_v17, %v2242_v38  ;;  %v2580_v3 = vsub.s32 5, %v5413_v31  ;;  %v2682_v45 = vsub.s32 6, %v5413_v31  ;;  %v2340_v7 = vadd.f32 %v2308_v46, %v2208_v53 }
 0x1e3   : > { %v2341_v6 = vadd.f32 %v2309_v16, %v2209_v10  ;;  %v5568_v56 = vrot.slane %v5460_v59, %v2408_v30  ;;  %v5571_v4 = vrot.slane %v5460_v59, %v2478_v43  ;;  %v1330_v36 = vsel %vm1266_vm10, %v1234_v50, %v1298_v51 }
 0x1e4   : > { %v2342_v42 = vadd.f32 %v2310_v48, %v2210_v5  ;;  %v2343_v57 = vadd.f32 %v2311_v14, %v2211_v28  ;;  %v2547_v61 = vmul.f32 %v5487_v34, %v2243_v29  ;;  %v1362_v41 = vadd.f32 1.0, %v1330_v36  ;;  %v2244_v5 = vld [vmem:[#allocation2 + $0x29] sm:$0xff] }
 0x1e5   : > { %v2410_v63 = vmul.f32 %v5568_v56, %v2374_v9  ;;  %v2411_v26 = vmul.f32 %v5568_v56, %v5507_v20  ;;  %v5582_v13 = vrot.slane %v5460_v59, %v2580_v3  ;;  %v2413_v33 = vmul.f32 %v5568_v56, %v5565_v47  ;;  %v2046_v3 = vld [vmem:[#allocation2 + $0x37] sm:$0xff] }
 0x1e6   : > { %v2480_v21 = vmul.f32 %v5571_v4, %v2142_v32  ;;  %v2648_v60 = vmul.f32 %v5453_v1, %v5543_v55  ;;  %v5590_v29 = vrot.slane %v5460_v59, %v2682_v45  ;;  %v1394_v22 = vmul.f32 %v1362_v41, %v5500_v0 }
 0x1e7   : > { %v2442_v12 = vadd.f32 %v2410_v63, %v2340_v7  ;;  %v2443_v20 = vadd.f32 %v2411_v26, %v2341_v6  ;;  %v2481_v54 = vmul.f32 %v5571_v4, %v5521_v35  ;;  %v2412_v24 = vmul.f32 %v5568_v56, %v2376_v39 }
 0x1e8   : > { %v2445_v40 = vadd.f32 %v2413_v33, %v2343_v57  ;;  %v2549_v32 = vmul.f32 %v5514_v2, %v5576_v52  ;;  %v2752_v1 = vsub.s32 7, %v5413_v31  ;;  %1426 = vst.msk [vmem:[#allocation2 + $0x100] sm:$0xff] %vm199_vm5, %v1394_v22  ;;  %v2582_v44 = vmul.f32 %v5582_v13, %v2242_v38  ;;  %v5614_v38 = vld [vmem:[%s7327_s2 + $0x8] ss:$0 sm:$0xff]  ;;  %v5635_v57 = vld [vmem:[#allocation2 + $0x3f] sm:$0xff] }
 0x1e9   : > { %v2512_v37 = vadd.f32 %v2480_v21, %v2442_v12  ;;  %v2513_v0 = vadd.f32 %v2481_v54, %v2443_v20  ;;  %v2583_v49 = vmul.f32 %v5582_v13, %v2547_v61  ;;  %v1503_v8 = vand.u32 15, %v5540_v25  ;;  %v5637_v61 = vld [vmem:[#allocation2 + $0x41] sm:$0xff] }
 0x1ea   : > { %v2444_v35 = vadd.f32 %v2412_v24, %v2342_v42  ;;  %v2483_v53 = vmul.f32 %v5571_v4, %v5593_v18  ;;  %v1438_v27 = vadd.s32 48, %v5413_v31  ;;  %v2684_v16 = vmul.f32 %v5590_v29, %v2648_v60  ;;  %v5647_v60 = vld [vmem:[#allocation2 + $0x40] sm:$0xff] }
 0x1eb   : > { %v2614_v10 = vadd.f32 %v2582_v44, %v2512_v37  ;;  %v2615_v46 = vadd.f32 %v2583_v49, %v2513_v0  ;;  %v2685_v50 = vmul.f32 %v5590_v29, %v5565_v47  ;;  %v5619_v25 = vsel %vm5552_vm11, 1.0, %v7337_v19 }
 0x1ec   : > { %v2482_v28 = vmul.f32 %v5571_v4, %v2144_v58  ;;  %v5623_v14 = vrot.slane %v5460_v59, %v2752_v1  ;;  %v2821_v9 = vmul.f32 %v5487_v34, %v5576_v52  ;;  %v2515_v39 = vadd.f32 %v2483_v53, %v2445_v40 }
 0x1ed   : > { %v2585_v30 = vmul.f32 %v5582_v13, %v2549_v32  ;;  %v2716_v43 = vadd.f32 %v2684_v16, %v2614_v10  ;;  %v2717_v51 = vadd.f32 %v2685_v50, %v2615_v46  ;;  %vm1949_vm12 = vcmp.ne.s32.totalorder %v1503_v8, 15 }
 0x1ee   : > { %v2754_v48 = vmul.f32 %v5623_v14, %v2144_v58  ;;  %v2755_v23 = vmul.f32 %v5623_v14, %v5593_v18  ;;  %v2514_v45 = vadd.f32 %v2482_v28, %v2444_v35  ;;  %v2856_v7 = vmul.f32 %v5614_v38, %v2244_v5  ;;  %v2246_v35 = vld [vmem:[#allocation2 + $0x39] sm:$0xff] }
 0x1ef   : > { %v1510_v59 = vand.u32 15, %v1438_v27  ;;  %v2076_v6 = vmul.f32 %v5619_v25, %v5543_v55  ;;  %v2857_v42 = vmul.f32 %v5614_v38, %v2821_v9  ;;  %v5640_v41 = vsel %vm1949_vm12, 1.0, %v7337_v19 }
 0x1f0   : > { %v2786_v34 = vadd.f32 %v2754_v48, %v2716_v43  ;;  %v2787_v36 = vadd.f32 %v2755_v23, %v2717_v51  ;;  %v2584_v63 = vmul.f32 %v5582_v13, %v2244_v5  ;;  %v2617_v26 = vadd.f32 %v2585_v30, %v2515_v39 }
 0x1f1   : > { %v2650_v55 = vmul.f32 %v5470_v62, %v2046_v3  ;;  %vm1854_vm13 = vcmp.ne.s32.totalorder %v1510_v59, 0  ;;  %v2687_v12 = vmul.f32 %v5590_v29, %v5635_v57  ;;  %v2823_v20 = vmul.f32 %v5514_v2, %v5637_v61  ;;  %v2146_v62 = vld [vmem:[#allocation2 + $0x38] sm:$0xff] }
 0x1f2   : > { %v5643_v33 = vadd.f32 %v2856_v7, %v2786_v34  ;;  %v5645_v21 = vadd.f32 %v2857_v42, %v2787_v36  ;;  %v2616_v22 = vadd.f32 %v2584_v63, %v2514_v45  ;;  %v2112_v54 = vmul.f32 %v5497_v11, %v2076_v6 }
 0x1f3   : > { %v2277_v24 = vmul.f32 %v5640_v41, %v5576_v52  ;;  %v2180_v1 = vmul.f32 %v5503_v15, %v2144_v58  ;;  %v2686_v37 = vmul.f32 %v5590_v29, %v2650_v55  ;;  %v2719_v0 = vadd.f32 %v2687_v12, %v2617_v26 }
 0x1f4   : > { %v5658_v40 = vmul.f32 0.70710677, %v5643_v33  ;;  %v5661_v32 = vmul.f32 0.70710677, %v5645_v21  ;;  %v2757_v2 = vmul.f32 %v5623_v14, %v5647_v60  ;;  %v2378_v44 = vmul.f32 %v5619_v25, %v2046_v3 }
 0x1f5   : > { %v5671_v8 = vsel %vm1854_vm13, 1.0, %v7337_v19  ;;  %v2718_v53 = vadd.f32 %v2686_v37, %v2616_v22  ;;  %v2756_v27 = vmul.f32 %v5623_v14, %v2146_v62  ;;  %v2859_v10 = vmul.f32 %v5614_v38, %v2823_v20 }
 0x1f6   : > { %v2984_v49 = vand.u32 2147483647, %v5658_v40  ;;  %v2985_v52 = vand.u32 2147483647, %v5661_v32  ;;  %v2789_v58 = vadd.f32 %v2757_v2, %v2719_v0  ;;  %v2113_v46 = vmul.f32 %v5497_v11, %v5565_v47 }
 0x1f7   : > { %v2181_v16 = vmul.f32 %v5503_v15, %v5593_v18  ;;  %v2212_v9 = vadd.f32 %v2180_v1, %v2112_v54  ;;  %v2788_v39 = vadd.f32 %v2756_v27, %v2718_v53  ;;  %v2858_v30 = vmul.f32 %v5614_v38, %v2246_v35 }
 0x1f8   : > { %v3016_v50 = vmul.f32 0.3275911, %v2984_v49  ;;  %v3017_v28 = vmul.f32 0.3275911, %v2985_v52  ;;  %v2891_v43 = vadd.f32 %v2859_v10, %v2789_v58  ;;  %v2313_v51 = vmul.f32 %v5531_v17, %v2277_v24 }
 0x1f9   : > { %v2078_v45 = vmul.f32 %v5671_v8, %v2046_v3  ;;  %v2312_v7 = vmul.f32 %v5531_v17, %v2244_v5  ;;  %v2414_v47 = vmul.f32 %v5568_v56, %v2378_v44  ;;  %v2890_v59 = vadd.f32 %v2858_v30, %v2788_v39  ;;  %v5719_v30 = vld [vmem:[#allocation2 + $0x4f] sm:$0xff] }
 0x1fa   : > { %v3048_v48 = vadd.f32 1.0, %v3016_v50  ;;  %v3049_v23 = vadd.f32 1.0, %v3017_v28  ;;  %v5684_v6 = vmul.f32 0.70710677, %v2891_v43  ;;  %v2213_v18 = vadd.f32 %v2181_v16, %v2113_v46 }
 0x1fb   : > { %v2344_v34 = vadd.f32 %v2312_v7, %v2212_v9  ;;  %v5686_v36 = vmul.f32 0.70710677, %v2890_v59  ;;  %v3496_v26 = vsub.f32 0.0, %v2984_v49  ;;  %v2114_v3 = vmul.f32 %v5497_v11, %v2078_v45  ;;  %v5714_v9 = vld [vmem:[#allocation2 + $0x47] sm:$0xff] }
 0x1fc   : > { %4488 = vrcp.f32 %v3048_v48  ;;  %v5689_v42 = vand.u32 2147483647, %v5684_v6  ;;  %v2345_v63 = vadd.f32 %v2313_v51, %v2213_v18  ;;  %v2115_v5 = vmul.f32 %v5497_v11, %v5635_v57  ;;  %v5727_v18 = vld [vmem:[#allocation2 + $0x51] sm:$0xff] }
 0x1fd   : > { %4490 = vrcp.f32 %v3049_v23  ;;  %v2446_v55 = vadd.f32 %v2414_v47, %v2344_v34  ;;  %v5695_v22 = vand.u32 2147483647, %v5686_v36  ;;  %v3497_v20 = vsub.f32 0.0, %v2985_v52 }
 0x1fe   : > { %v3019_v12 = vmul.f32 0.3275911, %v5689_v42  ;;  %v2182_v54 = vmul.f32 %v5503_v15, %v2146_v62  ;;  %v2183_v24 = vmul.f32 %v5503_v15, %v5647_v60  ;;  %v2415_v1 = vmul.f32 %v5568_v56, %v5635_v57 }
 0x1ff   : > { %v2484_v37 = vmul.f32 %v5571_v4, %v2146_v62  ;;  %v2551_v0 = vmul.f32 %v5640_v41, %v5637_v61  ;;  %v3018_v2 = vmul.f32 0.3275911, %v5695_v22  ;;  %v3528_v53 = vmul.f32 %v3496_v26, %v2984_v49 }
 0x200   : > { %v3051_v44 = vadd.f32 1.0, %v3019_v12  ;;  %v2214_v27 = vadd.f32 %v2182_v54, %v2114_v3  ;;  %v1440_v58 = vadd.s32 64, %v5413_v31  ;;  %v2447_v10 = vadd.f32 %v2415_v1, %v2345_v63 }
 0x201   : > { %v2314_v46 = vmul.f32 %v5531_v17, %v2246_v35  ;;  %v2485_v16 = vmul.f32 %v5571_v4, %v5647_v60  ;;  %v3050_v50 = vadd.f32 1.0, %v3018_v2  ;;  %v3529_v57 = vmul.f32 %v3497_v20, %v2985_v52 }
 0x202   : > { %4492 = vrcp.f32 %v3051_v44  ;;  %v5711_v62 = vadd.f32 %v2183_v24, %v2115_v5  ;;  %v2586_v28 = vmul.f32 %v5582_v13, %v2246_v35  ;;  %v2516_v39 = vadd.f32 %v2484_v37, %v2446_v55 }
 0x203   : > { %v5717_v49 = vmul.f32 0.5, %v5643_v33  ;;  %4494 = vrcp.f32 %v3050_v50  ;;  %v2517_v51 = vadd.f32 %v2485_v16, %v2447_v10  ;;  %v2587_v45 = vmul.f32 %v5582_v13, %v2551_v0  ;;  %v5729_v33 = vld [vmem:[#allocation2 + $0x50] sm:$0xff] }
 0x204   : > { %v5723_v7 = vmul.f32 0.5, %v5645_v21  ;;  %v3560_v52 = vmul.f32 1.442695, %v3528_v53  ;;  %v5725_v47 = vadd.f32 %v2314_v46, %v2214_v27  ;;  %v1524_v35 = vand.u32 15, %v1440_v58  ;;  %v5735_v21 = vld [vmem:[#allocation2 + $0x48] sm:$0xff] }
 0x205   : > { %v2618_v26 = vadd.f32 %v2586_v28, %v2516_v39  ;;  %v2619_v3 = vadd.f32 %v2587_v45, %v2517_v51  ;;  %v2652_v55 = vmul.f32 %v5619_v25, %v5714_v9  ;;  %v3562_v12 = vmul.f32 1.442695, %v3529_v57  ;;  %v5744_v25 = vld [vmem:[#allocation2 + $0x49] sm:$0xff] }
 0x206   : > { %v4489_v60 = vpop.eup %4488  ;;  %v5733_v20 = vmul.f32 0.5, %v2891_v43  ;;  %v2689_v54 = vmul.f32 %v5590_v29, %v5719_v30  ;;  %v5739_v1 = vmul.f32 0.5, %v2890_v59  ;;  %v2825_v37 = vmul.f32 %v5640_v41, %v5727_v18 }
 0x207   : > { %v4491_v34 = vpop.eup %4490  ;;  %v3112_v63 = vmul.f32 %v4489_v60, %v3048_v48  ;;  %v2688_v48 = vmul.f32 %v5590_v29, %v2652_v55  ;;  %vm1856_vm14 = vcmp.ne.s32.totalorder %v1524_v35, 0  ;;  %v2759_v43 = vmul.f32 %v5623_v14, %v5729_v33 }
 0x208   : > { %v3113_v5 = vmul.f32 %v4491_v34, %v3049_v23  ;;  %v2721_v23 = vadd.f32 %v2689_v54, %v2619_v3  ;;  %4496 = vpow2.f32 %v3560_v52  ;;  %v2758_v59 = vmul.f32 %v5623_v14, %v5735_v21 }
 0x209   : > { %v3144_v24 = vsub.f32 2.0, %v3112_v63  ;;  %v2720_v53 = vadd.f32 %v2688_v48, %v2618_v26  ;;  %v3499_v58 = vsub.f32 0.0, %v5689_v42  ;;  %v2861_v10 = vmul.f32 %v5614_v38, %v2825_v37 }
 0x20a   : > { %v3145_v0 = vsub.f32 2.0, %v3113_v5  ;;  %v2791_v41 = vadd.f32 %v2759_v43, %v2721_v23  ;;  %v5758_v57 = vsel %vm1856_vm14, 1.0, %v7337_v19  ;;  %v2860_v39 = vmul.f32 %v5614_v38, %v5744_v25 }
 0x20b   : > { %v5748_v2 = vmul.f32 %v4489_v60, %v3144_v24  ;;  %v2790_v28 = vadd.f32 %v2758_v59, %v2720_v53  ;;  %v1439_v52 = vadd.s32 56, %v5413_v31  ;;  %4498 = vpow2.f32 %v3562_v12 }
 0x20c   : > { %v5752_v27 = vmul.f32 %v4491_v34, %v3145_v0  ;;  %v4493_v46 = vpop.eup %4492  ;;  %v5763_v60 = vadd.f32 %v2861_v10, %v2791_v41  ;;  %v3498_v63 = vsub.f32 0.0, %v5695_v22  ;;  %v3531_v54 = vmul.f32 %v3499_v58, %v5689_v42 }
 0x20d   : > { %v3208_v16 = vmul.f32 1.0614054, %v5748_v2  ;;  %v3115_v45 = vmul.f32 %v4493_v46, %v3051_v44  ;;  %v4495_v35 = vpop.eup %4494  ;;  %v5767_v26 = vadd.f32 %v2860_v39, %v2790_v28  ;;  %v2080_v44 = vmul.f32 %v5758_v57, %v5714_v9 }
 0x20e   : > { %v3209_v51 = vmul.f32 1.0614054, %v5752_v27  ;;  %v3114_v55 = vmul.f32 %v4495_v35, %v3050_v50  ;;  %v5777_v37 = vmul.f32 0.70710677, %v5763_v60  ;;  %v1517_v50 = vand.u32 15, %v1439_v52 }
 0x20f   : > { %v3240_v34 = vadd.f32 -1.4531521, %v3208_v16  ;;  %v3147_v5 = vsub.f32 2.0, %v3115_v45  ;;  %v5774_v48 = vmul.f32 0.70710677, %v5767_v26  ;;  %v2380_v42 = vmul.f32 %v5671_v8, %v5714_v9 }
 0x210   : > { %v3241_v3 = vadd.f32 -1.4531521, %v3209_v51  ;;  %v3146_v0 = vsub.f32 2.0, %v3114_v55  ;;  %v5786_v59 = vand.u32 2147483647, %v5777_v37  ;;  %v3530_v16 = vmul.f32 %v3498_v63, %v5695_v22 }
 0x211   : > { %v3272_v24 = vmul.f32 %v3240_v34, %v5748_v2  ;;  %v5780_v23 = vmul.f32 %v4493_v46, %v3147_v5  ;;  %v2988_v53 = vand.u32 2147483647, %v5774_v48  ;;  %v3566_v39 = vmul.f32 1.442695, %v3531_v54 }
 0x212   : > { %v3273_v12 = vmul.f32 %v3241_v3, %v5752_v27  ;;  %v5788_v41 = vmul.f32 %v4495_v35, %v3146_v0  ;;  %v4497_v28 = vpop.eup %4496  ;;  %v3021_v45 = vmul.f32 0.3275911, %v5786_v59  ;;  %vm1951_vm15 = vcmp.ne.s32.totalorder %v1517_v50, 15 }
 0x213   : > { %v3304_v43 = vadd.f32 1.4214138, %v3272_v24  ;;  %v3211_v10 = vmul.f32 1.0614054, %v5780_v23  ;;  %v3020_v51 = vmul.f32 0.3275911, %v2988_v53  ;;  %v2417_v54 = vmul.f32 %v5568_v56, %v5719_v30 }
 0x214   : > { %v3305_v58 = vadd.f32 1.4214138, %v3273_v12  ;;  %v3210_v52 = vmul.f32 1.0614054, %v5788_v41  ;;  %v5796_v55 = vadd.f32 1.0, %v3021_v45  ;;  %v3500_v5 = vsub.f32 0.0, %v2988_v53 }
 0x215   : > { %v3336_v46 = vmul.f32 %v3304_v43, %v5748_v2  ;;  %v3243_v34 = vadd.f32 -1.4531521, %v3211_v10  ;;  %v3052_v35 = vadd.f32 1.0, %v3020_v51  ;;  %v4499_v12 = vpop.eup %4498  ;;  %v3564_v43 = vmul.f32 1.442695, %v3530_v16 }
 0x216   : > { %v3337_v9 = vmul.f32 %v3305_v58, %v5752_v27  ;;  %v3242_v22 = vadd.f32 -1.4531521, %v3210_v52  ;;  %v5803_v58 = vsel %vm1951_vm15, 1.0, %v7337_v19  ;;  %v5809_v45 = vmul.f32 %v5497_v11, %v2080_v44 }
 0x217   : > { %v3368_v3 = vadd.f32 -0.28449672, %v3336_v46  ;;  %v3275_v63 = vmul.f32 %v3243_v34, %v5780_v23  ;;  %4500 = vrcp.f32 %v3052_v35  ;;  %vm3688_vm0 = vcmp.ge.f32.partialorder %v5658_v40, 0.0 }
 0x218   : > { %v3369_v24 = vadd.f32 -0.28449672, %v3337_v9  ;;  %v3274_v10 = vmul.f32 %v3242_v22, %v5788_v41  ;;  %4502 = vrcp.f32 %v5796_v55  ;;  %v3532_v9 = vmul.f32 %v3500_v5, %v2988_v53 }
 0x219   : > { %v3400_v0 = vmul.f32 %v3368_v3, %v5748_v2  ;;  %v3307_v46 = vadd.f32 1.4214138, %v3275_v63  ;;  %4504 = vpow2.f32 %v3566_v39  ;;  %v2486_v3 = vmul.f32 %v5571_v4, %v5735_v21 }
 0x21a   : > { %v3401_v50 = vmul.f32 %v3369_v24, %v5752_v27  ;;  %v3306_v16 = vadd.f32 1.4214138, %v3274_v10  ;;  %vm3689_vm2 = vcmp.ge.f32.partialorder %v5661_v32, 0.0  ;;  %4506 = vpow2.f32 %v3564_v43 }
 0x21b   : > { %v3432_v51 = vadd.f32 0.2548296, %v3400_v0  ;;  %v3339_v34 = vmul.f32 %v3307_v46, %v5780_v23  ;;  %v1442_v39 = vadd.s32 80, %v5413_v31  ;;  %v2279_v44 = vmul.f32 %v5803_v58, %v5637_v61 }
 0x21c   : > { %v3433_v52 = vadd.f32 0.2548296, %v3401_v50  ;;  %v3338_v5 = vmul.f32 %v3306_v16, %v5788_v41  ;;  %v2487_v63 = vmul.f32 %v5571_v4, %v5729_v33  ;;  %v3501_v50 = vsub.f32 0.0, %v5786_v59 }
 0x21d   : > { %v3464_v24 = vmul.f32 %v3432_v51, %v5748_v2  ;;  %v3371_v22 = vadd.f32 -0.28449672, %v3339_v34  ;;  %v3568_v2 = vmul.f32 1.442695, %v3532_v9  ;;  %v2315_v10 = vmul.f32 %v5531_v17, %v2279_v44 }
 0x21e   : > { %v3465_v53 = vmul.f32 %v3433_v52, %v5752_v27  ;;  %v3370_v46 = vadd.f32 -0.28449672, %v3338_v5  ;;  %v2416_v61 = vmul.f32 %v5568_v56, %v2380_v42  ;;  %v2588_v27 = vmul.f32 %v5582_v13, %v5744_v25 }
 0x21f   : > { %v3624_v0 = vmul.f32 %v4497_v28, %v3464_v24  ;;  %v3403_v51 = vmul.f32 %v3371_v22, %v5780_v23  ;;  %v1538_v52 = vand.u32 15, %v1442_v39  ;;  %v2347_v16 = vadd.f32 %v2315_v10, %v5711_v62 }
 0x220   : > { %v3625_v43 = vmul.f32 %v4499_v12, %v3465_v53  ;;  %v3402_v28 = vmul.f32 %v3370_v46, %v5788_v41  ;;  %v2448_v9 = vadd.f32 %v2416_v61, %v5725_v47  ;;  %vm3691_vm3 = vcmp.ge.f32.partialorder %v5684_v6, 0.0 }
 0x221   : > { %v3656_v19 = vsub.f32 1.0, %v3624_v0  ;;  %v3435_v24 = vadd.f32 0.2548296, %v3403_v51  ;;  %v4501_v44 = vpop.eup %4500  ;;  %v3533_v53 = vmul.f32 %v3501_v50, %v5786_v59  ;;  %4508 = vpow2.f32 %v3568_v2 }
 0x222   : > { %v3657_v34 = vsub.f32 1.0, %v3625_v43  ;;  %v2449_v42 = vadd.f32 %v2417_v54, %v2347_v16  ;;  %v4503_v5 = vpop.eup %4502  ;;  %v3434_v0 = vadd.f32 0.2548296, %v3402_v28  ;;  %v3116_v62 = vmul.f32 %v4501_v44, %v3052_v35  ;;  %v5843_v28 = vld [vmem:[#allocation2 + $0x57] sm:$0xff] }
 0x223   : > { %v3720_v12 = vsub.f32 0.0, %v3656_v19  ;;  %v3467_v39 = vmul.f32 %v3435_v24, %v5780_v23  ;;  %v4505_v10 = vpop.eup %4504  ;;  %vm3690_vm4 = vcmp.ge.f32.partialorder %v5686_v36, 0.0  ;;  %v3117_v47 = vmul.f32 %v4503_v5, %v5796_v55 }
 0x224   : > { %v3721_v22 = vsub.f32 0.0, %v3657_v34  ;;  %v2518_v46 = vadd.f32 %v2486_v3, %v2448_v9  ;;  %v2519_v51 = vadd.f32 %v2487_v63, %v2449_v42  ;;  %v3466_v50 = vmul.f32 %v3434_v0, %v5788_v41  ;;  %v4507_v61 = vpop.eup %4506  ;;  %v5857_v9 = vld [vmem:[#allocation2 + $0x5f] sm:$0xff] }
 0x225   : > { %v3752_v43 = vsel %vm3688_vm0, %v3656_v19, %v3720_v12  ;;  %v3627_v2 = vmul.f32 %v4505_v10, %v3467_v39  ;;  %v3148_v35 = vsub.f32 2.0, %v3116_v62  ;;  %v3149_v16 = vsub.f32 2.0, %v3117_v47 }
 0x226   : > { %v3753_v59 = vsel %vm3689_vm2, %v3657_v34, %v3721_v22  ;;  %v3784_v54 = vadd.f32 1.0, %v3752_v43  ;;  %v2553_v19 = vmul.f32 %v5803_v58, %v5727_v18  ;;  %v3626_v55 = vmul.f32 %v4507_v61, %v3466_v50  ;;  %v5870_v43 = vld [vmem:[#allocation2 + $0x59] sm:$0xff]  ;;  %v5878_v50 = vld [vmem:[#allocation2 + $0x61] sm:$0xff] }
 0x227   : > { %v3785_v23 = vadd.f32 1.0, %v3753_v59  ;;  %v3659_v3 = vsub.f32 1.0, %v3627_v2  ;;  %v3570_v63 = vmul.f32 1.442695, %v3533_v53  ;;  %v5849_v34 = vmul.f32 %v4501_v44, %v3148_v35 }
 0x228   : > { %v3816_v40 = vmul.f32 %v3784_v54, %v5717_v49  ;;  %v5851_v41 = vmul.f32 %v4503_v5, %v3149_v16  ;;  %vm5853_vm6 = vcmp.ne.s32.totalorder %v1538_v52, 0  ;;  %v2589_v12 = vmul.f32 %v5582_v13, %v2553_v19  ;;  %v5860_v49 = vld [vmem:[#allocation2 + $0x58] sm:$0xff]  ;;  %v5866_v5 = vld [vmem:[#allocation2 + $0x60] sm:$0xff] }
 0x229   : > { %v3817_v32 = vmul.f32 %v3785_v23, %v5723_v7  ;;  %v3658_v42 = vsub.f32 1.0, %v3626_v55  ;;  %v3723_v22 = vsub.f32 0.0, %v3659_v3  ;;  %v2620_v0 = vadd.f32 %v2588_v27, %v2518_v46 }
 0x22a   : > { %v2654_v7 = vmul.f32 %v5671_v8, %v5843_v28  ;;  %v3212_v53 = vmul.f32 1.0614054, %v5849_v34  ;;  %v3213_v52 = vmul.f32 1.0614054, %v5851_v41  ;;  %v2621_v39 = vadd.f32 %v2589_v12, %v2519_v51 }
 0x22b   : > { %v3848_v44 = vpack.c.bf16 %v3817_v32, %v3816_v40  ;;  %v3722_v62 = vsub.f32 0.0, %v3658_v42  ;;  %v3755_v10 = vsel %vm3691_vm3, %v3659_v3, %v3723_v22  ;;  %v2691_v27 = vmul.f32 %v5590_v29, %v5857_v9  ;;  %v5875_v8 = vpop.eup %4508 }
 0x22c   : > { %v2690_v47 = vmul.f32 %v5590_v29, %v2654_v7  ;;  %v3787_v46 = vadd.f32 1.0, %v3755_v10  ;;  %v3244_v59 = vadd.f32 -1.4531521, %v3212_v53  ;;  %v3245_v54 = vadd.f32 -1.4531521, %v3213_v52 }
 0x22d   : > { %4317 = vmatprep.mubr.msk.bf16.mxu1 %vm199_vm5, %v3848_v44  ;;  %v2760_v6 = vmul.f32 %v5623_v14, %v5860_v49  ;;  %v3754_v51 = vsel %vm3690_vm4, %v3658_v42, %v3722_v62  ;;  %v2723_v61 = vadd.f32 %v2691_v27, %v2621_v39  ;;  %v2761_v23 = vmul.f32 %v5623_v14, %v5866_v5 }
 0x22e   : > { %v2722_v2 = vadd.f32 %v2690_v47, %v2620_v0  ;;  %v3786_v35 = vadd.f32 1.0, %v3754_v51  ;;  %v3819_v16 = vmul.f32 %v3787_v46, %v5733_v20  ;;  %v3276_v19 = vmul.f32 %v3244_v59, %v5849_v34 }
 0x22f   : > { %v3277_v40 = vmul.f32 %v3245_v54, %v5851_v41  ;;  %v2793_v3 = vadd.f32 %v2761_v23, %v2723_v61  ;;  %v2827_v32 = vmul.f32 %v5803_v58, %v5878_v50  ;;  %v2862_v36 = vmul.f32 %v5614_v38, %v5870_v43 }
 0x230   : > { %v2792_v55 = vadd.f32 %v2760_v6, %v2722_v2  ;;  %v3818_v12 = vmul.f32 %v3786_v35, %v5739_v1  ;;  %v3308_v42 = vadd.f32 1.4214138, %v3276_v19  ;;  %v1441_v0 = vadd.s32 72, %v5413_v31 }
 0x231   : > { %v3309_v22 = vadd.f32 1.4214138, %v3277_v40  ;;  %v2184_v20 = vmul.f32 %v5503_v15, %v5735_v21  ;;  %4510 = vpow2.f32 %v3570_v63  ;;  %v2863_v7 = vmul.f32 %v5614_v38, %v2827_v32 }
 0x232   : > { %v5898_v44 = vadd.f32 %v2862_v36, %v2792_v55  ;;  %v3849_v53 = vpack.c.bf16 %v3819_v16, %v3818_v12  ;;  %v3340_v58 = vmul.f32 %v3308_v42, %v5849_v34  ;;  %v1531_v39 = vand.u32 15, %v1441_v0 }
 0x233   : > { %v3341_v52 = vmul.f32 %v3309_v22, %v5851_v41  ;;  %v2117_v1 = vmul.f32 %v5497_v11, %v5719_v30  ;;  %v7368_v62 = vmov 0.0   ;;  %v5909_v21 = vadd.f32 %v2863_v7, %v2793_v3 }
 0x234   : > { %v5907_v10 = vsel %vm5853_vm6, 1.0, %v7368_v62  ;;  %v5912_v63 = vmul.f32 0.70710677, %v5898_v44  ;;  %4318 = vmatmul.mubr.msk.bf16.vlgmr.msra.gmra.mrb[0].mxu1 %vm199_vm5, %v3849_v53  ;;  %v2185_v47 = vmul.f32 %v5503_v15, %v5729_v33  ;;  %v2216_v27 = vadd.f32 %v2184_v20, %v5809_v45 }
 0x235   : > { %v3372_v46 = vadd.f32 -0.28449672, %v3340_v58  ;;  %v3373_v59 = vadd.f32 -0.28449672, %v3341_v52  ;;  %v2316_v30 = vmul.f32 %v5531_v17, %v5744_v25  ;;  %v5921_v24 = vmul.f32 0.70710677, %v5909_v21 }
 0x236   : > { %v5924_v54 = vand.u32 2147483647, %v5912_v63  ;;  %v2082_v33 = vmul.f32 %v5907_v10, %v5843_v28  ;;  %vm1953_vm7 = vcmp.ne.s32.totalorder %v1531_v39, 15  ;;  %v2217_v25 = vadd.f32 %v2185_v47, %v2117_v1 }
 0x237   : > { %v3404_v6 = vmul.f32 %v3372_v46, %v5849_v34  ;;  %v3405_v51 = vmul.f32 %v3373_v59, %v5851_v41  ;;  %v5931_v45 = vand.u32 2147483647, %v5921_v24  ;;  %v2348_v61 = vadd.f32 %v2316_v30, %v2216_v27  ;;  %v5960_v27 = vld [vmem:[#allocation2 + $0x67] sm:$0xff] }
 0x238   : > { %v3022_v2 = vmul.f32 0.3275911, %v5924_v54  ;;  %v2119_v16 = vmul.f32 %v5497_v11, %v5857_v9  ;;  %v4213_v55 = vsel %vm1953_vm7, 1.0, %v7368_v62  ;;  %v2118_v36 = vmul.f32 %v5497_v11, %v2082_v33 }
 0x239   : > { %v3436_v23 = vadd.f32 0.2548296, %v3404_v6  ;;  %v3437_v35 = vadd.f32 0.2548296, %v3405_v51  ;;  %v3023_v19 = vmul.f32 0.3275911, %v5931_v45  ;;  %v2186_v12 = vmul.f32 %v5503_v15, %v5860_v49 }
 0x23a   : > { %v3054_v40 = vadd.f32 1.0, %v3022_v2  ;;  %v2187_v22 = vmul.f32 %v5503_v15, %v5866_v5  ;;  %v2382_v0 = vmul.f32 %v5758_v57, %v5843_v28  ;;  %v2924_v58 = vmul.f32 0.5, %v5767_v26 }
 0x23b   : > { %v3468_v3 = vmul.f32 %v3436_v23, %v5849_v34  ;;  %v3469_v32 = vmul.f32 %v3437_v35, %v5851_v41  ;;  %v4511_v42 = vpop.eup %4510  ;;  %v3055_v20 = vadd.f32 1.0, %v3023_v19  ;;  %v1444_v34 = vadd.s32 96, %v5413_v31 }
 0x23c   : > { %4512 = vrcp.f32 %v3054_v40  ;;  %v2281_v41 = vmul.f32 %v4213_v55, %v5727_v18  ;;  %v2925_v52 = vmul.f32 0.5, %v5763_v60  ;;  %vm3692_vm8 = vcmp.ge.f32.partialorder %v5774_v48, 0.0 }
 0x23d   : > { %v3628_v7 = vmul.f32 %v5875_v8, %v3468_v3  ;;  %v3629_v53 = vmul.f32 %v4511_v42, %v3469_v32  ;;  %4514 = vrcp.f32 %v3055_v20  ;;  %vm3693_vm9 = vcmp.ge.f32.partialorder %v5777_v37, 0.0  ;;  %v5977_v3 = vld [vmem:[#allocation2 + $0x6f] sm:$0xff] }
 0x23e   : > { %v5954_v28 = vadd.f32 %v2186_v12, %v2118_v36  ;;  %v5956_v47 = vadd.f32 %v2187_v22, %v2119_v16  ;;  %v2419_v8 = vmul.f32 %v5568_v56, %v5857_v9  ;;  %v2317_v18 = vmul.f32 %v5531_v17, %v2281_v41  ;;  %v5992_v41 = vld [vmem:[#allocation2 + $0x69] sm:$0xff] }
 0x23f   : > { %v3660_v39 = vsub.f32 1.0, %v3628_v7  ;;  %v3661_v1 = vsub.f32 1.0, %v3629_v53  ;;  %v2418_v60 = vmul.f32 %v5568_v56, %v2382_v0  ;;  %v2488_v59 = vmul.f32 %v5571_v4, %v5860_v49  ;;  %v5990_v0 = vld [vmem:[#allocation2 + $0x70] sm:$0xff] }
 0x240   : > { %v1552_v30 = vand.u32 15, %v1444_v34  ;;  %v2489_v6 = vmul.f32 %v5571_v4, %v5866_v5  ;;  %v2349_v51 = vadd.f32 %v2317_v18, %v2217_v25  ;;  %v2555_v2 = vmul.f32 %v4213_v55, %v5878_v50  ;;  %v5979_v5 = vld [vmem:[#allocation2 + $0x68] sm:$0xff]  ;;  %v5981_v25 = vld [vmem:[#allocation2 + $0x71] sm:$0xff] }
 0x241   : > { %v3724_v26 = vsub.f32 0.0, %v3660_v39  ;;  %v3725_v46 = vsub.f32 0.0, %v3661_v1  ;;  %v2450_v33 = vadd.f32 %v2418_v60, %v2348_v61  ;;  %v2590_v35 = vmul.f32 %v5582_v13, %v5870_v43 }
 0x242   : > { %v2656_v49 = vmul.f32 %v5758_v57, %v5960_v27  ;;  %v2451_v61 = vadd.f32 %v2419_v8, %v2349_v51  ;;  %v3502_v32 = vsub.f32 0.0, %v5924_v54  ;;  %vm5984_vm10 = vcmp.ne.s32.totalorder %v1552_v30, 0 }
 0x243   : > { %v3756_v9 = vsel %vm3692_vm8, %v3660_v39, %v3724_v26  ;;  %v3757_v23 = vsel %vm3693_vm9, %v3661_v1, %v3725_v46  ;;  %v2520_v48 = vadd.f32 %v2488_v59, %v2450_v33  ;;  %v2591_v36 = vmul.f32 %v5582_v13, %v2555_v2 }
 0x244   : > { %v3788_v16 = vadd.f32 1.0, %v3756_v9  ;;  %v3789_v19 = vadd.f32 1.0, %v3757_v23  ;;  %v2692_v57 = vmul.f32 %v5590_v29, %v2656_v49  ;;  %v2521_v7 = vadd.f32 %v2489_v6, %v2451_v61 }
 0x245   : > { %v2622_v53 = vadd.f32 %v2590_v35, %v2520_v48  ;;  %v2693_v39 = vmul.f32 %v5590_v29, %v5977_v3  ;;  %v2762_v1 = vmul.f32 %v5623_v14, %v5979_v5  ;;  %v2829_v8 = vmul.f32 %v4213_v55, %v5981_v25 }
 0x246   : > { %v4513_v12 = vpop.eup %4512  ;;  %v3820_v42 = vmul.f32 %v3788_v16, %v2924_v58  ;;  %v3821_v22 = vmul.f32 %v3789_v19, %v2925_v52  ;;  %v2623_v26 = vadd.f32 %v2591_v36, %v2521_v7  ;;  %v1443_v52 = vadd.s32 88, %v5413_v31 }
 0x247   : > { %v3118_v34 = vmul.f32 %v4513_v12, %v3054_v40  ;;  %v4515_v18 = vpop.eup %4514  ;;  %v2724_v58 = vadd.f32 %v2692_v57, %v2622_v53  ;;  %v3503_v40 = vsub.f32 0.0, %v5931_v45  ;;  %v2763_v30 = vmul.f32 %v5623_v14, %v5990_v0 }
 0x248   : > { %v3850_v60 = vpack.c.bf16 %v3821_v22, %v3820_v42  ;;  %v3119_v46 = vmul.f32 %v4515_v18, %v3055_v20  ;;  %v2725_v6 = vadd.f32 %v2693_v39, %v2623_v26  ;;  %v2864_v55 = vmul.f32 %v5614_v38, %v5992_v41 }
 0x249   : > { %v3150_v59 = vsub.f32 2.0, %v3118_v34  ;;  %v2794_v51 = vadd.f32 %v2762_v1, %v2724_v58  ;;  %v1545_v33 = vand.u32 15, %v1443_v52  ;;  %v3534_v23 = vmul.f32 %v3502_v32, %v5924_v54 }
 0x24a   : > { %4321 = vmatprep.mubr.msk.bf16.mxu1 %vm199_vm5, %v3850_v60  ;;  %v3151_v2 = vsub.f32 2.0, %v3119_v46  ;;  %v6012_v20 = vsel %vm5984_vm10, 1.0, %v7368_v62  ;;  %v2795_v35 = vadd.f32 %v2763_v30, %v2725_v6  ;;  %v2865_v49 = vmul.f32 %v5614_v38, %v2829_v8 }
 0x24b   : > { %v6006_v9 = vmul.f32 %v4513_v12, %v3150_v59  ;;  %v6015_v16 = vadd.f32 %v2864_v55, %v2794_v51  ;;  %vm1955_vm11 = vcmp.ne.s32.totalorder %v1545_v33, 15  ;;  %v2318_v19 = vmul.f32 %v5531_v17, %v5870_v43 }
 0x24c   : > { %v6019_v61 = vmul.f32 %v4515_v18, %v3151_v2  ;;  %v3535_v54 = vmul.f32 %v3503_v40, %v5931_v45  ;;  %v2084_v32 = vmul.f32 %v6012_v20, %v5960_v27  ;;  %v6025_v37 = vadd.f32 %v2865_v49, %v2795_v35 }
 0x24d   : > { %v3214_v48 = vmul.f32 1.0614054, %v6006_v9  ;;  %v6028_v36 = vmul.f32 0.70710677, %v6015_v16  ;;  %v6031_v38 = vsel %vm1955_vm11, 1.0, %v7368_v62  ;;  %v2350_v57 = vadd.f32 %v2318_v19, %v5954_v28 }
 0x24e   : > { %v3215_v43 = vmul.f32 1.0614054, %v6019_v61  ;;  %v1446_v42 = vadd.s32 112, %v5413_v31  ;;  %v3572_v22 = vmul.f32 1.442695, %v3534_v23  ;;  %v2121_v45 = vmul.f32 %v5497_v11, %v5977_v3 }
 0x24f   : > { %v3246_v12 = vadd.f32 -1.4531521, %v3214_v48  ;;  %v6039_v7 = vmul.f32 0.70710677, %v6025_v37  ;;  %v6042_v53 = vand.u32 2147483647, %v6028_v36  ;;  %v2283_v28 = vmul.f32 %v6031_v38, %v5878_v50 }
 0x250   : > { %v3247_v34 = vadd.f32 -1.4531521, %v3215_v43  ;;  %v3574_v1 = vmul.f32 1.442695, %v3535_v54  ;;  %v6048_v8 = vmul.f32 0.5, %v5898_v44  ;;  %v2120_v18 = vmul.f32 %v5497_v11, %v2084_v32  ;;  %v6079_v32 = vld [vmem:[#allocation2 + $0x77] sm:$0xff] }
 0x251   : > { %v3278_v39 = vmul.f32 %v3246_v12, %v6006_v9  ;;  %v6052_v60 = vand.u32 2147483647, %v6039_v7  ;;  %v3024_v26 = vmul.f32 0.3275911, %v6042_v53  ;;  %v1566_v46 = vand.u32 15, %v1446_v42 }
 0x252   : > { %v3279_v58 = vmul.f32 %v3247_v34, %v6019_v61  ;;  %v2319_v59 = vmul.f32 %v5531_v17, %v2283_v28  ;;  %4516 = vpow2.f32 %v3572_v22  ;;  %v2384_v50 = vmul.f32 %v5907_v10, %v5960_v27 }
 0x253   : > { %v3310_v52 = vadd.f32 1.4214138, %v3278_v39  ;;  %v3025_v44 = vmul.f32 0.3275911, %v6052_v60  ;;  %v3056_v40 = vadd.f32 1.0, %v3024_v26  ;;  %4518 = vpow2.f32 %v3574_v1  ;;  %v6096_v26 = vld [vmem:[#allocation2 + $0x7f] sm:$0xff] }
 0x254   : > { %v3311_v30 = vadd.f32 1.4214138, %v3279_v58  ;;  %v2351_v51 = vadd.f32 %v2319_v59, %v5956_v47  ;;  %v6063_v55 = vmul.f32 0.5, %v5909_v21  ;;  %v2188_v33 = vmul.f32 %v5503_v15, %v5979_v5  ;;  %v6103_v59 = vld [vmem:[#allocation2 + $0x78] sm:$0xff] }
 0x255   : > { %v3342_v6 = vmul.f32 %v3310_v52, %v6006_v9  ;;  %v6067_v2 = vadd.f32 1.0, %v3025_v44  ;;  %4520 = vrcp.f32 %v3056_v40  ;;  %v2421_v35 = vmul.f32 %v5568_v56, %v5977_v3 }
 0x256   : > { %v3343_v27 = vmul.f32 %v3311_v30, %v6019_v61  ;;  %vm1862_vm12 = vcmp.ne.s32.totalorder %v1566_v46, 0  ;;  %v2189_v49 = vmul.f32 %v5503_v15, %v5990_v0  ;;  %v2220_v47 = vadd.f32 %v2188_v33, %v2120_v18 }
 0x257   : > { %v3374_v23 = vadd.f32 -0.28449672, %v3342_v6  ;;  %4522 = vrcp.f32 %v6067_v2  ;;  %v2420_v21 = vmul.f32 %v5568_v56, %v2384_v50  ;;  %v2491_v54 = vmul.f32 %v5571_v4, %v5990_v0  ;;  %v6105_v50 = vld [vmem:[#allocation2 + $0x81] sm:$0xff] }
 0x258   : > { %v3375_v19 = vadd.f32 -0.28449672, %v3343_v27  ;;  %v2453_v43 = vadd.f32 %v2421_v35, %v2351_v51  ;;  %v2320_v3 = vmul.f32 %v5531_v17, %v5992_v41  ;;  %v2490_v12 = vmul.f32 %v5571_v4, %v5979_v5  ;;  %v6114_v27 = vld [vmem:[#allocation2 + $0x80] sm:$0xff] }
 0x259   : > { %v3406_v48 = vmul.f32 %v3374_v23, %v6006_v9  ;;  %v6086_v42 = vsel %vm1862_vm12, 1.0, %v7368_v62  ;;  %v2452_v22 = vadd.f32 %v2420_v21, %v2350_v57  ;;  %v2557_v0 = vmul.f32 %v6031_v38, %v5981_v25  ;;  %v6116_v23 = vld [vmem:[#allocation2 + $0x79] sm:$0xff] }
 0x25a   : > { %v3407_v34 = vmul.f32 %v3375_v19, %v6019_v61  ;;  %v2523_v1 = vadd.f32 %v2491_v54, %v2453_v43  ;;  %vm3694_vm13 = vcmp.ge.f32.partialorder %v5912_v63, 0.0  ;;  %v6092_v28 = vadd.f32 %v2189_v49, %v2121_v45 }
 0x25b   : > { %v3438_v39 = vadd.f32 0.2548296, %v3406_v48  ;;  %v2592_v18 = vmul.f32 %v5582_v13, %v5992_v41  ;;  %v2522_v5 = vadd.f32 %v2490_v12, %v2452_v22  ;;  %v2658_v57 = vmul.f32 %v5907_v10, %v6079_v32 }
 0x25c   : > { %v3439_v58 = vadd.f32 0.2548296, %v3407_v34  ;;  %v6101_v46 = vadd.f32 %v2320_v3, %v2220_v47  ;;  %v2593_v45 = vmul.f32 %v5582_v13, %v2557_v0  ;;  %v4517_v44 = vpop.eup %4516  ;;  %vm3695_vm14 = vcmp.ge.f32.partialorder %v5921_v24, 0.0 }
 0x25d   : > { %v3470_v52 = vmul.f32 %v3438_v39, %v6006_v9  ;;  %v3504_v41 = vsub.f32 0.0, %v6042_v53  ;;  %v2086_v30 = vmul.f32 %v6086_v42, %v6079_v32  ;;  %v2624_v10 = vadd.f32 %v2592_v18, %v2522_v5  ;;  %v4519_v9 = vpop.eup %4518 }
 0x25e   : > { %v2694_v6 = vmul.f32 %v5590_v29, %v2658_v57  ;;  %v3471_v51 = vmul.f32 %v3439_v58, %v6019_v61  ;;  %v2625_v35 = vadd.f32 %v2593_v45, %v2523_v1  ;;  %v2695_v49 = vmul.f32 %v5590_v29, %v6096_v26  ;;  %v6130_v1 = vld [vmem:[%s7327_s2 + $0x8] ss:$0 sm:$0xff] }
 0x25f   : > { %v3630_v33 = vmul.f32 %v4517_v44, %v3470_v52  ;;  %v4521_v47 = vpop.eup %4520  ;;  %v3505_v21 = vsub.f32 0.0, %v6052_v60  ;;  %v2764_v48 = vmul.f32 %v5623_v14, %v6103_v59  ;;  %v2831_v54 = vmul.f32 %v6031_v38, %v6105_v50 }
 0x260   : > { %v2726_v19 = vadd.f32 %v2694_v6, %v2624_v10  ;;  %v3631_v61 = vmul.f32 %v4519_v9, %v3471_v51  ;;  %v3120_v3 = vmul.f32 %v4521_v47, %v3056_v40  ;;  %v2727_v12 = vadd.f32 %v2695_v49, %v2625_v35 }
 0x261   : > { %v3662_v43 = vsub.f32 1.0, %v3630_v33  ;;  %v4523_v22 = vpop.eup %4522  ;;  %v2765_v34 = vmul.f32 %v5623_v14, %v6114_v27  ;;  %v2866_v0 = vmul.f32 %v6130_v1, %v6116_v23  ;;  %v1445_v18 = vadd.s32 104, %v5413_v31 }
 0x262   : > { %v2796_v39 = vadd.f32 %v2764_v48, %v2726_v19  ;;  %v3663_v38 = vsub.f32 1.0, %v3631_v61  ;;  %v3121_v40 = vmul.f32 %v4523_v22, %v6067_v2  ;;  %v3152_v57 = vsub.f32 2.0, %v3120_v3 }
 0x263   : > { %v3726_v5 = vsub.f32 0.0, %v3662_v43  ;;  %v3536_v58 = vmul.f32 %v3504_v41, %v6042_v53  ;;  %v2797_v52 = vadd.f32 %v2765_v34, %v2727_v12  ;;  %v2867_v45 = vmul.f32 %v6130_v1, %v2831_v54 }
 0x264   : > { %v6138_v44 = vadd.f32 %v2866_v0, %v2796_v39  ;;  %v3727_v10 = vsub.f32 0.0, %v3663_v38  ;;  %v3153_v9 = vsub.f32 2.0, %v3121_v40  ;;  %v6142_v51 = vmul.f32 %v4521_v47, %v3152_v57 }
 0x265   : > { %v3758_v6 = vsel %vm3694_vm13, %v3662_v43, %v3726_v5  ;;  %v3537_v35 = vmul.f32 %v3505_v21, %v6052_v60  ;;  %v6145_v49 = vadd.f32 %v2867_v45, %v2797_v52  ;;  %v1559_v63 = vand.u32 15, %v1445_v18 }
 0x266   : > { %v3790_v33 = vadd.f32 1.0, %v3758_v6  ;;  %v6148_v2 = vmul.f32 0.70710677, %v6138_v44  ;;  %v3759_v53 = vsel %vm3695_vm14, %v3663_v38, %v3727_v10  ;;  %v6152_v41 = vmul.f32 %v4523_v22, %v3153_v9 }
 0x267   : > { %v3216_v19 = vmul.f32 1.0614054, %v6142_v51  ;;  %v3791_v48 = vadd.f32 1.0, %v3759_v53  ;;  %v3576_v54 = vmul.f32 1.442695, %v3536_v58  ;;  %v2123_v43 = vmul.f32 %v5497_v11, %v6096_v26 }
 0x268   : > { %v3822_v47 = vmul.f32 %v3790_v33, %v6048_v8  ;;  %v6157_v61 = vmul.f32 0.70710677, %v6145_v49  ;;  %v3217_v60 = vmul.f32 1.0614054, %v6152_v41  ;;  %v6163_v24 = vand.u32 2147483647, %v6148_v2 }
 0x269   : > { %v3248_v21 = vadd.f32 -1.4531521, %v3216_v19  ;;  %v3823_v3 = vmul.f32 %v3791_v48, %v6063_v55  ;;  %v3578_v12 = vmul.f32 1.442695, %v3537_v35  ;;  %v1448_v8 = vadd.s32 128, %v5413_v31 }
 0x26a   : > { %v6167_v22 = vand.u32 2147483647, %v6157_v61  ;;  %v3249_v34 = vadd.f32 -1.4531521, %v3217_v60  ;;  %v3026_v0 = vmul.f32 0.3275911, %v6163_v24  ;;  %v2122_v38 = vmul.f32 %v5497_v11, %v2086_v30 }
 0x26b   : > { %v3280_v39 = vmul.f32 %v3248_v21, %v6142_v51  ;;  %vm1957_vm15 = vcmp.ne.s32.totalorder %v1559_v63, 15  ;;  %v3851_v18 = vpack.c.bf16 %v3823_v3, %v3822_v47  ;;  %v2191_v5 = vmul.f32 %v5503_v15, %v6114_v27 }
 0x26c   : > { %v3027_v55 = vmul.f32 0.3275911, %v6167_v22  ;;  %v3281_v40 = vmul.f32 %v3249_v34, %v6152_v41  ;;  %4524 = vpow2.f32 %v3576_v54  ;;  %v3058_v58 = vadd.f32 1.0, %v3026_v0 }
 0x26d   : > { %v3312_v57 = vadd.f32 1.4214138, %v3280_v39  ;;  %4322 = vmatmul.mubr.msk.bf16.gmra.mrb[4].mxu1 %vm199_vm5, %v3851_v18  ;;  %4526 = vpow2.f32 %v3578_v12  ;;  %v1580_v45 = vand.u32 15, %v1448_v8  ;;  %v4215_v10 = vsel %vm1957_vm15, 1.0, %v7368_v62  ;;  %v6221_v18 = vld [vmem:[#allocation2 + $0x8f] sm:$0xff] }
 0x26e   : > { %v6178_v52 = vadd.f32 1.0, %v3027_v55  ;;  %v3313_v6 = vadd.f32 1.4214138, %v3281_v40  ;;  %v2386_v9 = vmul.f32 %v6012_v20, %v6079_v32  ;;  %4528 = vrcp.f32 %v3058_v58 }
 0x26f   : > { %v3344_v30 = vmul.f32 %v3312_v57, %v6142_v51  ;;  %v6185_v33 = vmul.f32 0.5, %v6015_v16  ;;  %v2190_v35 = vmul.f32 %v5503_v15, %v6103_v59  ;;  %v6189_v53 = vadd.f32 %v2191_v5, %v2123_v43  ;;  %v6210_v43 = vld [vmem:[#allocation2 + $0x87] sm:$0xff] }
 0x270   : > { %4530 = vrcp.f32 %v6178_v52  ;;  %v6193_v19 = vmul.f32 0.5, %v6025_v37  ;;  %v3345_v63 = vmul.f32 %v3313_v6, %v6152_v41  ;;  %v2285_v47 = vmul.f32 %v4215_v10, %v5981_v25  ;;  %v6239_v6 = vld [vmem:[#allocation2 + $0x91] sm:$0xff] }
 0x271   : > { %v3376_v48 = vadd.f32 -0.28449672, %v3344_v30  ;;  %v6197_v32 = vadd.f32 %v2190_v35, %v2122_v38  ;;  %v6201_v16 = vmul.f32 %v5531_v17, %v6116_v23  ;;  %v2423_v54 = vmul.f32 %v5568_v56, %v6096_v26 }
 0x272   : > { %vm6205_vm0 = vcmp.ne.s32.totalorder %v1580_v45, 0  ;;  %v3377_v37 = vadd.f32 -0.28449672, %v3345_v63  ;;  %v2321_v25 = vmul.f32 %v5531_v17, %v2285_v47  ;;  %v2422_v3 = vmul.f32 %v5568_v56, %v2386_v9 }
 0x273   : > { %v3408_v21 = vmul.f32 %v3376_v48, %v6142_v51  ;;  %v2492_v12 = vmul.f32 %v5571_v4, %v6103_v59  ;;  %v2493_v8 = vmul.f32 %v5571_v4, %v6114_v27  ;;  %v3506_v26 = vsub.f32 0.0, %v6163_v24 }
 0x274   : > { %v3507_v34 = vsub.f32 0.0, %v6167_v22  ;;  %v3409_v39 = vmul.f32 %v3377_v37, %v6152_v41  ;;  %v2353_v38 = vadd.f32 %v2321_v25, %v6092_v28  ;;  %v2454_v5 = vadd.f32 %v2422_v3, %v6101_v46  ;;  %v6237_v46 = vld [vmem:[#allocation2 + $0x88] sm:$0xff]  ;;  %v6248_v37 = vld [vmem:[#allocation2 + $0x90] sm:$0xff] }
 0x275   : > { %v3440_v0 = vadd.f32 0.2548296, %v3408_v21  ;;  %vm3696_vm2 = vcmp.ge.f32.partialorder %v6028_v36, 0.0  ;;  %v2594_v59 = vmul.f32 %v5582_v13, %v6116_v23  ;;  %v6231_v27 = vsel %vm6205_vm0, 1.0, %v7368_v62 }
 0x276   : > { %v2559_v55 = vmul.f32 %v4215_v10, %v6105_v50  ;;  %v2660_v40 = vmul.f32 %v6012_v20, %v6210_v43  ;;  %v4525_v57 = vpop.eup %4524  ;;  %v3441_v45 = vadd.f32 0.2548296, %v3409_v39  ;;  %v2455_v30 = vadd.f32 %v2423_v54, %v2353_v38  ;;  %v6250_v54 = vld [vmem:[#allocation2 + $0x89] sm:$0xff] }
 0x277   : > { %v3472_v28 = vmul.f32 %v3440_v0, %v6142_v51  ;;  %v2524_v23 = vadd.f32 %v2492_v12, %v2454_v5  ;;  %v4527_v9 = vpop.eup %4526  ;;  %vm3697_vm3 = vcmp.ge.f32.partialorder %v6039_v7, 0.0  ;;  %v3538_v35 = vmul.f32 %v3506_v26, %v6163_v24 }
 0x278   : > { %v3539_v63 = vmul.f32 %v3507_v34, %v6167_v22  ;;  %v2595_v48 = vmul.f32 %v5582_v13, %v2559_v55  ;;  %v2697_v20 = vmul.f32 %v5590_v29, %v6221_v18  ;;  %v4529_v47 = vpop.eup %4528  ;;  %v3473_v51 = vmul.f32 %v3441_v45, %v6152_v41 }
 0x279   : > { %v3632_v60 = vmul.f32 %v4525_v57, %v3472_v28  ;;  %v2525_v21 = vadd.f32 %v2493_v8, %v2455_v30  ;;  %v2626_v25 = vadd.f32 %v2594_v59, %v2524_v23  ;;  %v3122_v12 = vmul.f32 %v4529_v47, %v3058_v58 }
 0x27a   : > { %v4531_v3 = vpop.eup %4530  ;;  %v2696_v24 = vmul.f32 %v5590_v29, %v2660_v40  ;;  %v2766_v22 = vmul.f32 %v5623_v14, %v6237_v46  ;;  %v2833_v26 = vmul.f32 %v4215_v10, %v6239_v6  ;;  %v3633_v34 = vmul.f32 %v4527_v9, %v3473_v51 }
 0x27b   : > { %v3664_v39 = vsub.f32 1.0, %v3632_v60  ;;  %v3123_v41 = vmul.f32 %v4531_v3, %v6178_v52  ;;  %v2627_v0 = vadd.f32 %v2595_v48, %v2525_v21  ;;  %v3154_v38 = vsub.f32 2.0, %v3122_v12 }
 0x27c   : > { %v2728_v5 = vadd.f32 %v2696_v24, %v2626_v25  ;;  %v2767_v8 = vmul.f32 %v5623_v14, %v6248_v37  ;;  %v2868_v58 = vmul.f32 %v6130_v1, %v6250_v54  ;;  %v3665_v59 = vsub.f32 1.0, %v3633_v34 }
 0x27d   : > { %v3728_v55 = vsub.f32 0.0, %v3664_v39  ;;  %v3155_v40 = vsub.f32 2.0, %v3123_v41  ;;  %v2729_v57 = vadd.f32 %v2697_v20, %v2627_v0  ;;  %v6261_v45 = vmul.f32 %v4529_v47, %v3154_v38 }
 0x27e   : > { %v2798_v10 = vadd.f32 %v2766_v22, %v2728_v5  ;;  %v2869_v28 = vmul.f32 %v6130_v1, %v2833_v26  ;;  %v1447_v52 = vadd.s32 120, %v5413_v31  ;;  %v3729_v30 = vsub.f32 0.0, %v3665_v59 }
 0x27f   : > { %v3760_v23 = vsel %vm3696_vm2, %v3664_v39, %v3728_v55  ;;  %v6267_v9 = vmul.f32 %v4531_v3, %v3155_v40  ;;  %v2799_v48 = vadd.f32 %v2767_v8, %v2729_v57  ;;  %v3218_v60 = vmul.f32 1.0614054, %v6261_v45 }
 0x280   : > { %v3792_v51 = vadd.f32 1.0, %v3760_v23  ;;  %v2088_v20 = vmul.f32 %v6231_v27, %v6210_v43  ;;  %v6272_v47 = vadd.f32 %v2868_v58, %v2798_v10  ;;  %v3761_v21 = vsel %vm3697_vm3, %v3665_v59, %v3729_v30 }
 0x281   : > { %v3219_v25 = vmul.f32 1.0614054, %v6267_v9  ;;  %v3580_v12 = vmul.f32 1.442695, %v3538_v35  ;;  %v6277_v24 = vadd.f32 %v2869_v28, %v2799_v48  ;;  %v3793_v36 = vadd.f32 1.0, %v3761_v21 }
 0x282   : > { %v6281_v3 = vadd.f32 %v6201_v16, %v6197_v32  ;;  %v3250_v22 = vadd.f32 -1.4531521, %v3218_v60  ;;  %v3582_v26 = vmul.f32 1.442695, %v3539_v63  ;;  %v6284_v39 = vmul.f32 0.70710677, %v6272_v47 }
 0x283   : > { %v3251_v34 = vadd.f32 -1.4531521, %v3219_v25  ;;  %v1450_v41 = vadd.s32 144, %v5413_v31  ;;  %v1573_v7 = vand.u32 15, %v1447_v52  ;;  %v3824_v0 = vmul.f32 %v3792_v51, %v6185_v33 }
 0x284   : > { %v3825_v35 = vmul.f32 %v3793_v36, %v6193_v19  ;;  %v3282_v38 = vmul.f32 %v3250_v22, %v6261_v45  ;;  %v6291_v5 = vmul.f32 0.70710677, %v6277_v24  ;;  %v2124_v16 = vmul.f32 %v5497_v11, %v2088_v20 }
 0x285   : > { %v3283_v32 = vmul.f32 %v3251_v34, %v6267_v9  ;;  %v2192_v63 = vmul.f32 %v5503_v15, %v6237_v46  ;;  %v6298_v8 = vand.u32 2147483647, %v6284_v39  ;;  %4532 = vpow2.f32 %v3580_v12 }
 0x286   : > { %v3852_v58 = vpack.c.bf16 %v3825_v35, %v3824_v0  ;;  %v3314_v59 = vadd.f32 1.4214138, %v3282_v38  ;;  %v6301_v33 = vand.u32 2147483647, %v6291_v5  ;;  %v1594_v40 = vand.u32 15, %v1450_v41 }
 0x287   : > { %v3315_v19 = vadd.f32 1.4214138, %v3283_v32  ;;  %v3028_v55 = vmul.f32 0.3275911, %v6298_v8  ;;  %vm1959_vm4 = vcmp.ne.s32.totalorder %v1573_v7, 15  ;;  %4534 = vpow2.f32 %v3582_v26 }
 0x288   : > { %4325 = vmatprep.mubr.msk.bf16.mxu1 %vm199_vm5, %v3852_v58  ;;  %v3346_v57 = vmul.f32 %v3314_v59, %v6261_v45  ;;  %v2125_v10 = vmul.f32 %v5497_v11, %v6221_v18  ;;  %v3029_v28 = vmul.f32 0.3275911, %v6301_v33  ;;  %v2193_v30 = vmul.f32 %v5503_v15, %v6248_v37 }
 0x289   : > { %v3347_v52 = vmul.f32 %v3315_v19, %v6267_v9  ;;  %v2224_v23 = vadd.f32 %v2192_v63, %v2124_v16  ;;  %v3060_v48 = vadd.f32 1.0, %v3028_v55  ;;  %v2388_v60 = vmul.f32 %v6086_v42, %v6210_v43 }
 0x28a   : > { %v3378_v51 = vadd.f32 -0.28449672, %v3346_v57  ;;  %v6314_v20 = vadd.f32 1.0, %v3029_v28  ;;  %v4216_v21 = vsel %vm1959_vm4, 1.0, %v7368_v62  ;;  %v2324_v12 = vmul.f32 %v5531_v17, %v6250_v54 }
 0x28b   : > { %v3379_v25 = vadd.f32 -0.28449672, %v3347_v52  ;;  %4536 = vrcp.f32 %v3060_v48  ;;  %vm1866_vm6 = vcmp.ne.s32.totalorder %v1594_v40, 0  ;;  %v6320_v36 = vmul.f32 0.5, %v6138_v44 }
 0x28c   : > { %v6323_v22 = vmul.f32 0.5, %v6145_v49  ;;  %v3410_v26 = vmul.f32 %v3378_v51, %v6261_v45  ;;  %4538 = vrcp.f32 %v6314_v20  ;;  %v6328_v34 = vadd.f32 %v2193_v30, %v2125_v10  ;;  %v6338_v49 = vld [vmem:[#allocation2 + $0x97] sm:$0xff] }
 0x28d   : > { %v3411_v43 = vmul.f32 %v3379_v25, %v6267_v9  ;;  %v6330_v41 = vadd.f32 %v2324_v12, %v2224_v23  ;;  %v2287_v7 = vmul.f32 %v4216_v21, %v6105_v50  ;;  %v2425_v44 = vmul.f32 %v5568_v56, %v6221_v18  ;;  %v6361_v30 = vld [vmem:[#allocation2 + $0x98] sm:$0xff] }
 0x28e   : > { %v3442_v0 = vadd.f32 0.2548296, %v3410_v26  ;;  %v6336_v35 = vsel %vm1866_vm6, 1.0, %v7368_v62  ;;  %v2424_v38 = vmul.f32 %v5568_v56, %v2388_v60  ;;  %vm3698_vm7 = vcmp.ge.f32.partialorder %v6148_v2, 0.0  ;;  %v6368_v60 = vld [vmem:[#allocation2 + $0xa1] sm:$0xff]  ;;  %v6371_v26 = vld [vmem:[#allocation2 + $0x99] sm:$0xff] }
 0x28f   : > { %v3443_v32 = vadd.f32 0.2548296, %v3411_v43  ;;  %v2494_v16 = vmul.f32 %v5571_v4, %v6237_v46  ;;  %v3508_v63 = vsub.f32 0.0, %v6298_v8  ;;  %v2323_v50 = vmul.f32 %v5531_v17, %v2287_v7  ;;  %v4533_v58 = vpop.eup %4532  ;;  %v6354_v46 = vld [vmem:[#allocation2 + $0x9f] sm:$0xff] }
 0x290   : > { %v3474_v18 = vmul.f32 %v3442_v0, %v6261_v45  ;;  %vm3699_vm8 = vcmp.ge.f32.partialorder %v6157_v61, 0.0  ;;  %v2495_v59 = vmul.f32 %v5571_v4, %v6248_v37  ;;  %v2596_v19 = vmul.f32 %v5582_v13, %v6250_v54  ;;  %v6363_v54 = vld [vmem:[#allocation2 + $0xa0] sm:$0xff] }
 0x291   : > { %v2456_v55 = vadd.f32 %v2424_v38, %v6281_v3  ;;  %v3475_v40 = vmul.f32 %v3443_v32, %v6267_v9  ;;  %v2090_v57 = vmul.f32 %v6336_v35, %v6338_v49  ;;  %v2355_v10 = vadd.f32 %v2323_v50, %v6189_v53  ;;  %v4535_v28 = vpop.eup %4534 }
 0x292   : > { %v2561_v45 = vmul.f32 %v4216_v21, %v6239_v6  ;;  %v3634_v52 = vmul.f32 %v4533_v58, %v3474_v18  ;;  %v3509_v37 = vsub.f32 0.0, %v6301_v33  ;;  %v2662_v9 = vmul.f32 %v6086_v42, %v6338_v49 }
 0x293   : > { %v2526_v3 = vadd.f32 %v2494_v16, %v2456_v55  ;;  %v3635_v23 = vmul.f32 %v4535_v28, %v3475_v40  ;;  %v3540_v51 = vmul.f32 %v3508_v63, %v6298_v8  ;;  %v2457_v53 = vadd.f32 %v2425_v44, %v2355_v10 }
 0x294   : > { %v2597_v25 = vmul.f32 %v5582_v13, %v2561_v45  ;;  %v3666_v12 = vsub.f32 1.0, %v3634_v52  ;;  %v2698_v7 = vmul.f32 %v5590_v29, %v2662_v9  ;;  %v2699_v0 = vmul.f32 %v5590_v29, %v6354_v46 }
 0x295   : > { %v2628_v43 = vadd.f32 %v2596_v19, %v2526_v3  ;;  %v4537_v38 = vpop.eup %4536  ;;  %v3667_v32 = vsub.f32 1.0, %v3635_v23  ;;  %v2527_v42 = vadd.f32 %v2495_v59, %v2457_v53  ;;  %v2768_v8 = vmul.f32 %v5623_v14, %v6361_v30 }
 0x296   : > { %v2769_v44 = vmul.f32 %v5623_v14, %v6363_v54  ;;  %v4539_v16 = vpop.eup %4538  ;;  %v3730_v63 = vsub.f32 0.0, %v3666_v12  ;;  %v3124_v50 = vmul.f32 %v4537_v38, %v3060_v48  ;;  %v2835_v18 = vmul.f32 %v4216_v21, %v6368_v60 }
 0x297   : > { %v2730_v58 = vadd.f32 %v2698_v7, %v2628_v43  ;;  %v3731_v19 = vsub.f32 0.0, %v3667_v32  ;;  %v3125_v55 = vmul.f32 %v4539_v16, %v6314_v20  ;;  %v2629_v40 = vadd.f32 %v2597_v25, %v2527_v42 }
 0x298   : > { %v2870_v10 = vmul.f32 %v6130_v1, %v6371_v26  ;;  %v3762_v59 = vsel %vm3698_vm7, %v3666_v12, %v3730_v63  ;;  %v3156_v45 = vsub.f32 2.0, %v3124_v50  ;;  %v1449_v52 = vadd.s32 136, %v5413_v31 }
 0x299   : > { %v2800_v28 = vadd.f32 %v2768_v8, %v2730_v58  ;;  %v3763_v48 = vsel %vm3699_vm8, %v3667_v32, %v3731_v19  ;;  %v3794_v3 = vadd.f32 1.0, %v3762_v59  ;;  %v3157_v9 = vsub.f32 2.0, %v3125_v55 }
 0x29a   : > { %v2731_v21 = vadd.f32 %v2699_v0, %v2629_v40  ;;  %v3795_v23 = vadd.f32 1.0, %v3763_v48  ;;  %v6389_v53 = vmul.f32 %v4537_v38, %v3156_v45  ;;  %v3541_v20 = vmul.f32 %v3509_v37, %v6301_v33 }
 0x29b   : > { %v6392_v25 = vadd.f32 %v2870_v10, %v2800_v28  ;;  %v3826_v2 = vmul.f32 %v3794_v3, %v6320_v36  ;;  %v6395_v12 = vmul.f32 %v4539_v16, %v3157_v9  ;;  %v2871_v7 = vmul.f32 %v6130_v1, %v2835_v18 }
 0x29c   : > { %v2801_v43 = vadd.f32 %v2769_v44, %v2731_v21  ;;  %v3827_v61 = vmul.f32 %v3795_v23, %v6323_v22  ;;  %v3220_v32 = vmul.f32 1.0614054, %v6389_v53  ;;  %v1587_v38 = vand.u32 15, %v1449_v52 }
 0x29d   : > { %v6401_v0 = vmul.f32 0.70710677, %v6392_v25  ;;  %v3221_v42 = vmul.f32 1.0614054, %v6395_v12  ;;  %v3584_v33 = vmul.f32 1.442695, %v3540_v51  ;;  %v2126_v37 = vmul.f32 %v5497_v11, %v2090_v57 }
 0x29e   : > { %v6405_v8 = vadd.f32 %v2871_v7, %v2801_v43  ;;  %v3853_v36 = vpack.c.bf16 %v3827_v61, %v3826_v2  ;;  %v3252_v16 = vadd.f32 -1.4531521, %v3220_v32  ;;  %v1452_v63 = vadd.s32 160, %v5413_v31 }
 0x29f   : > { %v2998_v44 = vand.u32 2147483647, %v6401_v0  ;;  %v3253_v22 = vadd.f32 -1.4531521, %v3221_v42  ;;  %v3586_v50 = vmul.f32 1.442695, %v3541_v20  ;;  %v2194_v58 = vmul.f32 %v5503_v15, %v6361_v30 }
 0x2a0   : > { %v6412_v18 = vmul.f32 0.70710677, %v6405_v8  ;;  %4326 = vmatmul.mubr.msk.bf16.gmra.mrb[8].mxu1 %vm199_vm5, %v3853_v36  ;;  %v3284_v57 = vmul.f32 %v3252_v16, %v6389_v53  ;;  %v2127_v51 = vmul.f32 %v5497_v11, %v6354_v46  ;;  %vm1961_vm9 = vcmp.ne.s32.totalorder %v1587_v38, 15 }
 0x2a1   : > { %v3030_v19 = vmul.f32 0.3275911, %v2998_v44  ;;  %v3285_v55 = vmul.f32 %v3253_v22, %v6395_v12  ;;  %v2195_v40 = vmul.f32 %v5503_v15, %v6363_v54  ;;  %v2226_v10 = vadd.f32 %v2194_v58, %v2126_v37 }
 0x2a2   : > { %v6422_v59 = vand.u32 2147483647, %v6412_v18  ;;  %v3316_v45 = vadd.f32 1.4214138, %v3284_v57  ;;  %4540 = vpow2.f32 %v3584_v33  ;;  %v1608_v52 = vand.u32 15, %v1452_v63 }
 0x2a3   : > { %v3062_v28 = vadd.f32 1.0, %v3030_v19  ;;  %v3317_v48 = vadd.f32 1.4214138, %v3285_v55  ;;  %4542 = vpow2.f32 %v3586_v50  ;;  %v6426_v9 = vsel %vm1961_vm9, 1.0, %v7368_v62  ;;  %v6459_v50 = vld [vmem:[#allocation2 + $0xa7] sm:$0xff]  ;;  %v6471_v55 = vld [vmem:[#allocation2 + $0xaf] sm:$0xff] }
 0x2a4   : > { %v3031_v3 = vmul.f32 0.3275911, %v6422_v59  ;;  %v6429_v21 = vmul.f32 0.5, %v6272_v47  ;;  %v3348_v23 = vmul.f32 %v3316_v45, %v6389_v53  ;;  %v2326_v20 = vmul.f32 %v5531_v17, %v6371_v26 }
 0x2a5   : > { %4544 = vrcp.f32 %v3062_v28  ;;  %v3349_v2 = vmul.f32 %v3317_v48, %v6395_v12  ;;  %v2390_v43 = vmul.f32 %v6231_v27, %v6338_v49  ;;  %v3510_v61 = vsub.f32 0.0, %v2998_v44 }
 0x2a6   : > { %v6437_v7 = vadd.f32 1.0, %v3031_v3  ;;  %v6440_v32 = vmul.f32 0.5, %v6277_v24  ;;  %v3380_v38 = vadd.f32 -0.28449672, %v3348_v23  ;;  %vm1868_vm10 = vcmp.ne.s32.totalorder %v1608_v52, 0  ;;  %v6486_v23 = vld [vmem:[#allocation2 + $0xa8] sm:$0xff] }
 0x2a7   : > { %v2289_v47 = vmul.f32 %v6426_v9, %v6239_v6  ;;  %v3381_v42 = vadd.f32 -0.28449672, %v3349_v2  ;;  %v6444_v33 = vadd.f32 %v2195_v40, %v2127_v51  ;;  %v6446_v37 = vadd.f32 %v2326_v20, %v2226_v10  ;;  %v6488_v20 = vld [vmem:[#allocation2 + $0xb1] sm:$0xff] }
 0x2a8   : > { %4546 = vrcp.f32 %v6437_v7  ;;  %v3412_v49 = vmul.f32 %v3380_v38, %v6389_v53  ;;  %v2427_v36 = vmul.f32 %v5568_v56, %v6354_v46  ;;  %v2496_v24 = vmul.f32 %v5571_v4, %v6361_v30 }
 0x2a9   : > { %v2325_v16 = vmul.f32 %v5531_v17, %v2289_v47  ;;  %v3413_v63 = vmul.f32 %v3381_v42, %v6395_v12  ;;  %v3542_v6 = vmul.f32 %v3510_v61, %v2998_v44  ;;  %v6457_v22 = vsel %vm1868_vm10, 1.0, %v7368_v62  ;;  %v6490_v61 = vld [vmem:[#allocation2 + $0xb0] sm:$0xff] }
 0x2aa   : > { %v2426_v58 = vmul.f32 %v5568_v56, %v2390_v43  ;;  %v3444_v57 = vadd.f32 0.2548296, %v3412_v49  ;;  %v2497_v51 = vmul.f32 %v5571_v4, %v6363_v54  ;;  %v2598_v46 = vmul.f32 %v5582_v13, %v6371_v26  ;;  %v6495_v49 = vld [vmem:[#allocation2 + $0xa9] sm:$0xff] }
 0x2ab   : > { %v2357_v30 = vadd.f32 %v2325_v16, %v6328_v34  ;;  %v3445_v19 = vadd.f32 0.2548296, %v3413_v63  ;;  %vm3700_vm11 = vcmp.ge.f32.partialorder %v6284_v39, 0.0  ;;  %v6469_v44 = vmul.f32 0.5, %v6392_v25 }
 0x2ac   : > { %v2458_v40 = vadd.f32 %v2426_v58, %v6330_v41  ;;  %v2563_v10 = vmul.f32 %v6426_v9, %v6368_v60  ;;  %v4541_v45 = vpop.eup %4540  ;;  %v3476_v54 = vmul.f32 %v3444_v57, %v6389_v53  ;;  %vm3701_vm12 = vcmp.ge.f32.partialorder %v6291_v5, 0.0 }
 0x2ad   : > { %v2092_v34 = vmul.f32 %v6457_v22, %v6459_v50  ;;  %v2459_v26 = vadd.f32 %v2427_v36, %v2357_v30  ;;  %v2664_v25 = vmul.f32 %v6231_v27, %v6459_v50  ;;  %v4543_v52 = vpop.eup %4542  ;;  %v3477_v48 = vmul.f32 %v3445_v19, %v6395_v12 }
 0x2ae   : > { %v3511_v41 = vsub.f32 0.0, %v6422_v59  ;;  %v6484_v3 = vmul.f32 1.442695, %v3542_v6  ;;  %v2528_v53 = vadd.f32 %v2496_v24, %v2458_v40  ;;  %v3636_v43 = vmul.f32 %v4541_v45, %v3476_v54 }
 0x2af   : > { %v4545_v2 = vpop.eup %4544  ;;  %v2529_v38 = vadd.f32 %v2497_v51, %v2459_v26  ;;  %v2599_v47 = vmul.f32 %v5582_v13, %v2563_v10  ;;  %v2701_v27 = vmul.f32 %v5590_v29, %v6471_v55  ;;  %v3637_v12 = vmul.f32 %v4543_v52, %v3477_v48 }
 0x2b0   : > { %v3126_v42 = vmul.f32 %v4545_v2, %v3062_v28  ;;  %v2630_v36 = vadd.f32 %v2598_v46, %v2528_v53  ;;  %v2700_v16 = vmul.f32 %v5590_v29, %v2664_v25  ;;  %v3668_v63 = vsub.f32 1.0, %v3636_v43 }
 0x2b1   : > { %v2631_v6 = vadd.f32 %v2599_v47, %v2529_v38  ;;  %v2770_v24 = vmul.f32 %v5623_v14, %v6486_v23  ;;  %v2837_v58 = vmul.f32 %v6426_v9, %v6488_v20  ;;  %v3669_v51 = vsub.f32 1.0, %v3637_v12 }
 0x2b2   : > { %v4547_v57 = vpop.eup %4546  ;;  %v3158_v30 = vsub.f32 2.0, %v3126_v42  ;;  %v2732_v19 = vadd.f32 %v2700_v16, %v2630_v36  ;;  %v2771_v28 = vmul.f32 %v5623_v14, %v6490_v61  ;;  %v3732_v40 = vsub.f32 0.0, %v3668_v63 }
 0x2b3   : > { %v3127_v46 = vmul.f32 %v4547_v57, %v6437_v7  ;;  %v2733_v10 = vadd.f32 %v2701_v27, %v2631_v6  ;;  %v2872_v45 = vmul.f32 %v6130_v1, %v6495_v49  ;;  %v3733_v54 = vsub.f32 0.0, %v3669_v51 }
 0x2b4   : > { %v6507_v26 = vmul.f32 %v4545_v2, %v3158_v30  ;;  %v2802_v25 = vadd.f32 %v2770_v24, %v2732_v19  ;;  %v1451_v9 = vadd.s32 152, %v5413_v31  ;;  %v3764_v52 = vsel %vm3700_vm11, %v3668_v63, %v3732_v40 }
 0x2b5   : > { %v3159_v48 = vsub.f32 2.0, %v3127_v46  ;;  %v2803_v53 = vadd.f32 %v2771_v28, %v2733_v10  ;;  %v2873_v43 = vmul.f32 %v6130_v1, %v2837_v58  ;;  %v3765_v7 = vsel %vm3701_vm12, %v3669_v51, %v3733_v54 }
 0x2b6   : > { %v3796_v38 = vadd.f32 1.0, %v3764_v52  ;;  %v3222_v47 = vmul.f32 1.0614054, %v6507_v26  ;;  %v6516_v27 = vadd.f32 %v2872_v45, %v2802_v25  ;;  %v3797_v2 = vadd.f32 1.0, %v3765_v7 }
 0x2b7   : > { %v6518_v12 = vmul.f32 %v4547_v57, %v3159_v48  ;;  %v3543_v42 = vmul.f32 %v3511_v41, %v6422_v59  ;;  %v2905_v36 = vadd.f32 %v2873_v43, %v2803_v53  ;;  %v2129_v16 = vmul.f32 %v5497_v11, %v6471_v55 }
 0x2b8   : > { %v3254_v39 = vadd.f32 -1.4531521, %v3222_v47  ;;  %v6524_v63 = vmul.f32 0.70710677, %v6516_v27  ;;  %v1601_v5 = vand.u32 15, %v1451_v9  ;;  %v3828_v6 = vmul.f32 %v3796_v38, %v6429_v21 }
 0x2b9   : > { %v3829_v24 = vmul.f32 %v3797_v2, %v6440_v32  ;;  %v3223_v58 = vmul.f32 1.0614054, %v6518_v12  ;;  %v6529_v51 = vmul.f32 0.70710677, %v2905_v36  ;;  %v2128_v59 = vmul.f32 %v5497_v11, %v2092_v34 }
 0x2ba   : > { %v3286_v57 = vmul.f32 %v3254_v39, %v6507_v26  ;;  %v3000_v41 = vand.u32 2147483647, %v6524_v63  ;;  %v1454_v30 = vadd.s32 176, %v5413_v31  ;;  %v3590_v40 = vmul.f32 1.442695, %v3543_v42 }
 0x2bb   : > { %v3854_v19 = vpack.c.bf16 %v3829_v24, %v3828_v6  ;;  %v3255_v28 = vadd.f32 -1.4531521, %v3223_v58  ;;  %v3001_v46 = vand.u32 2147483647, %v6529_v51  ;;  %v2196_v32 = vmul.f32 %v5503_v15, %v6486_v23 }
 0x2bc   : > { %v3318_v21 = vadd.f32 1.4214138, %v3286_v57  ;;  %v2197_v10 = vmul.f32 %v5503_v15, %v6490_v61  ;;  %v3032_v45 = vmul.f32 0.3275911, %v3000_v41  ;;  %4548 = vpow2.f32 %v6484_v3 }
 0x2bd   : > { %4329 = vmatprep.mubr.msk.bf16.mxu1 %vm199_vm5, %v3854_v19  ;;  %v3287_v34 = vmul.f32 %v3255_v28, %v6518_v12  ;;  %v3033_v54 = vmul.f32 0.3275911, %v3001_v46  ;;  %vm1963_vm13 = vcmp.ne.s32.totalorder %v1601_v5, 15  ;;  %v6544_v25 = vmul.f32 0.5, %v6405_v8 }
 0x2be   : > { %v3350_v9 = vmul.f32 %v3318_v21, %v6507_v26  ;;  %v3064_v52 = vadd.f32 1.0, %v3032_v45  ;;  %v1622_v48 = vand.u32 15, %v1454_v30  ;;  %4550 = vpow2.f32 %v3590_v40  ;;  %v6572_v40 = vld [vmem:[#allocation2 + $0xb7] sm:$0xff] }
 0x2bf   : > { %v3319_v53 = vadd.f32 1.4214138, %v3287_v34  ;;  %v2228_v43 = vadd.f32 %v2196_v32, %v2128_v59  ;;  %v3065_v7 = vadd.f32 1.0, %v3033_v54  ;;  %v6547_v47 = vadd.f32 %v2197_v10, %v2129_v16  ;;  %v6582_v34 = vld [vmem:[#allocation2 + $0xbf] sm:$0xff] }
 0x2c0   : > { %v3382_v38 = vadd.f32 -0.28449672, %v3350_v9  ;;  %4552 = vrcp.f32 %v3064_v52  ;;  %v4218_v2 = vsel %vm1963_vm13, 1.0, %v7368_v62  ;;  %v2328_v8 = vmul.f32 %v5531_v17, %v6495_v49 }
 0x2c1   : > { %v3351_v3 = vmul.f32 %v3319_v53, %v6518_v12  ;;  %v2392_v42 = vmul.f32 %v6336_v35, %v6459_v50  ;;  %4554 = vrcp.f32 %v3065_v7  ;;  %v2429_v5 = vmul.f32 %v5568_v56, %v6471_v55 }
 0x2c2   : > { %v3414_v39 = vmul.f32 %v3382_v38, %v6507_v26  ;;  %v3512_v6 = vsub.f32 0.0, %v3000_v41  ;;  %vm1870_vm14 = vcmp.ne.s32.totalorder %v1622_v48, 0  ;;  %v6558_v24 = vadd.f32 %v2328_v8, %v2228_v43  ;;  %v6593_v38 = vld [vmem:[#allocation2 + $0xb8] sm:$0xff] }
 0x2c3   : > { %v3383_v16 = vadd.f32 -0.28449672, %v3351_v3  ;;  %v2498_v58 = vmul.f32 %v5571_v4, %v6486_v23  ;;  %v2291_v57 = vmul.f32 %v4218_v2, %v6368_v60  ;;  %v2499_v50 = vmul.f32 %v5571_v4, %v6490_v61 }
 0x2c4   : > { %v3446_v59 = vadd.f32 0.2548296, %v3414_v39  ;;  %v2600_v30 = vmul.f32 %v5582_v13, %v6495_v49  ;;  %v3513_v19 = vsub.f32 0.0, %v3001_v46  ;;  %vm3702_vm15 = vcmp.ge.f32.partialorder %v6401_v0, 0.0 }
 0x2c5   : > { %v3415_v55 = vmul.f32 %v3383_v16, %v6518_v12  ;;  %v6570_v28 = vsel %vm1870_vm14, 1.0, %v7368_v62  ;;  %v2327_v23 = vmul.f32 %v5531_v17, %v2291_v57  ;;  %v2428_v60 = vmul.f32 %v5568_v56, %v2392_v42 }
 0x2c6   : > { %v3478_v21 = vmul.f32 %v3446_v59, %v6507_v26  ;;  %v6578_v61 = vmul.f32 0.5, %v6516_v27  ;;  %v6580_v49 = vmul.f32 0.5, %v2905_v36  ;;  %v3544_v32 = vmul.f32 %v3512_v6, %v3000_v41  ;;  %v4549_v10 = vpop.eup %4548 }
 0x2c7   : > { %v3447_v45 = vadd.f32 0.2548296, %v3415_v55  ;;  %v2359_v54 = vadd.f32 %v2327_v23, %v6444_v33  ;;  %v2460_v9 = vadd.f32 %v2428_v60, %v6446_v37  ;;  %v2565_v48 = vmul.f32 %v4218_v2, %v6488_v20  ;;  %v6595_v33 = vld [vmem:[#allocation2 + $0xc1] sm:$0xff] }
 0x2c8   : > { %v3638_v53 = vmul.f32 %v4549_v10, %v3478_v21  ;;  %vm3703_vm0 = vcmp.ge.f32.partialorder %v6412_v18, 0.0  ;;  %v3545_v26 = vmul.f32 %v3513_v19, %v3001_v46  ;;  %v2094_v27 = vmul.f32 %v6570_v28, %v6572_v40  ;;  %v4551_v41 = vpop.eup %4550  ;;  %v6603_v19 = vld [vmem:[#allocation2 + $0xb9] sm:$0xff] }
 0x2c9   : > { %v2666_v36 = vmul.f32 %v6336_v35, %v6572_v40  ;;  %v3479_v43 = vmul.f32 %v3447_v45, %v6518_v12  ;;  %v2461_v37 = vadd.f32 %v2429_v5, %v2359_v54  ;;  %v2530_v3 = vadd.f32 %v2498_v58, %v2460_v9  ;;  %v6601_v12 = vld [vmem:[#allocation2 + $0xc0] sm:$0xff] }
 0x2ca   : > { %v2601_v8 = vmul.f32 %v5582_v13, %v2565_v48  ;;  %v4553_v42 = vpop.eup %4552  ;;  %v3670_v39 = vsub.f32 1.0, %v3638_v53  ;;  %v3592_v46 = vmul.f32 1.442695, %v3544_v32  ;;  %v2703_v16 = vmul.f32 %v5590_v29, %v6582_v34 }
 0x2cb   : > { %v2702_v6 = vmul.f32 %v5590_v29, %v2666_v36  ;;  %v4555_v35 = vpop.eup %4554  ;;  %v3639_v57 = vmul.f32 %v4551_v41, %v3479_v43  ;;  %v3128_v59 = vmul.f32 %v4553_v42, %v3064_v52  ;;  %v2531_v55 = vadd.f32 %v2499_v50, %v2461_v37 }
 0x2cc   : > { %v2632_v5 = vadd.f32 %v2600_v30, %v2530_v3  ;;  %v3734_v58 = vsub.f32 0.0, %v3670_v39  ;;  %v3129_v23 = vmul.f32 %v4555_v35, %v3065_v7  ;;  %v2772_v60 = vmul.f32 %v5623_v14, %v6593_v38 }
 0x2cd   : > { %v2839_v21 = vmul.f32 %v4218_v2, %v6595_v33  ;;  %v3671_v32 = vsub.f32 1.0, %v3639_v57  ;;  %v3160_v10 = vsub.f32 2.0, %v3128_v59  ;;  %v2633_v45 = vadd.f32 %v2601_v8, %v2531_v55 }
 0x2ce   : > { %v2734_v54 = vadd.f32 %v2702_v6, %v2632_v5  ;;  %v3766_v52 = vsel %vm3702_vm15, %v3670_v39, %v3734_v58  ;;  %v3161_v9 = vsub.f32 2.0, %v3129_v23  ;;  %v2773_v48 = vmul.f32 %v5623_v14, %v6601_v12 }
 0x2cf   : > { %v2874_v50 = vmul.f32 %v6130_v1, %v6603_v19  ;;  %v3735_v7 = vsub.f32 0.0, %v3671_v32  ;;  %v3798_v30 = vadd.f32 1.0, %v3766_v52  ;;  %v6614_v53 = vmul.f32 %v4553_v42, %v3160_v10 }
 0x2d0   : > { %v2735_v36 = vadd.f32 %v2703_v16, %v2633_v45  ;;  %v6616_v2 = vmul.f32 %v4555_v35, %v3161_v9  ;;  %v2804_v41 = vadd.f32 %v2772_v60, %v2734_v54  ;;  %v2875_v43 = vmul.f32 %v6130_v1, %v2839_v21 }
 0x2d1   : > { %v1453_v0 = vadd.s32 168, %v5413_v31  ;;  %v3767_v37 = vsel %vm3703_vm0, %v3671_v32, %v3735_v7  ;;  %v3224_v3 = vmul.f32 1.0614054, %v6614_v53  ;;  %v1456_v39 = vadd.s32 192, %v5413_v31 }
 0x2d2   : > { %v2805_v8 = vadd.f32 %v2773_v48, %v2735_v36  ;;  %v3799_v6 = vadd.f32 1.0, %v3767_v37  ;;  %v3830_v42 = vmul.f32 %v3798_v30, %v6469_v44  ;;  %v3225_v16 = vmul.f32 1.0614054, %v6616_v2 }
 0x2d3   : > { %v6626_v35 = vadd.f32 %v2874_v50, %v2804_v41  ;;  %v3256_v57 = vadd.f32 -1.4531521, %v3224_v3  ;;  %v3594_v59 = vmul.f32 1.442695, %v3545_v26  ;;  %v2131_v1 = vmul.f32 %v5497_v11, %v6582_v34 }
 0x2d4   : > { %v6630_v55 = vadd.f32 %v2875_v43, %v2805_v8  ;;  %v3831_v18 = vmul.f32 %v3799_v6, %v6544_v25  ;;  %v3257_v5 = vadd.f32 -1.4531521, %v3225_v16  ;;  %v1615_v23 = vand.u32 15, %v1453_v0  ;;  %v6661_v16 = vld [vmem:[#allocation2 + $0xc7] sm:$0xff] }
 0x2d5   : > { %v6634_v58 = vmul.f32 0.70710677, %v6626_v35  ;;  %v3288_v44 = vmul.f32 %v3256_v57, %v6614_v53  ;;  %v2130_v60 = vmul.f32 %v5497_v11, %v2094_v27  ;;  %v1636_v26 = vand.u32 15, %v1456_v39 }
 0x2d6   : > { %v6639_v21 = vmul.f32 0.70710677, %v6630_v55  ;;  %v3855_v32 = vpack.c.bf16 %v3831_v18, %v3830_v42  ;;  %v3289_v10 = vmul.f32 %v3257_v5, %v6616_v2  ;;  %v2199_v45 = vmul.f32 %v5503_v15, %v6601_v12 }
 0x2d7   : > { %v3002_v25 = vand.u32 2147483647, %v6634_v58  ;;  %v3320_v54 = vadd.f32 1.4214138, %v3288_v44  ;;  %4556 = vpow2.f32 %v3592_v46  ;;  %v2198_v52 = vmul.f32 %v5503_v15, %v6593_v38  ;;  %v6675_v44 = vld [vmem:[#allocation2 + $0xc8] sm:$0xff] }
 0x2d8   : > { %v3003_v9 = vand.u32 2147483647, %v6639_v21  ;;  %4330 = vmatmul.mubr.msk.bf16.gmra.mrb[12].mxu1 %vm199_vm5, %v3855_v32  ;;  %v3321_v27 = vadd.f32 1.4214138, %v3289_v10  ;;  %4558 = vpow2.f32 %v3594_v59  ;;  %vm1965_vm2 = vcmp.ne.s32.totalorder %v1615_v23, 15  ;;  %v6673_v23 = vld [vmem:[#allocation2 + $0xcf] sm:$0xff] }
 0x2d9   : > { %v3034_v48 = vmul.f32 0.3275911, %v3002_v25  ;;  %v3352_v50 = vmul.f32 %v3320_v54, %v6614_v53  ;;  %v2230_v7 = vadd.f32 %v2198_v52, %v2130_v60  ;;  %vm1872_vm3 = vcmp.ne.s32.totalorder %v1636_v26, 0 }
 0x2da   : > { %v3035_v30 = vmul.f32 0.3275911, %v3003_v9  ;;  %v3353_v36 = vmul.f32 %v3321_v27, %v6616_v2  ;;  %v6651_v41 = vadd.f32 %v2199_v45, %v2131_v1  ;;  %v2330_v46 = vmul.f32 %v5531_v17, %v6603_v19 }
 0x2db   : > { %v3066_v43 = vadd.f32 1.0, %v3034_v48  ;;  %v3384_v0 = vadd.f32 -0.28449672, %v3352_v50  ;;  %v2394_v37 = vmul.f32 %v6457_v22, %v6572_v40  ;;  %v4219_v8 = vsel %vm1965_vm2, 1.0, %v7368_v62 }
 0x2dc   : > { %v3067_v3 = vadd.f32 1.0, %v3035_v30  ;;  %v3385_v39 = vadd.f32 -0.28449672, %v3353_v36  ;;  %v3514_v6 = vsub.f32 0.0, %v3002_v25  ;;  %v6659_v42 = vsel %vm1872_vm3, 1.0, %v7368_v62 }
 0x2dd   : > { %4560 = vrcp.f32 %v3066_v43  ;;  %v3416_v57 = vmul.f32 %v3384_v0, %v6614_v53  ;;  %v6664_v59 = vadd.f32 %v2330_v46, %v2230_v7  ;;  %v2431_v1 = vmul.f32 %v5568_v56, %v6582_v34 }
 0x2de   : > { %4562 = vrcp.f32 %v3067_v3  ;;  %v3417_v40 = vmul.f32 %v3385_v39, %v6616_v2  ;;  %v2500_v18 = vmul.f32 %v5571_v4, %v6593_v38  ;;  %v2501_v5 = vmul.f32 %v5571_v4, %v6601_v12 }
 0x2df   : > { %v2293_v60 = vmul.f32 %v4219_v8, %v6488_v20  ;;  %v3448_v26 = vadd.f32 0.2548296, %v3416_v57  ;;  %v2602_v32 = vmul.f32 %v5582_v13, %v6603_v19  ;;  %v3515_v34 = vsub.f32 0.0, %v3003_v9  ;;  %v6707_v57 = vld [vmem:[#allocation2 + $0xd1] sm:$0xff] }
 0x2e0   : > { %v2096_v10 = vmul.f32 %v6659_v42, %v6661_v16  ;;  %v3449_v45 = vadd.f32 0.2548296, %v3417_v40  ;;  %vm3704_vm4 = vcmp.ge.f32.partialorder %v6524_v63, 0.0  ;;  %v3546_v38 = vmul.f32 %v3514_v6, %v3002_v25  ;;  %v6705_v6 = vld [vmem:[#allocation2 + $0xd0] sm:$0xff]  ;;  %v6731_v63 = vld [vmem:[%s7327_s2 + $0x8] ss:$0 sm:$0xff] }
 0x2e1   : > { %v2329_v12 = vmul.f32 %v5531_v17, %v2293_v60  ;;  %v2430_v54 = vmul.f32 %v5568_v56, %v2394_v37  ;;  %v4557_v52 = vpop.eup %4556  ;;  %v3480_v27 = vmul.f32 %v3448_v26, %v6614_v53  ;;  %vm3705_vm6 = vcmp.ge.f32.partialorder %v6529_v51, 0.0 }
 0x2e2   : > { %v6688_v20 = vmul.f32 0.5, %v6626_v35  ;;  %v6692_v19 = vmul.f32 %v5497_v11, %v6673_v23  ;;  %v6696_v48 = vmul.f32 %v5503_v15, %v6675_v44  ;;  %v4559_v25 = vpop.eup %4558  ;;  %v3481_v50 = vmul.f32 %v3449_v45, %v6616_v2 }
 0x2e3   : > { %v2361_v7 = vadd.f32 %v2329_v12, %v6547_v47  ;;  %v2462_v53 = vadd.f32 %v2430_v54, %v6558_v24  ;;  %v2567_v30 = vmul.f32 %v4219_v8, %v6595_v33  ;;  %v3640_v36 = vmul.f32 %v4557_v52, %v3480_v27 }
 0x2e4   : > { %v3547_v35 = vmul.f32 %v3515_v34, %v3003_v9  ;;  %v2132_v46 = vmul.f32 %v5497_v11, %v2096_v10  ;;  %v2668_v0 = vmul.f32 %v6457_v22, %v6661_v16  ;;  %v3641_v37 = vmul.f32 %v4559_v25, %v3481_v50  ;;  %v6718_v25 = vld [vmem:[#allocation2 + $0xc9] sm:$0xff] }
 0x2e5   : > { %v3596_v39 = vmul.f32 1.442695, %v3546_v38  ;;  %v2463_v2 = vadd.f32 %v2431_v1, %v2361_v7  ;;  %v2532_v40 = vadd.f32 %v2500_v18, %v2462_v53  ;;  %v3672_v47 = vsub.f32 1.0, %v3640_v36 }
 0x2e6   : > { %v2603_v24 = vmul.f32 %v5582_v13, %v2567_v30  ;;  %v2704_v60 = vmul.f32 %v5590_v29, %v2668_v0  ;;  %v2705_v9 = vmul.f32 %v5590_v29, %v6673_v23  ;;  %v3673_v34 = vsub.f32 1.0, %v3641_v37 }
 0x2e7   : > { %v4561_v26 = vpop.eup %4560  ;;  %v2533_v10 = vadd.f32 %v2501_v5, %v2463_v2  ;;  %v2634_v22 = vadd.f32 %v2602_v32, %v2532_v40  ;;  %v2774_v45 = vmul.f32 %v5623_v14, %v6675_v44  ;;  %v3736_v12 = vsub.f32 0.0, %v3672_v47 }
 0x2e8   : > { %v4563_v38 = vpop.eup %4562  ;;  %v3130_v54 = vmul.f32 %v4561_v26, %v3066_v43  ;;  %v2775_v1 = vmul.f32 %v5623_v14, %v6705_v6  ;;  %v2841_v18 = vmul.f32 %v4219_v8, %v6707_v57  ;;  %v3737_v52 = vsub.f32 0.0, %v3673_v34 }
 0x2e9   : > { %v3131_v27 = vmul.f32 %v4563_v38, %v3067_v3  ;;  %v2635_v50 = vadd.f32 %v2603_v24, %v2533_v10  ;;  %v2736_v7 = vadd.f32 %v2704_v60, %v2634_v22  ;;  %v3768_v5 = vsel %vm3704_vm4, %v3672_v47, %v3736_v12 }
 0x2ea   : > { %v3162_v32 = vsub.f32 2.0, %v3130_v54  ;;  %v1455_v53 = vadd.s32 184, %v5413_v31  ;;  %v1458_v30 = vadd.s32 208, %v5413_v31  ;;  %v3769_v43 = vsel %vm3705_vm6, %v3673_v34, %v3737_v52 }
 0x2eb   : > { %v3800_v36 = vadd.f32 1.0, %v3768_v5  ;;  %v3163_v0 = vsub.f32 2.0, %v3131_v27  ;;  %v2737_v8 = vadd.f32 %v2705_v9, %v2635_v50  ;;  %v3801_v37 = vadd.f32 1.0, %v3769_v43 }
 0x2ec   : > { %v6726_v3 = vmul.f32 %v4561_v26, %v3162_v32  ;;  %v2806_v2 = vadd.f32 %v2774_v45, %v2736_v7  ;;  %v2876_v40 = vmul.f32 %v6731_v63, %v6718_v25  ;;  %v2877_v60 = vmul.f32 %v6731_v63, %v2841_v18 }
 0x2ed   : > { %v3832_v47 = vmul.f32 %v3800_v36, %v6578_v61  ;;  %v6736_v24 = vmul.f32 %v4563_v38, %v3163_v0  ;;  %v2807_v51 = vadd.f32 %v2775_v1, %v2737_v8  ;;  %v3833_v9 = vmul.f32 %v3801_v37, %v6580_v49  ;;  %v6767_v0 = vld [vmem:[#allocation2 + $0xd7] sm:$0xff] }
 0x2ee   : > { %v3226_v26 = vmul.f32 1.0614054, %v6726_v3  ;;  %v2908_v34 = vadd.f32 %v2876_v40, %v2806_v2  ;;  %v1650_v10 = vand.u32 15, %v1458_v30  ;;  %v2201_v45 = vmul.f32 %v5503_v15, %v6705_v6 }
 0x2ef   : > { %v3227_v22 = vmul.f32 1.0614054, %v6736_v24  ;;  %v2909_v12 = vadd.f32 %v2877_v60, %v2807_v51  ;;  %v1629_v54 = vand.u32 15, %v1455_v53  ;;  %v3856_v52 = vpack.c.bf16 %v3833_v9, %v3832_v47 }
 0x2f0   : > { %v3258_v61 = vadd.f32 -1.4531521, %v3226_v26  ;;  %v3598_v38 = vmul.f32 1.442695, %v3547_v35  ;;  %v6744_v27 = vmul.f32 0.70710677, %v2908_v34  ;;  %v2232_v18 = vadd.f32 %v6696_v48, %v2132_v46 }
 0x2f1   : > { %v6747_v1 = vmul.f32 0.5, %v6630_v55  ;;  %v3259_v49 = vadd.f32 -1.4531521, %v3227_v22  ;;  %v6750_v50 = vmul.f32 0.70710677, %v2909_v12  ;;  %4333 = vmatprep.mubr.msk.bf16.mxu1 %vm199_vm5, %v3856_v52  ;;  %4564 = vpow2.f32 %v3596_v39  ;;  %v6782_v22 = vld [vmem:[#allocation2 + $0xdf] sm:$0xff] }
 0x2f2   : > { %v3290_v7 = vmul.f32 %v3258_v61, %v6726_v3  ;;  %v3004_v5 = vand.u32 2147483647, %v6744_v27  ;;  %vm1874_vm7 = vcmp.ne.s32.totalorder %v1650_v10, 0  ;;  %v6757_v32 = vadd.f32 %v2201_v45, %v6692_v19  ;;  %v6784_v45 = vld [vmem:[#allocation2 + $0xd8] sm:$0xff] }
 0x2f3   : > { %v3291_v35 = vmul.f32 %v3259_v49, %v6736_v24  ;;  %v3005_v55 = vand.u32 2147483647, %v6750_v50  ;;  %vm1967_vm8 = vcmp.ne.s32.totalorder %v1629_v54, 15  ;;  %4566 = vpow2.f32 %v3598_v38 }
 0x2f4   : > { %v3322_v53 = vadd.f32 1.4214138, %v3290_v7  ;;  %v2332_v48 = vmul.f32 %v5531_v17, %v6718_v25  ;;  %v3036_v46 = vmul.f32 0.3275911, %v3004_v5  ;;  %v2396_v39 = vmul.f32 %v6570_v28, %v6661_v16 }
 0x2f5   : > { %v3323_v30 = vadd.f32 1.4214138, %v3291_v35  ;;  %v3037_v43 = vmul.f32 0.3275911, %v3005_v55  ;;  %v6765_v36 = vsel %vm1874_vm7, 1.0, %v7368_v62  ;;  %v2433_v8 = vmul.f32 %v5568_v56, %v6673_v23 }
 0x2f6   : > { %v3354_v19 = vmul.f32 %v3322_v53, %v6726_v3  ;;  %v3068_v37 = vadd.f32 1.0, %v3036_v46  ;;  %v4220_v2 = vsel %vm1967_vm8, 1.0, %v7368_v62  ;;  %v6774_v47 = vadd.f32 %v2332_v48, %v2232_v18  ;;  %v6795_v18 = vld [vmem:[#allocation2 + $0xe0] sm:$0xff] }
 0x2f7   : > { %v3355_v40 = vmul.f32 %v3323_v30, %v6736_v24  ;;  %v2502_v16 = vmul.f32 %v5571_v4, %v6675_v44  ;;  %v3069_v51 = vadd.f32 1.0, %v3037_v43  ;;  %v2503_v9 = vmul.f32 %v5571_v4, %v6705_v6 }
 0x2f8   : > { %v3386_v60 = vadd.f32 -0.28449672, %v3354_v19  ;;  %4568 = vrcp.f32 %v3068_v37  ;;  %v2098_v26 = vmul.f32 %v6765_v36, %v6767_v0  ;;  %v3516_v10 = vsub.f32 0.0, %v3004_v5 }
 0x2f9   : > { %v3387_v23 = vadd.f32 -0.28449672, %v3355_v40  ;;  %4570 = vrcp.f32 %v3069_v51  ;;  %v2295_v54 = vmul.f32 %v4220_v2, %v6595_v33  ;;  %v2604_v52 = vmul.f32 %v5582_v13, %v6718_v25 }
 0x2fa   : > { %v3418_v44 = vmul.f32 %v3386_v60, %v6726_v3  ;;  %v6790_v61 = vmul.f32 0.5, %v2908_v34  ;;  %v6792_v6 = vmul.f32 0.5, %v2909_v12  ;;  %v3517_v49 = vsub.f32 0.0, %v3005_v55 }
 0x2fb   : > { %v3419_v38 = vmul.f32 %v3387_v23, %v6736_v24  ;;  %v2331_v7 = vmul.f32 %v5531_v17, %v2295_v54  ;;  %v2432_v35 = vmul.f32 %v5568_v56, %v2396_v39  ;;  %v4565_v53 = vpop.eup %4564  ;;  %v2134_v48 = vmul.f32 %v5497_v11, %v2098_v26 }
 0x2fc   : > { %v3450_v33 = vadd.f32 0.2548296, %v3418_v44  ;;  %v6802_v25 = vmul.f32 %v5497_v11, %v6782_v22  ;;  %v2202_v34 = vmul.f32 %v5503_v15, %v6784_v45  ;;  %vm3706_vm9 = vcmp.ge.f32.partialorder %v6634_v58, 0.0 }
 0x2fd   : > { %v3451_v12 = vadd.f32 0.2548296, %v3419_v38  ;;  %v3548_v46 = vmul.f32 %v3516_v10, %v3004_v5  ;;  %v2363_v30 = vadd.f32 %v2331_v7, %v6651_v41  ;;  %v2464_v43 = vadd.f32 %v2432_v35, %v6664_v59  ;;  %v4567_v39 = vpop.eup %4566  ;;  %v6817_v10 = vld [vmem:[#allocation2 + $0xe1] sm:$0xff]  ;;  %v6824_v35 = vld [vmem:[#allocation2 + $0xd9] sm:$0xff] }
 0x2fe   : > { %v3482_v19 = vmul.f32 %v3450_v33, %v6726_v3  ;;  %vm3707_vm10 = vcmp.ge.f32.partialorder %v6639_v21, 0.0  ;;  %v2203_v40 = vmul.f32 %v5503_v15, %v6795_v18  ;;  %v2569_v60 = vmul.f32 %v4220_v2, %v6707_v57 }
 0x2ff   : > { %v2670_v26 = vmul.f32 %v6570_v28, %v6767_v0  ;;  %v3483_v23 = vmul.f32 %v3451_v12, %v6736_v24  ;;  %v3549_v5 = vmul.f32 %v3517_v49, %v3005_v55  ;;  %v2465_v41 = vadd.f32 %v2433_v8, %v2363_v30 }
 0x300   : > { %v2534_v59 = vadd.f32 %v2502_v16, %v2464_v43  ;;  %v3642_v54 = vmul.f32 %v4565_v53, %v3482_v19  ;;  %v6819_v44 = vadd.f32 %v2202_v34, %v2134_v48  ;;  %v2605_v3 = vmul.f32 %v5582_v13, %v2569_v60 }
 0x301   : > { %v2707_v38 = vmul.f32 %v5590_v29, %v6782_v22  ;;  %v3643_v7 = vmul.f32 %v4567_v39, %v3483_v23  ;;  %v2535_v33 = vadd.f32 %v2503_v9, %v2465_v41  ;;  %v2706_v24 = vmul.f32 %v5590_v29, %v2670_v26 }
 0x302   : > { %v2636_v28 = vadd.f32 %v2604_v52, %v2534_v59  ;;  %v4569_v55 = vpop.eup %4568  ;;  %v3674_v49 = vsub.f32 1.0, %v3642_v54  ;;  %v2776_v8 = vmul.f32 %v5623_v14, %v6784_v45  ;;  %v2777_v16 = vmul.f32 %v5623_v14, %v6795_v18 }
 0x303   : > { %v2843_v53 = vmul.f32 %v4220_v2, %v6817_v10  ;;  %v4571_v48 = vpop.eup %4570  ;;  %v3675_v34 = vsub.f32 1.0, %v3643_v7  ;;  %v3132_v12 = vmul.f32 %v4569_v55, %v3068_v37  ;;  %v2637_v30 = vadd.f32 %v2605_v3, %v2535_v33 }
 0x304   : > { %v2738_v43 = vadd.f32 %v2706_v24, %v2636_v28  ;;  %v3738_v39 = vsub.f32 0.0, %v3674_v49  ;;  %v3133_v9 = vmul.f32 %v4571_v48, %v3069_v51  ;;  %v2878_v52 = vmul.f32 %v6731_v63, %v6824_v35 }
 0x305   : > { %v1460_v19 = vadd.s32 224, %v5413_v31  ;;  %v3739_v60 = vsub.f32 0.0, %v3675_v34  ;;  %v3164_v26 = vsub.f32 2.0, %v3132_v12  ;;  %v2739_v23 = vadd.f32 %v2707_v38, %v2637_v30 }
 0x306   : > { %v2808_v41 = vadd.f32 %v2776_v8, %v2738_v43  ;;  %v3770_v59 = vsel %vm3706_vm9, %v3674_v49, %v3738_v39  ;;  %v3165_v2 = vsub.f32 2.0, %v3133_v9  ;;  %v2879_v54 = vmul.f32 %v6731_v63, %v2843_v53 }
 0x307   : > { %v1457_v37 = vadd.s32 200, %v5413_v31  ;;  %v3771_v51 = vsel %vm3707_vm10, %v3675_v34, %v3739_v60  ;;  %v3802_v3 = vadd.f32 1.0, %v3770_v59  ;;  %v6841_v7 = vmul.f32 %v4569_v55, %v3164_v26 }
 0x308   : > { %v2809_v33 = vadd.f32 %v2777_v16, %v2739_v23  ;;  %v3803_v28 = vadd.f32 1.0, %v3771_v51  ;;  %v6843_v24 = vmul.f32 %v4571_v48, %v3165_v2  ;;  %v3600_v38 = vmul.f32 1.442695, %v3548_v46 }
 0x309   : > { %v2910_v8 = vadd.f32 %v2878_v52, %v2808_v41  ;;  %v3834_v58 = vmul.f32 %v3802_v3, %v6688_v20  ;;  %v3228_v49 = vmul.f32 1.0614054, %v6841_v7  ;;  %v1664_v53 = vand.u32 15, %v1460_v19 }
 0x30a   : > { %v2911_v12 = vadd.f32 %v2879_v54, %v2809_v33  ;;  %v3835_v30 = vmul.f32 %v3803_v28, %v6747_v1  ;;  %v3229_v21 = vmul.f32 1.0614054, %v6843_v24  ;;  %v1643_v55 = vand.u32 15, %v1457_v37  ;;  %v6873_v37 = vld [vmem:[#allocation2 + $0xe7] sm:$0xff] }
 0x30b   : > { %v6849_v34 = vmul.f32 0.70710677, %v2910_v8  ;;  %v3260_v43 = vadd.f32 -1.4531521, %v3228_v49  ;;  %v3602_v16 = vmul.f32 1.442695, %v3549_v5  ;;  %v6852_v48 = vadd.f32 %v2203_v40, %v6802_v25 }
 0x30c   : > { %v6854_v46 = vmul.f32 0.70710677, %v2911_v12  ;;  %v3857_v39 = vpack.c.bf16 %v3835_v30, %v3834_v58  ;;  %v3261_v20 = vadd.f32 -1.4531521, %v3229_v21  ;;  %4572 = vpow2.f32 %v3600_v38 }
 0x30d   : > { %v3006_v9 = vand.u32 2147483647, %v6849_v34  ;;  %v3292_v52 = vmul.f32 %v3260_v43, %v6841_v7  ;;  %v2334_v1 = vmul.f32 %v5531_v17, %v6824_v35  ;;  %vm1876_vm11 = vcmp.ne.s32.totalorder %v1664_v53, 0  ;;  %v6886_v53 = vld [vmem:[#allocation2 + $0xef] sm:$0xff] }
 0x30e   : > { %v3007_v19 = vand.u32 2147483647, %v6854_v46  ;;  %4334 = vmatmul.mubr.msk.bf16.gmra.mrb[16].mxu1 %vm199_vm5, %v3857_v39  ;;  %v3293_v25 = vmul.f32 %v3261_v20, %v6843_v24  ;;  %v2398_v40 = vmul.f32 %v6659_v42, %v6767_v0  ;;  %vm1969_vm12 = vcmp.ne.s32.totalorder %v1643_v55, 15  ;;  %v6894_v43 = vld [vmem:[#allocation2 + $0xe8] sm:$0xff] }
 0x30f   : > { %v3038_v5 = vmul.f32 0.3275911, %v3006_v9  ;;  %v3324_v60 = vadd.f32 1.4214138, %v3292_v52  ;;  %4574 = vpow2.f32 %v3602_v16  ;;  %v3518_v23 = vsub.f32 0.0, %v3006_v9 }
 0x310   : > { %v3039_v26 = vmul.f32 0.3275911, %v3007_v19  ;;  %v3325_v41 = vadd.f32 1.4214138, %v3293_v25  ;;  %v6866_v59 = vadd.f32 %v2334_v1, %v6819_v44  ;;  %v6871_v54 = vsel %vm1876_vm11, 1.0, %v7368_v62  ;;  %v6907_v25 = vld [vmem:[#allocation2 + $0xf0] sm:$0xff] }
 0x311   : > { %v6868_v2 = vadd.f32 1.0, %v3038_v5  ;;  %7373 = vst [vmem:[#allocation3_spill] sm:$0xff] %v6871_v54  ;;  %v3356_v51 = vmul.f32 %v3324_v60, %v6841_v7  ;;  %v3519_v3 = vsub.f32 0.0, %v3007_v19  ;;  %v4221_v33 = vsel %vm1969_vm12, 1.0, %v7368_v62 }
 0x312   : > { %v6876_v0 = vadd.f32 1.0, %v3039_v26  ;;  %v3357_v28 = vmul.f32 %v3325_v41, %v6843_v24  ;;  %v2435_v44 = vmul.f32 %v5568_v56, %v6782_v22  ;;  %v2504_v38 = vmul.f32 %v5571_v4, %v6784_v45 }
 0x313   : > { %4576 = vrcp.f32 %v6868_v2  ;;  %v3388_v58 = vadd.f32 -0.28449672, %v3356_v51  ;;  %v3550_v49 = vmul.f32 %v3518_v23, %v3006_v9  ;;  %v2100_v30 = vmul.f32 %v6871_v54, %v6873_v37 }
 0x314   : > { %4578 = vrcp.f32 %v6876_v0  ;;  %v3389_v21 = vadd.f32 -0.28449672, %v3357_v28  ;;  %v2505_v55 = vmul.f32 %v5571_v4, %v6795_v18  ;;  %v2606_v22 = vmul.f32 %v5582_v13, %v6824_v35 }
 0x315   : > { %v2297_v45 = vmul.f32 %v4221_v33, %v6707_v57  ;;  %v3420_v16 = vmul.f32 %v3388_v58, %v6841_v7  ;;  %v6898_v39 = vmul.f32 0.5, %v2910_v8  ;;  %v6900_v20 = vmul.f32 0.5, %v2911_v12 }
 0x316   : > { %v3551_v9 = vmul.f32 %v3519_v3, %v3007_v19  ;;  %v4573_v52 = vpop.eup %4572  ;;  %v3421_v1 = vmul.f32 %v3389_v21, %v6843_v24  ;;  %v6905_v18 = vmul.f32 %v5497_v11, %v6886_v53  ;;  %v2434_v57 = vmul.f32 %v5568_v56, %v2398_v40 }
 0x317   : > { %v2333_v35 = vmul.f32 %v5531_v17, %v2297_v45  ;;  %v3452_v5 = vadd.f32 0.2548296, %v3420_v16  ;;  %v6911_v60 = vmul.f32 1.442695, %v3550_v49  ;;  %v2136_v8 = vmul.f32 %v5497_v11, %v2100_v30  ;;  %v6931_v49 = vld [vmem:[#allocation2 + $0xe9] sm:$0xff] }
 0x318   : > { %v2204_v12 = vmul.f32 %v5503_v15, %v6894_v43  ;;  %v3453_v19 = vadd.f32 0.2548296, %v3421_v1  ;;  %vm3708_vm13 = vcmp.ge.f32.partialorder %v6744_v27, 0.0  ;;  %v2466_v23 = vadd.f32 %v2434_v57, %v6774_v47  ;;  %v6933_v47 = vld [vmem:[#allocation2 + $0xf1] sm:$0xff] }
 0x319   : > { %v2365_v26 = vadd.f32 %v2333_v35, %v6757_v32  ;;  %v2571_v41 = vmul.f32 %v4221_v33, %v6817_v10  ;;  %v4575_v51 = vpop.eup %4574  ;;  %v3484_v40 = vmul.f32 %v3452_v5, %v6841_v7  ;;  %vm3709_vm14 = vcmp.ge.f32.partialorder %v6750_v50, 0.0 }
 0x31a   : > { %v6922_v3 = vmul.f32 1.442695, %v3551_v9  ;;  %v6926_v28 = vmul.f32 %v5503_v15, %v6907_v25  ;;  %v2672_v58 = vmul.f32 %v6659_v42, %v6873_v37  ;;  %v3485_v32 = vmul.f32 %v3453_v19, %v6843_v24 }
 0x31b   : > { %v2467_v30 = vadd.f32 %v2435_v44, %v2365_v26  ;;  %v2536_v21 = vadd.f32 %v2504_v38, %v2466_v23  ;;  %v2709_v7 = vmul.f32 %v5590_v29, %v6886_v53  ;;  %v3644_v45 = vmul.f32 %v4573_v52, %v3484_v40 }
 0x31c   : > { %v2607_v16 = vmul.f32 %v5582_v13, %v2571_v41  ;;  %v2708_v9 = vmul.f32 %v5590_v29, %v2672_v58  ;;  %v2778_v1 = vmul.f32 %v5623_v14, %v6894_v43  ;;  %v3645_v35 = vmul.f32 %v4575_v51, %v3485_v32 }
 0x31d   : > { %v4577_v42 = vpop.eup %4576  ;;  %v2537_v24 = vadd.f32 %v2505_v55, %v2467_v30  ;;  %v2638_v57 = vadd.f32 %v2606_v22, %v2536_v21  ;;  %v2779_v5 = vmul.f32 %v5623_v14, %v6907_v25  ;;  %v3676_v38 = vsub.f32 1.0, %v3644_v45 }
 0x31e   : > { %v4579_v44 = vpop.eup %4578  ;;  %v3134_v19 = vmul.f32 %v4577_v42, %v6868_v2  ;;  %v2845_v52 = vmul.f32 %v4221_v33, %v6933_v47  ;;  %v2880_v26 = vmul.f32 %v6731_v63, %v6931_v49  ;;  %v3677_v23 = vsub.f32 1.0, %v3645_v35 }
 0x31f   : > { %v3135_v41 = vmul.f32 %v4579_v44, %v6876_v0  ;;  %v2639_v40 = vadd.f32 %v2607_v16, %v2537_v24  ;;  %v2740_v51 = vadd.f32 %v2708_v9, %v2638_v57  ;;  %v3740_v55 = vsub.f32 0.0, %v3676_v38  ;;  %v4319_v16 = vpop.f32.mrb[0].mxu1 }
 0x320   : > { %v3166_v22 = vsub.f32 2.0, %v3134_v19  ;;  %v1459_v58 = vadd.s32 216, %v5413_v31  ;;  %v1462_v32 = vadd.s32 240, %v5413_v31  ;;  %v3741_v30 = vsub.f32 0.0, %v3677_v23  ;;  %4083 = vst.msk [vmem:[%s6960_s9 + $0x10] sm:$0xff] %vm255_vm1, %v4319_v16 }
 0x321   : > { %v3167_v21 = vsub.f32 2.0, %v3135_v41  ;;  %v2741_v2 = vadd.f32 %v2709_v7, %v2639_v40  ;;  %v2810_v45 = vadd.f32 %v2778_v1, %v2740_v51  ;;  %v3772_v33 = vsel %vm3708_vm13, %v3676_v38, %v3740_v55 }
 0x322   : > { %v6952_v54 = vmul.f32 %v4577_v42, %v3166_v22  ;;  %v2881_v35 = vmul.f32 %v6731_v63, %v2845_v52  ;;  %v1678_v0 = vand.u32 15, %v1462_v32  ;;  %v3773_v7 = vsel %vm3709_vm14, %v3677_v23, %v3741_v30  ;;  %v3954_v42 = vpop.f32.mrb[1].mxu1 }
 0x323   : > { %v3804_v27 = vadd.f32 1.0, %v3772_v33  ;;  %v6964_v9 = vmul.f32 %v4579_v44, %v3167_v21  ;;  %v2811_v1 = vadd.f32 %v2779_v5, %v2741_v2  ;;  %v3805_v24 = vadd.f32 1.0, %v3773_v7  ;;  %4081 = vst.msk [vmem:[%s6960_s9] sm:$0xff] %vm255_vm1, %v3954_v42  ;;  %v4320_v52 = vpop.f32.mrb[2].mxu1 }
 0x324   : > { %v3230_v57 = vmul.f32 1.0614054, %v6952_v54  ;;  %v2236_v38 = vadd.f32 %v2204_v12, %v2136_v8  ;;  %v2912_v19 = vadd.f32 %v2880_v26, %v2810_v45  ;;  %4580 = vpow2.f32 %v6911_v60  ;;  %4084 = vst.msk [vmem:[%s6960_s9 + $0x18] sm:$0xff] %vm255_vm1, %v4320_v52  ;;  %v3957_v5 = vpop.f32.mrb[3].mxu1 }
 0x325   : > { %v3231_v50 = vmul.f32 1.0614054, %v6964_v9  ;;  %v2913_v23 = vadd.f32 %v2881_v35, %v2811_v1  ;;  %v1657_v44 = vand.u32 15, %v1459_v58  ;;  %v3836_v41 = vmul.f32 %v3804_v27, %v6790_v61  ;;  %4082 = vst.msk [vmem:[%s6960_s9 + $0x8] sm:$0xff] %vm255_vm1, %v3957_v5 }
 0x326   : > { %v3837_v40 = vmul.f32 %v3805_v24, %v6792_v6  ;;  %v3262_v51 = vadd.f32 -1.4531521, %v3230_v57  ;;  %v6977_v55 = vmul.f32 0.70710677, %v2912_v19  ;;  %v6983_v12 = vadd.f32 %v6926_v28, %v6905_v18  ;;  %v6996_v28 = vld [vmem:[#allocation2 + $0xf7] sm:$0xff] }
 0x327   : > { %v3263_v8 = vadd.f32 -1.4531521, %v3231_v50  ;;  %v6985_v60 = vmul.f32 0.70710677, %v2913_v23  ;;  %vm1878_vm15 = vcmp.ne.s32.totalorder %v1678_v0, 0  ;;  %4582 = vpow2.f32 %v6922_v3  ;;  %v7017_v50 = vld [vmem:[#allocation2 + $0xff] sm:$0xff] }
 0x328   : > { %v3858_v26 = vpack.c.bf16 %v3837_v40, %v3836_v41  ;;  %v3294_v22 = vmul.f32 %v3262_v51, %v6952_v54  ;;  %v3008_v61 = vand.u32 2147483647, %v6977_v55  ;;  %v2336_v58 = vmul.f32 %v5531_v17, %v6931_v49  ;;  %v7020_v40 = vld [vmem:[#allocation2 + $0xf8] sm:$0xff] }
 0x329   : > { %v3295_v6 = vmul.f32 %v3263_v8, %v6964_v9  ;;  %v2400_v32 = vmul.f32 %v6765_v36, %v6873_v37  ;;  %v3009_v18 = vand.u32 2147483647, %v6985_v60  ;;  %v7000_v3 = vsel %vm1878_vm15, 1.0, %v7368_v62 }
 0x32a   : > { %4337 = vmatprep.mubr.msk.bf16.mxu1 %vm199_vm5, %v3858_v26  ;;  %v3326_v30 = vadd.f32 1.4214138, %v3294_v22  ;;  %v3040_v21 = vmul.f32 0.3275911, %v3008_v61  ;;  %vm1971_vm0 = vcmp.ne.s32.totalorder %v1657_v44, 15  ;;  %v3520_v33 = vsub.f32 0.0, %v3008_v61 }
 0x32b   : > { %v3327_v2 = vadd.f32 1.4214138, %v3295_v6  ;;  %v3041_v45 = vmul.f32 0.3275911, %v3009_v18  ;;  %v3521_v35 = vsub.f32 0.0, %v3009_v18  ;;  %v7003_v16 = vadd.f32 %v2336_v58, %v2236_v38  ;;  %v7027_v26 = vld [vmem:[#allocation2 + $0x100] sm:$0xff] }
 0x32c   : > { %v3358_v0 = vmul.f32 %v3326_v30, %v6952_v54  ;;  %v2437_v37 = vmul.f32 %v5568_v56, %v6886_v53  ;;  %v3072_v7 = vadd.f32 1.0, %v3040_v21  ;;  %v4222_v42 = vsel %vm1971_vm0, 1.0, %v7368_v62 }
 0x32d   : > { %v3359_v27 = vmul.f32 %v3327_v2, %v6964_v9  ;;  %v7008_v1 = vadd.f32 1.0, %v3041_v45  ;;  %v2102_v24 = vmul.f32 %v7000_v3, %v6996_v28  ;;  %v2506_v52 = vmul.f32 %v5571_v4, %v6894_v43 }
 0x32e   : > { %v3390_v57 = vadd.f32 -0.28449672, %v3358_v0  ;;  %v2507_v38 = vmul.f32 %v5571_v4, %v6907_v25  ;;  %4584 = vrcp.f32 %v3072_v7  ;;  %v4581_v53 = vpop.eup %4580  ;;  %v3552_v5 = vmul.f32 %v3520_v33, %v3008_v61 }
 0x32f   : > { %v3391_v44 = vadd.f32 -0.28449672, %v3359_v27  ;;  %4586 = vrcp.f32 %v7008_v1  ;;  %v3553_v41 = vmul.f32 %v3521_v35, %v3009_v18  ;;  %v2608_v8 = vmul.f32 %v5582_v13, %v6931_v49 }
 0x330   : > { %v3422_v51 = vmul.f32 %v3390_v57, %v6952_v54  ;;  %v7025_v43 = vmul.f32 0.5, %v2912_v19  ;;  %v2299_v25 = vmul.f32 %v4222_v42, %v6817_v10  ;;  %v7031_v6 = vmul.f32 0.5, %v2913_v23 }
 0x331   : > { %v3423_v22 = vmul.f32 %v3391_v44, %v6964_v9  ;;  %v2138_v61 = vmul.f32 %v5497_v11, %v2102_v24  ;;  %v7036_v58 = vmul.f32 %v5497_v11, %v7017_v50  ;;  %v4583_v18 = vpop.eup %4582  ;;  %v2206_v49 = vmul.f32 %v5503_v15, %v7020_v40  ;;  %v7057_v24 = vld [vmem:[#allocation2 + $0x101] sm:$0xff]  ;;  %v7063_v44 = vld [vmem:[#allocation2 + $0xf9] sm:$0xff] }
 0x332   : > { %v3454_v30 = vadd.f32 0.2548296, %v3422_v51  ;;  %v2335_v19 = vmul.f32 %v5531_v17, %v2299_v25  ;;  %v2436_v21 = vmul.f32 %v5568_v56, %v2400_v32  ;;  %vm3710_vm2 = vcmp.ge.f32.partialorder %v6849_v34, 0.0 }
 0x333   : > { %v3455_v10 = vadd.f32 0.2548296, %v3423_v22  ;;  %v3608_v23 = vmul.f32 1.442695, %v3552_v5  ;;  %v7043_v2 = vmul.f32 1.442695, %v3553_v41  ;;  %v7047_v45 = vmul.f32 %v5503_v15, %v7027_v26 }
 0x334   : > { %v3486_v11 = vmul.f32 %v3454_v30, %v6952_v54  ;;  %vm3711_vm3 = vcmp.ge.f32.partialorder %v6854_v46, 0.0  ;;  %v2367_v33 = vadd.f32 %v2335_v19, %v6852_v48  ;;  %v2468_v35 = vadd.f32 %v2436_v21, %v6866_v59 }
 0x335   : > { %v2573_v32 = vmul.f32 %v4222_v42, %v6933_v47  ;;  %v3487_v0 = vmul.f32 %v3455_v10, %v6964_v9  ;;  %v7055_v27 = vadd.f32 %v2206_v49, %v2138_v61  ;;  %v2674_v15 = vmul.f32 %v6765_v36, %v6996_v28 }
 0x336   : > { %v2711_v54 = vmul.f32 %v5590_v29, %v7017_v50  ;;  %v3646_v57 = vmul.f32 %v4581_v53, %v3486_v11  ;;  %v2469_v48 = vadd.f32 %v2437_v37, %v2367_v33  ;;  %v2538_v5 = vadd.f32 %v2506_v52, %v2468_v35 }
 0x337   : > { %v2609_v59 = vmul.f32 %v5582_v13, %v2573_v32  ;;  %v3647_v41 = vmul.f32 %v4583_v18, %v3487_v0  ;;  %v2710_v9 = vmul.f32 %v5590_v29, %v2674_v15  ;;  %v2780_v51 = vmul.f32 %v5623_v14, %v7020_v40 }
 0x338   : > { %v2781_v25 = vmul.f32 %v5623_v14, %v7027_v26  ;;  %v4585_v36 = vpop.eup %4584  ;;  %v3678_v22 = vsub.f32 1.0, %v3646_v57  ;;  %v2539_v61 = vadd.f32 %v2507_v38, %v2469_v48  ;;  %v2640_v30 = vadd.f32 %v2608_v8, %v2538_v5 }
 0x339   : > { %v2847_v53 = vmul.f32 %v4222_v42, %v7057_v24  ;;  %v4587_v49 = vpop.eup %4586  ;;  %v3679_v37 = vsub.f32 1.0, %v3647_v41  ;;  %v3136_v52 = vmul.f32 %v4585_v36, %v3072_v7  ;;  %v2882_v18 = vmul.f32 %v6731_v63, %v7063_v44 }
 0x33a   : > { %v1461_v19 = vadd.s32 232, %v5413_v31  ;;  %v3742_v21 = vsub.f32 0.0, %v3678_v22  ;;  %v3137_v10 = vmul.f32 %v4587_v49, %v7008_v1  ;;  %v2641_v11 = vadd.f32 %v2609_v59, %v2539_v61 }
 0x33b   : > { %v2742_v33 = vadd.f32 %v2710_v9, %v2640_v30  ;;  %v3743_v35 = vsub.f32 0.0, %v3679_v37  ;;  %v3168_v32 = vsub.f32 2.0, %v3136_v52  ;;  %v2883_v38 = vmul.f32 %v6731_v63, %v2847_v53 }
 0x33c   : > { %v1463_v8 = vadd.s32 248, %v5413_v31  ;;  %v3774_v42 = vsel %vm3710_vm2, %v3678_v22, %v3742_v21  ;;  %v3169_v7 = vsub.f32 2.0, %v3137_v10  ;;  %v2743_v0 = vadd.f32 %v2711_v54, %v2641_v11  ;;  %v7374_v10 = vld [vmem:[#allocation3_spill] sm:$0xff] }
 0x33d   : > { %v2812_v15 = vadd.f32 %v2780_v51, %v2742_v33  ;;  %v3775_v57 = vsel %vm3711_vm3, %v3679_v37, %v3743_v35  ;;  %v3806_v48 = vadd.f32 1.0, %v3774_v42  ;;  %v7082_v5 = vmul.f32 %v4585_v36, %v3168_v32 }
 0x33e   : > { %v1671_v1 = vand.u32 15, %v1461_v19  ;;  %v3807_v59 = vadd.f32 1.0, %v3775_v57  ;;  %v7084_v41 = vmul.f32 %v4587_v49, %v3169_v7  ;;  %v2813_v9 = vadd.f32 %v2781_v25, %v2743_v0 }
 0x33f   : > { %v7086_v61 = vadd.f32 %v2882_v18, %v2812_v15  ;;  %v3838_v31 = vmul.f32 %v3806_v48, %v6898_v39  ;;  %v3232_v34 = vmul.f32 1.0614054, %v7082_v5  ;;  %v1685_v22 = vand.u32 15, %v1463_v8 }
 0x340   : > { %vm1973_vm4 = vcmp.ne.s32.totalorder %v1671_v1, 15  ;;  %v3839_v54 = vmul.f32 %v3807_v59, %v6900_v20  ;;  %v3233_v46 = vmul.f32 1.0614054, %v7084_v41  ;;  %4588 = vpow2.f32 %v3608_v23  ;;  %v4323_v21 = vpop.f32.mrb[4].mxu1 }
 0x341   : > { %v7092_v51 = vadd.f32 %v2883_v38, %v2813_v9  ;;  %v3264_v36 = vadd.f32 -1.4531521, %v3232_v34  ;;  %v7095_v30 = vmul.f32 0.70710677, %v7086_v61  ;;  %vm1975_vm6 = vcmp.ne.s32.totalorder %v1685_v22, 15  ;;  %4087 = vst.msk [vmem:[%s6960_s9 + $0x30] sm:$0xff] %vm255_vm1, %v4323_v21 }
 0x342   : > { %v7098_v25 = vsel %vm1973_vm4, 1.0, %v7368_v62  ;;  %v3859_v39 = vpack.c.bf16 %v3839_v54, %v3838_v31  ;;  %v3265_v53 = vadd.f32 -1.4531521, %v3233_v46  ;;  %v7102_v49 = vadd.f32 %v7047_v45, %v7036_v58  ;;  %v3970_v32 = vpop.f32.mrb[5].mxu1 }
 0x343   : > { %v7105_v20 = vmul.f32 0.70710677, %v7092_v51  ;;  %v3296_v23 = vmul.f32 %v3264_v36, %v7082_v5  ;;  %4590 = vpow2.f32 %v7043_v2  ;;  %v2338_v37 = vmul.f32 %v5531_v17, %v7063_v44  ;;  %4085 = vst.msk [vmem:[%s6960_s9 + $0x20] sm:$0xff] %vm255_vm1, %v3970_v32  ;;  %v2372_v36 = vld [vmem:[#allocation2 + $0x107] sm:$0xff] }
 0x344   : > { %v3010_v52 = vand.u32 2147483647, %v7095_v30  ;;  %4338 = vmatmul.mubr.msk.bf16.gmra.mrb[20].mxu1 %vm199_vm5, %v3859_v39  ;;  %v3297_v18 = vmul.f32 %v3265_v53, %v7084_v41  ;;  %v7116_v45 = vsel %vm1975_vm6, 1.0, %v7368_v62  ;;  %v2301_v19 = vmul.f32 %v7098_v25, %v6933_v47  ;;  %v4324_v47 = vpop.f32.mrb[6].mxu1 }
 0x345   : > { %v3011_v58 = vand.u32 2147483647, %v7105_v20  ;;  %v3328_v2 = vadd.f32 1.4214138, %v3296_v23  ;;  %v2402_v11 = vmul.f32 %v7374_v10, %v6996_v28  ;;  %v2439_v62 = vmul.f32 %v5568_v56, %v7017_v50  ;;  %4088 = vst.msk [vmem:[%s6960_s9 + $0x38] sm:$0xff] %vm255_vm1, %v4324_v47 }
 0x346   : > { %v3042_v33 = vmul.f32 0.3275911, %v3010_v52  ;;  %v3522_v35 = vsub.f32 0.0, %v3010_v52  ;;  %v3329_v38 = vadd.f32 1.4214138, %v3297_v18  ;;  %v2337_v42 = vmul.f32 %v5531_v17, %v2301_v19  ;;  %v3973_v57 = vpop.f32.mrb[7].mxu1 }
 0x347   : > { %v3043_v8 = vmul.f32 0.3275911, %v3011_v58  ;;  %v3360_v7 = vmul.f32 %v3328_v2, %v7082_v5  ;;  %v3523_v28 = vsub.f32 0.0, %v3011_v58  ;;  %v2303_v15 = vmul.f32 %v7116_v45, %v7057_v24  ;;  %4086 = vst.msk [vmem:[%s6960_s9 + $0x28] sm:$0xff] %vm255_vm1, %v3973_v57 }
 0x348   : > { %v7130_v0 = vadd.f32 1.0, %v3042_v33  ;;  %v3361_v48 = vmul.f32 %v3329_v38, %v7084_v41  ;;  %v3554_v1 = vmul.f32 %v3522_v35, %v3010_v52  ;;  %v2369_v59 = vadd.f32 %v2337_v42, %v6983_v12  ;;  %v2475_v33 = vld [vmem:[#allocation2 + $0x110] sm:$0xff] }
 0x349   : > { %v7137_v50 = vadd.f32 1.0, %v3043_v8  ;;  %v3392_v9 = vadd.f32 -0.28449672, %v3360_v7  ;;  %v2370_v31 = vadd.f32 %v2338_v37, %v7055_v27  ;;  %v2508_v34 = vmul.f32 %v5571_v4, %v7020_v40  ;;  %v2373_v40 = vld [vmem:[#allocation2 + $0x10f] sm:$0xff] }
 0x34a   : > { %4592 = vrcp.f32 %v7130_v0  ;;  %v4589_v22 = vpop.eup %4588  ;;  %v3393_v54 = vadd.f32 -0.28449672, %v3361_v48  ;;  %v2509_v46 = vmul.f32 %v5571_v4, %v7027_v26  ;;  %v2438_v12 = vmul.f32 %v5568_v56, %v2402_v11  ;;  %v2474_v37 = vld [vmem:[#allocation2 + $0x108] sm:$0xff] }
 0x34b   : > { %4594 = vrcp.f32 %v7137_v50  ;;  %v3424_v39 = vmul.f32 %v3392_v9, %v7082_v5  ;;  %v2610_v27 = vmul.f32 %v5582_v13, %v7063_v44  ;;  %v2339_v53 = vmul.f32 %v5531_v17, %v2303_v15  ;;  %v2544_v8 = vld [vmem:[#allocation2 + $0x109] sm:$0xff] }
 0x34c   : > { %v2471_v23 = vadd.f32 %v2439_v62, %v2369_v59  ;;  %v3425_v52 = vmul.f32 %v3393_v54, %v7084_v41  ;;  %v3555_v18 = vmul.f32 %v3523_v28, %v3011_v58  ;;  %v7155_v19 = vmul.f32 1.442695, %v3554_v1  ;;  %v2545_v62 = vld [vmem:[#allocation2 + $0x111] sm:$0xff] }
 0x34d   : > { %v2470_v26 = vadd.f32 %v2438_v12, %v7003_v16  ;;  %v4591_v21 = vpop.eup %4590  ;;  %v3456_v2 = vadd.f32 0.2548296, %v3424_v39  ;;  %v2404_v11 = vmul.f32 %v7000_v3, %v2372_v36  ;;  %v2575_v44 = vmul.f32 %v7098_v25, %v7057_v24 }
 0x34e   : > { %v2541_v35 = vadd.f32 %v2509_v46, %v2471_v23  ;;  %v3457_v17 = vadd.f32 0.2548296, %v3425_v52  ;;  %vm3712_vm7 = vcmp.ge.f32.partialorder %v6977_v55, 0.0  ;;  %v2441_v32 = vmul.f32 %v5568_v56, %v2373_v40 }
 0x34f   : > { %v2510_v58 = vmul.f32 %v5571_v4, %v2474_v37  ;;  %v2540_v38 = vadd.f32 %v2508_v34, %v2470_v26  ;;  %v3488_v16 = vmul.f32 %v3456_v2, %v7082_v5  ;;  %vm3713_vm8 = vcmp.ge.f32.partialorder %v6985_v60, 0.0 }
 0x350   : > { %v2611_v42 = vmul.f32 %v5582_v13, %v2575_v44  ;;  %v2676_v47 = vmul.f32 %v7374_v10, %v2372_v36  ;;  %v2713_v24 = vmul.f32 %v5590_v29, %v2373_v40  ;;  %v3489_v7 = vmul.f32 %v3457_v17, %v7084_v41 }
 0x351   : > { %v2642_v28 = vadd.f32 %v2610_v27, %v2540_v38  ;;  %v2782_v15 = vmul.f32 %v5623_v14, %v2474_v37  ;;  %v2783_v57 = vmul.f32 %v5623_v14, %v2475_v33  ;;  %v3648_v48 = vmul.f32 %v4589_v22, %v3488_v16 }
 0x352   : > { %v2643_v1 = vadd.f32 %v2611_v42, %v2541_v35  ;;  %v2712_v5 = vmul.f32 %v5590_v29, %v2676_v47  ;;  %v2849_v59 = vmul.f32 %v7098_v25, %v2545_v62  ;;  %v3649_v9 = vmul.f32 %v4591_v21, %v3489_v7  ;;  %v2647_v7 = vld [vmem:[#allocation2 + $0x11f] sm:$0xff] }
 0x353   : > { %v2884_v34 = vmul.f32 %v6731_v63, %v2544_v8  ;;  %v2371_v10 = vadd.f32 %v2339_v53, %v7102_v49  ;;  %v2440_v54 = vmul.f32 %v5568_v56, %v2404_v11  ;;  %v3680_v41 = vsub.f32 1.0, %v3648_v48 }
 0x354   : > { %v4593_v46 = vpop.eup %4592  ;;  %v2744_v36 = vadd.f32 %v2712_v5, %v2642_v28  ;;  %v2745_v12 = vadd.f32 %v2713_v24, %v2643_v1  ;;  %v2885_v39 = vmul.f32 %v6731_v63, %v2849_v59  ;;  %v3681_v22 = vsub.f32 1.0, %v3649_v9 }
 0x355   : > { %v4595_v27 = vpop.eup %4594  ;;  %v3138_v40 = vmul.f32 %v4593_v46, %v7130_v0  ;;  %v2472_v23 = vadd.f32 %v2440_v54, %v2370_v31  ;;  %v2473_v37 = vadd.f32 %v2441_v32, %v2371_v10  ;;  %v3744_v25 = vsub.f32 0.0, %v3680_v41  ;;  %v2748_v54 = vld [vmem:[#allocation2 + $0x118] sm:$0xff] }
 0x356   : > { %v3139_v52 = vmul.f32 %v4595_v27, %v7137_v50  ;;  %v2814_v26 = vadd.f32 %v2782_v15, %v2744_v36  ;;  %v2815_v21 = vadd.f32 %v2783_v57, %v2745_v12  ;;  %v3745_v49 = vsub.f32 0.0, %v3681_v22  ;;  %v2749_v36 = vld [vmem:[#allocation2 + $0x120] sm:$0xff] }
 0x357   : > { %v3170_v53 = vsub.f32 2.0, %v3138_v40  ;;  %v2511_v56 = vmul.f32 %v5571_v4, %v2475_v33  ;;  %v2577_v2 = vmul.f32 %v7116_v45, %v2545_v62  ;;  %v3776_v63 = vsel %vm3712_vm7, %v3680_v41, %v3744_v25  ;;  %v2646_v62 = vld [vmem:[#allocation2 + $0x117] sm:$0xff] }
 0x358   : > { %v3171_v11 = vsub.f32 2.0, %v3139_v52  ;;  %v7184_v35 = vadd.f32 %v2884_v34, %v2814_v26  ;;  %v7186_v0 = vadd.f32 %v2885_v39, %v2815_v21  ;;  %v3777_v31 = vsel %vm3713_vm8, %v3681_v22, %v3745_v49  ;;  %v2819_v22 = vld [vmem:[#allocation2 + $0x121] sm:$0xff] }
 0x359   : > { %v3808_v50 = vadd.f32 1.0, %v3776_v63  ;;  %v7190_v44 = vmul.f32 %v4593_v46, %v3170_v53  ;;  %v3614_v17 = vmul.f32 1.442695, %v3555_v18  ;;  %v3809_v32 = vadd.f32 1.0, %v3777_v31  ;;  %v4618_v53 = vld [vmem:[%s7327_s2 + $0x8] ss:$0 sm:$0xff] }
 0x35a   : > { %v7192_v38 = vmul.f32 %v4595_v27, %v3171_v11  ;;  %v2542_v4 = vadd.f32 %v2510_v58, %v2472_v23  ;;  %v2543_v33 = vadd.f32 %v2511_v56, %v2473_v37  ;;  %v2612_v16 = vmul.f32 %v5582_v13, %v2544_v8  ;;  %v2818_v37 = vld [vmem:[#allocation2 + $0x119] sm:$0xff] }
 0x35b   : > { %v3234_v55 = vmul.f32 1.0614054, %v7190_v44  ;;  %v7197_v42 = vmul.f32 0.70710677, %v7184_v35  ;;  %v7200_v60 = vmul.f32 0.70710677, %v7186_v0  ;;  %v3840_v47 = vmul.f32 %v3808_v50, %v7025_v43 }
 0x35c   : > { %v3841_v18 = vmul.f32 %v3809_v32, %v7031_v6  ;;  %v3235_v24 = vmul.f32 1.0614054, %v7192_v38  ;;  %v2613_v58 = vmul.f32 %v5582_v13, %v2577_v2  ;;  %v2678_v57 = vmul.f32 %v7000_v3, %v2646_v62 }
 0x35d   : > { %v3266_v28 = vadd.f32 -1.4531521, %v3234_v55  ;;  %v7207_v15 = vand.u32 2147483647, %v7197_v42  ;;  %v7210_v8 = vand.u32 2147483647, %v7200_v60  ;;  %v2644_v5 = vadd.f32 %v2612_v16, %v2542_v4 }
 0x35e   : > { %v3860_v48 = vpack.c.bf16 %v3841_v18, %v3840_v47  ;;  %v3267_v1 = vadd.f32 -1.4531521, %v3235_v24  ;;  %v2645_v43 = vadd.f32 %v2613_v58, %v2543_v33  ;;  %v2714_v34 = vmul.f32 %v5590_v29, %v2678_v57 }
 0x35f   : > { %v3298_v6 = vmul.f32 %v3266_v28, %v7190_v44  ;;  %v3044_v59 = vmul.f32 0.3275911, %v7207_v15  ;;  %v3045_v13 = vmul.f32 0.3275911, %v7210_v8  ;;  %v2715_v10 = vmul.f32 %v5590_v29, %v2647_v7 }
 0x360   : > { %4341 = vmatprep.mubr.msk.bf16.mxu1 %vm199_vm5, %v3860_v48  ;;  %v3299_v9 = vmul.f32 %v3267_v1, %v7192_v38  ;;  %4596 = vpow2.f32 %v7155_v19  ;;  %v2746_v39 = vadd.f32 %v2714_v34, %v2644_v5  ;;  %v2784_v23 = vmul.f32 %v5623_v14, %v2748_v54 }
 0x361   : > { %v3330_v3 = vadd.f32 1.4214138, %v3298_v6  ;;  %v3076_v46 = vadd.f32 1.0, %v3044_v59  ;;  %v3077_v41 = vadd.f32 1.0, %v3045_v13  ;;  %4598 = vpow2.f32 %v3614_v17 }
 0x362   : > { %v3331_v12 = vadd.f32 1.4214138, %v3299_v9  ;;  %v2747_v27 = vadd.f32 %v2715_v10, %v2645_v43  ;;  %v2785_v25 = vmul.f32 %v5623_v14, %v2749_v36  ;;  %v2816_v52 = vadd.f32 %v2784_v23, %v2746_v39 }
 0x363   : > { %v3362_v40 = vmul.f32 %v3330_v3, %v7190_v44  ;;  %4600 = vrcp.f32 %v3076_v46  ;;  %v2851_v26 = vmul.f32 %v7116_v45, %v2819_v22  ;;  %v2886_v56 = vmul.f32 %v4618_v53, %v2818_v37 }
 0x364   : > { %v3363_v29 = vmul.f32 %v3331_v12, %v7192_v38  ;;  %4602 = vrcp.f32 %v3077_v41  ;;  %v2817_v49 = vadd.f32 %v2785_v25, %v2747_v27  ;;  %v2946_v7 = vmul.f32 0.5, %v7086_v61 }
 0x365   : > { %v3394_v19 = vadd.f32 -0.28449672, %v3362_v40  ;;  %v2887_v63 = vmul.f32 %v4618_v53, %v2851_v26  ;;  %v7231_v31 = vadd.f32 %v2886_v56, %v2816_v52  ;;  %v3524_v5 = vsub.f32 0.0, %v7207_v15 }
 0x366   : > { %v3395_v21 = vadd.f32 -0.28449672, %v3363_v29  ;;  %v3525_v59 = vsub.f32 0.0, %v7210_v8  ;;  %vm3714_vm9 = vcmp.ge.f32.partialorder %v7095_v30, 0.0  ;;  %vm3715_vm10 = vcmp.ge.f32.partialorder %v7105_v20, 0.0 }
 0x367   : > { %v3426_v2 = vmul.f32 %v3394_v19, %v7190_v44  ;;  %v7233_v14 = vadd.f32 %v2887_v63, %v2817_v49  ;;  %v7236_v45 = vmul.f32 0.70710677, %v7231_v31  ;;  %v2947_v30 = vmul.f32 0.5, %v7092_v51 }
 0x368   : > { %v3427_v11 = vmul.f32 %v3395_v21, %v7192_v38  ;;  %v3557_v27 = vmul.f32 %v3525_v59, %v7210_v8  ;;  %vm3716_vm11 = vcmp.ge.f32.partialorder %v7197_v42, 0.0  ;;  %vm3717_vm12 = vcmp.ge.f32.partialorder %v7200_v60, 0.0 }
 0x369   : > { %v3458_v50 = vadd.f32 0.2548296, %v3426_v2  ;;  %v7240_v33 = vmul.f32 0.70710677, %v7233_v14  ;;  %v7244_v16 = vand.u32 2147483647, %v7236_v45 }
 0x36a   : > { %v3459_v17 = vadd.f32 0.2548296, %v3427_v11  ;;  %v4597_v32 = vpop.eup %4596  ;;  %v3618_v52 = vmul.f32 1.442695, %v3557_v27  ;;  %vm3718_vm13 = vcmp.ge.f32.partialorder %v7236_v45, 0.0 }
 0x36b   : > { %v3490_v4 = vmul.f32 %v3458_v50, %v7190_v44  ;;  %v4599_v62 = vpop.eup %4598  ;;  %v7247_v24 = vand.u32 2147483647, %v7240_v33  ;;  %v3046_v44 = vmul.f32 0.3275911, %v7244_v16  ;;  %vm3719_vm14 = vcmp.ge.f32.partialorder %v7240_v33, 0.0 }
 0x36c   : > { %v3491_v55 = vmul.f32 %v3459_v17, %v7192_v38 }
 0x36d   : > { %v4601_v47 = vpop.eup %4600  ;;  %v3650_v18 = vmul.f32 %v4597_v32, %v3490_v4  ;;  %v3047_v38 = vmul.f32 0.3275911, %v7247_v24  ;;  %v3078_v13 = vadd.f32 1.0, %v3046_v44 }
 0x36e   : > { %v4603_v58 = vpop.eup %4602  ;;  %v3651_v28 = vmul.f32 %v4599_v62, %v3491_v55  ;;  %v3140_v57 = vmul.f32 %v4601_v47, %v3076_v46  ;;  %v3526_v62 = vsub.f32 0.0, %v7244_v16 }
 0x36f   : > { %v3682_v48 = vsub.f32 1.0, %v3650_v18  ;;  %v3141_v1 = vmul.f32 %v4603_v58, %v3077_v41  ;;  %v3079_v61 = vadd.f32 1.0, %v3047_v38  ;;  %4604 = vrcp.f32 %v3078_v13 }
 0x370   : > { %v3683_v43 = vsub.f32 1.0, %v3651_v28  ;;  %v3172_v6 = vsub.f32 2.0, %v3140_v57  ;;  %v3556_v41 = vmul.f32 %v3524_v5, %v7207_v15  ;;  %v3527_v18 = vsub.f32 0.0, %v7247_v24 }
 0x371   : > { %v3746_v9 = vsub.f32 0.0, %v3682_v48  ;;  %v3173_v34 = vsub.f32 2.0, %v3141_v1  ;;  %4606 = vrcp.f32 %v3079_v61  ;;  %v3558_v1 = vmul.f32 %v3526_v62, %v7244_v16 }
 0x372   : > { %v3747_v10 = vsub.f32 0.0, %v3683_v43  ;;  %v3204_v54 = vmul.f32 %v4601_v47, %v3172_v6  ;;  %v3616_v25 = vmul.f32 1.442695, %v3556_v41 }
 0x373   : > { %v3778_v3 = vsel %vm3714_vm9, %v3682_v48, %v3746_v9  ;;  %v3205_v46 = vmul.f32 %v4603_v58, %v3173_v34  ;;  %v4327_v15 = vpop.f32.mrb[8].mxu1  ;;  %v3620_v41 = vmul.f32 1.442695, %v3558_v1 }
 0x374   : > { %v3779_v36 = vsel %vm3715_vm10, %v3683_v43, %v3747_v10  ;;  %v3810_v12 = vadd.f32 1.0, %v3778_v3  ;;  %v3236_v39 = vmul.f32 1.0614054, %v3204_v54  ;;  %4091 = vst.msk [vmem:[%s6960_s9 + $0x50] sm:$0xff] %vm255_vm1, %v4327_v15  ;;  %v3986_v26 = vpop.f32.mrb[9].mxu1  ;;  %4608 = vpow2.f32 %v3616_v25 }
 0x375   : > { %v3811_v22 = vadd.f32 1.0, %v3779_v36  ;;  %v3237_v40 = vmul.f32 1.0614054, %v3205_v46  ;;  %4089 = vst.msk [vmem:[%s6960_s9 + $0x40] sm:$0xff] %vm255_vm1, %v3986_v26  ;;  %v4328_v51 = vpop.f32.mrb[10].mxu1  ;;  %4610 = vpow2.f32 %v3618_v52  ;;  %v3559_v43 = vmul.f32 %v3527_v18, %v7247_v24 }
 0x376   : > { %v3842_v20 = vmul.f32 %v3810_v12, %v2946_v7  ;;  %v3268_v23 = vadd.f32 -1.4531521, %v3236_v39  ;;  %4092 = vst.msk [vmem:[%s6960_s9 + $0x58] sm:$0xff] %vm255_vm1, %v4328_v51  ;;  %v3989_v53 = vpop.f32.mrb[11].mxu1  ;;  %4612 = vpow2.f32 %v3620_v41  ;;  %v2948_v15 = vmul.f32 0.5, %v7184_v35 }
 0x377   : > { %v3843_v37 = vmul.f32 %v3811_v22, %v2947_v30  ;;  %v3269_v29 = vadd.f32 -1.4531521, %v3237_v40  ;;  %4090 = vst.msk [vmem:[%s6960_s9 + $0x48] sm:$0xff] %vm255_vm1, %v3989_v53  ;;  %v3622_v39 = vmul.f32 1.442695, %v3559_v43 }
 0x378   : > { %v3300_v19 = vmul.f32 %v3268_v23, %v3204_v54 }
 0x379   : > { %v3861_v21 = vpack.c.bf16 %v3843_v37, %v3842_v20  ;;  %v3301_v8 = vmul.f32 %v3269_v29, %v3205_v46  ;;  %v4605_v2 = vpop.eup %4604  ;;  %4614 = vpow2.f32 %v3622_v39 }
 0x37a   : > { %v3332_v49 = vadd.f32 1.4214138, %v3300_v19  ;;  %v3142_v17 = vmul.f32 %v4605_v2, %v3078_v13  ;;  %v2949_v19 = vmul.f32 0.5, %v7186_v0 }
 0x37b   : > { %4342 = vmatmul.mubr.msk.bf16.gmra.mrb[24].mxu1 %vm199_vm5, %v3861_v21  ;;  %v3333_v56 = vadd.f32 1.4214138, %v3301_v8  ;;  %v4607_v11 = vpop.eup %4606 }
 0x37c   : > { %v3364_v63 = vmul.f32 %v3332_v49, %v3204_v54  ;;  %v3143_v4 = vmul.f32 %v4607_v11, %v3079_v61  ;;  %v3174_v47 = vsub.f32 2.0, %v3142_v17 }
 0x37d   : > { %v3365_v50 = vmul.f32 %v3333_v56, %v3205_v46 }
 0x37e   : > { %v3396_v32 = vadd.f32 -0.28449672, %v3364_v63  ;;  %v3175_v7 = vsub.f32 2.0, %v3143_v4  ;;  %v3206_v57 = vmul.f32 %v4605_v2, %v3174_v47  ;;  %v4609_v13 = vpop.eup %4608 }
 0x37f   : > { %v3397_v55 = vadd.f32 -0.28449672, %v3365_v50  ;;  %v4611_v61 = vpop.eup %4610 }
 0x380   : > { %v3428_v58 = vmul.f32 %v3396_v32, %v3204_v54  ;;  %v3207_v48 = vmul.f32 %v4607_v11, %v3175_v7  ;;  %v3238_v38 = vmul.f32 1.0614054, %v3206_v57  ;;  %v4613_v60 = vpop.eup %4612 }
 0x381   : > { %v3429_v28 = vmul.f32 %v3397_v55, %v3205_v46  ;;  %v2950_v55 = vmul.f32 0.5, %v7231_v31 }
 0x382   : > { %v3460_v44 = vadd.f32 0.2548296, %v3428_v58  ;;  %v3239_v59 = vmul.f32 1.0614054, %v3207_v48  ;;  %v3270_v34 = vadd.f32 -1.4531521, %v3238_v38 }
 0x383   : > { %v3461_v5 = vadd.f32 0.2548296, %v3429_v28  ;;  %v4615_v11 = vpop.eup %4614  ;;  %v2951_v58 = vmul.f32 0.5, %v7233_v14 }
 0x384   : > { %v3492_v6 = vmul.f32 %v3460_v44, %v3204_v54  ;;  %v3271_v3 = vadd.f32 -1.4531521, %v3239_v59  ;;  %v3302_v12 = vmul.f32 %v3270_v34, %v3206_v57 }
 0x385   : > { %v3493_v9 = vmul.f32 %v3461_v5, %v3205_v46 }
 0x386   : > { %v3652_v10 = vmul.f32 %v4609_v13, %v3492_v6  ;;  %v3303_v30 = vmul.f32 %v3271_v3, %v3207_v48  ;;  %v3334_v16 = vadd.f32 1.4214138, %v3302_v12 }
 0x387   : > { %v3653_v36 = vmul.f32 %v4611_v61, %v3493_v9 }
 0x388   : > { %v3684_v27 = vsub.f32 1.0, %v3652_v10  ;;  %v3335_v20 = vadd.f32 1.4214138, %v3303_v30  ;;  %v3366_v54 = vmul.f32 %v3334_v16, %v3206_v57 }
 0x389   : > { %v3685_v22 = vsub.f32 1.0, %v3653_v36 }
 0x38a   : > { %v3748_v40 = vsub.f32 0.0, %v3684_v27  ;;  %v3367_v23 = vmul.f32 %v3335_v20, %v3207_v48  ;;  %v3398_v25 = vadd.f32 -0.28449672, %v3366_v54 }
 0x38b   : > { %v3749_v24 = vsub.f32 0.0, %v3685_v22 }
 0x38c   : > { %v3780_v46 = vsel %vm3716_vm11, %v3684_v27, %v3748_v40  ;;  %v3399_v26 = vadd.f32 -0.28449672, %v3367_v23  ;;  %v3430_v21 = vmul.f32 %v3398_v25, %v3206_v57 }
 0x38d   : > { %v3781_v37 = vsel %vm3717_vm12, %v3685_v22, %v3749_v24  ;;  %v3812_v29 = vadd.f32 1.0, %v3780_v46 }
 0x38e   : > { %v3813_v52 = vadd.f32 1.0, %v3781_v37  ;;  %v3431_v42 = vmul.f32 %v3399_v26, %v3207_v48  ;;  %v3462_v49 = vadd.f32 0.2548296, %v3430_v21 }
 0x38f   : > { %v3844_v8 = vmul.f32 %v3812_v29, %v2948_v15 }
 0x390   : > { %v3845_v51 = vmul.f32 %v3813_v52, %v2949_v19  ;;  %v3463_v56 = vadd.f32 0.2548296, %v3431_v42  ;;  %v3494_v2 = vmul.f32 %v3462_v49, %v3206_v57 }
 0x392   : > { %v3862_v53 = vpack.c.bf16 %v3845_v51, %v3844_v8  ;;  %v3495_v63 = vmul.f32 %v3463_v56, %v3207_v48  ;;  %v3654_v50 = vmul.f32 %v4613_v60, %v3494_v2 }
 0x394   : > { %4345 = vmatprep.mubr.msk.bf16.mxu1 %vm199_vm5, %v3862_v53  ;;  %v3655_v17 = vmul.f32 %v4615_v11, %v3495_v63  ;;  %v3686_v35 = vsub.f32 1.0, %v3654_v50 }
 0x396   : > { %v3687_v32 = vsub.f32 1.0, %v3655_v17  ;;  %v3750_v0 = vsub.f32 0.0, %v3686_v35 }
 0x398   : > { %v3751_v4 = vsub.f32 0.0, %v3687_v32  ;;  %v3782_v62 = vsel %vm3718_vm13, %v3686_v35, %v3750_v0 }
 0x399   : > { %v3814_v18 = vadd.f32 1.0, %v3782_v62 }
 0x39a   : > { %v3783_v47 = vsel %vm3719_vm14, %v3687_v32, %v3751_v4 }
 0x39b   : > { %v3815_v7 = vadd.f32 1.0, %v3783_v47  ;;  %v3846_v28 = vmul.f32 %v3814_v18, %v2950_v55 }
 0x39d   : > { %v3847_v57 = vmul.f32 %v3815_v7, %v2951_v58 }
 0x39f   : > { %v3863_v45 = vpack.c.bf16 %v3847_v57, %v3846_v28 }
 0x3a1   : > { %4346 = vmatmul.mubr.msk.bf16.gmra.mrb[28].mxu1 %vm199_vm5, %v3863_v45 }
 0x3ab   : > { %v4331_v33 = vpop.f32.mrb[12].mxu1 }
 0x3ac   : > { %4095 = vst.msk [vmem:[%s6960_s9 + $0x70] sm:$0xff] %vm255_vm1, %v4331_v33  ;;  %v4002_v31 = vpop.f32.mrb[13].mxu1 }
 0x3ad   : > { %4093 = vst.msk [vmem:[%s6960_s9 + $0x60] sm:$0xff] %vm255_vm1, %v4002_v31  ;;  %v4332_v44 = vpop.f32.mrb[14].mxu1 }
 0x3ae   : > { %4096 = vst.msk [vmem:[%s6960_s9 + $0x78] sm:$0xff] %vm255_vm1, %v4332_v44  ;;  %v4005_v14 = vpop.f32.mrb[15].mxu1 }
 0x3af   : > { %4094 = vst.msk [vmem:[%s6960_s9 + $0x68] sm:$0xff] %vm255_vm1, %v4005_v14 }
 0x3e1   : > { %v4335_v48 = vpop.f32.mrb[16].mxu1 }
 0x3e2   : > { %4099 = vst.msk [vmem:[%s6960_s9 + $0x90] sm:$0xff] %vm255_vm1, %v4335_v48  ;;  %v4018_v1 = vpop.f32.mrb[17].mxu1 }
 0x3e3   : > { %4097 = vst.msk [vmem:[%s6960_s9 + $0x80] sm:$0xff] %vm255_vm1, %v4018_v1  ;;  %v4336_v5 = vpop.f32.mrb[18].mxu1 }
 0x3e4   : > { %4100 = vst.msk [vmem:[%s6960_s9 + $0x98] sm:$0xff] %vm255_vm1, %v4336_v5  ;;  %v4021_v38 = vpop.f32.mrb[19].mxu1 }
 0x3e5   : > { %4098 = vst.msk [vmem:[%s6960_s9 + $0x88] sm:$0xff] %vm255_vm1, %v4021_v38 }
 0x417   : > { %v4339_v43 = vpop.f32.mrb[20].mxu1 }
 0x418   : > { %4103 = vst.msk [vmem:[%s6960_s9 + $0xb0] sm:$0xff] %vm255_vm1, %v4339_v43  ;;  %v4034_v6 = vpop.f32.mrb[21].mxu1 }
 0x419   : > { %4101 = vst.msk [vmem:[%s6960_s9 + $0xa0] sm:$0xff] %vm255_vm1, %v4034_v6  ;;  %v4340_v59 = vpop.f32.mrb[22].mxu1 }
 0x41a   : > { %4104 = vst.msk [vmem:[%s6960_s9 + $0xb8] sm:$0xff] %vm255_vm1, %v4340_v59  ;;  %v4037_v13 = vpop.f32.mrb[23].mxu1 }
 0x41b   : > { %4102 = vst.msk [vmem:[%s6960_s9 + $0xa8] sm:$0xff] %vm255_vm1, %v4037_v13 }
 0x44e   : > { %v4343_v9 = vpop.f32.mrb[24].mxu1 }
 0x44f   : > { %4107 = vst.msk [vmem:[%s6960_s9 + $0xd0] sm:$0xff] %vm255_vm1, %v4343_v9  ;;  %v4050_v34 = vpop.f32.mrb[25].mxu1 }
 0x450   : > { %4105 = vst.msk [vmem:[%s6960_s9 + $0xc0] sm:$0xff] %vm255_vm1, %v4050_v34  ;;  %v4344_v61 = vpop.f32.mrb[26].mxu1 }
 0x451   : > { %4108 = vst.msk [vmem:[%s6960_s9 + $0xd8] sm:$0xff] %vm255_vm1, %v4344_v61  ;;  %v4053_v10 = vpop.f32.mrb[27].mxu1 }
 0x452   : > { %4106 = vst.msk [vmem:[%s6960_s9 + $0xc8] sm:$0xff] %vm255_vm1, %v4053_v10 }
 0x474   : > { %v4347_v3 = vpop.f32.mrb[28].mxu1 }
 0x475   : > { %4111 = vst.msk [vmem:[%s6960_s9 + $0xf0] sm:$0xff] %vm255_vm1, %v4347_v3  ;;  %v4066_v41 = vpop.f32.mrb[29].mxu1 }
 0x476   : > { %4109 = vst.msk [vmem:[%s6960_s9 + $0xe0] sm:$0xff] %vm255_vm1, %v4066_v41  ;;  %v4348_v36 = vpop.f32.mrb[30].mxu1 }
 0x477   : > { %4112 = vst.msk [vmem:[%s6960_s9 + $0xf8] sm:$0xff] %vm255_vm1, %v4348_v36  ;;  %v4069_v12 = vpop.f32.mrb[31].mxu1 }
 0x478   : > { %4110 = vst.msk [vmem:[%s6960_s9 + $0xe8] sm:$0xff] %vm255_vm1, %v4069_v12 }
 0x479 PF: > { %s14_s15 = sadd.s32 1, %s4625_s15  }
 0x47a   : > { %p11_p4 = scmp.ge.s32.totalorder %s14_s15, 4  }
 0x47c   :  { %13 = sbr.rel (!%p11_p4) target bundleno = 1 (0x1), region = 66 }

</bundles_post_ra>
